<compile_context>
chip_gen: v7x
topology: tpu7x:2x2x1
jax: 0.10.0
libtpu: 0.0.40
codegen_flags: <defaults>
</compile_context>

<pallas_src>
import functools

import jax
import jax.numpy as jnp
from jax import lax
from jax.experimental import pallas as pl
from jax.experimental.pallas import tpu as pltpu


# --------------------------------------------------------------------------------------
# In-kernel helpers
# --------------------------------------------------------------------------------------
def _round_half_even(x):
    """torch.round semantics (round half to even), built only from floor/where/compare."""
    f = jnp.floor(x)
    diff = x - f
    up = f + 1.0
    f_is_even = (jnp.floor(f * 0.5) * 2.0) == f
    rounded = jnp.where(diff > 0.5, up, f)
    rounded = jnp.where(diff == 0.5, jnp.where(f_is_even, f, up), rounded)
    return rounded


# --------------------------------------------------------------------------------------
# Fused RSAT kernel: grid = (batch, event-tile); per-batch accumulators live in VMEM scratch.
# --------------------------------------------------------------------------------------
def _rsat_kernel(ev_ref, out_ref, acc_fw_ref, acc_zero_ref, *, H, W, max_ts, flow_scaling):
    HW = H * W
    k = pl.program_id(1)

    @pl.when(k == 0)
    def _init():
        acc_fw_ref[...] = jnp.zeros_like(acc_fw_ref)
        acc_zero_ref[...] = jnp.zeros_like(acc_zero_ref)

    ev = ev_ref[0]                       # (8, Nt)  rows: ts, y, x, p, fy, fx, 0, 0 (lane-dense)
    ts = ev[0:1, :]
    yx = ev[1:3, :]                      # (2, Nt)  coordinate pair, processed together
    p = ev[3:4, :]
    fl = ev[4:6, :]                      # (2, Nt)  per-event flow (fy, fx)

    dt = max_ts - ts
    pos = (p == 1.0).astype(jnp.float32)
    neg = (p == -1.0).astype(jnp.float32)

    # Weight rows shared by the fw and zero branches (hoisted, concat-free construction):
    # row 0 = pos count, row 1 = neg count, row 2 = pos*ts, row 3 = neg*ts.
    row = lax.broadcasted_iota(jnp.int32, (4, 1), 0)                     # (4, 1)
    pol = jnp.where((row == 0) | (row == 2), pos, neg)                   # (4, Nt)
    base4 = jnp.where(row < 2, pol, pol * ts)                            # (4, Nt)

    # Tiny per-pixel sublane iota, built once and shared — no (HW, N) int32 slab.
    pix_col = lax.broadcasted_iota(jnp.int32, (HW, 1), 0)                # (HW, 1)

    def scatter_images(warped):
        # get_interpolation(..., round_idx=True): nearest pixel, unit weights, in-bounds mask.
        r = _round_half_even(warped)                                     # (2, Nt) paired math
        ry = r[0:1, :]
        rx = r[1:2, :]
        m = ((ry >= 0.0) & (ry < float(H)) &
             (rx >= 0.0) & (rx < float(W))).astype(jnp.float32)          # (1, Nt)
        idx = ((ry * float(W) + rx) * m).astype(jnp.int32)               # masked events -> px 0
        # One-hot built by broadcast compare; the big (HW, Nt) slab is NEVER transposed:
        # its contraction dim (events) is its LAST dim (canonical LHS), only the tiny (4, Nt)
        # weight matrix sits in the trans_b slot of the MXU matmul.
        onehot = (pix_col == idx).astype(jnp.float32)                    # (HW, Nt)
        w4 = base4 * m                                                   # (4, Nt)
        return lax.dot_general(
            onehot, w4,
            dimension_numbers=(((1,), (1,)), ((), ())),
            preferred_element_type=jnp.float32,
        )                                                                # (HW, 4)

    acc_fw_ref[...] += scatter_images(yx + (dt * flow_scaling) * fl)     # warped branch
    acc_zero_ref[...] += scatter_images(yx)                              # flow * 0 branch

    @pl.when(k == pl.num_programs(1) - 1)
    def _finalize():
        inv_max_ts = 1.0 / max_ts

        def ts_ratio_half(acc):
            cnt_pos = acc[:, 0:1]
            cnt_neg = acc[:, 1:2]
            avg_pos = acc[:, 2:3] / (cnt_pos + 1e-9) * inv_max_ts
            avg_neg = acc[:, 3:4] / (cnt_neg + 1e-9) * inv_max_ts
            ts_sum = (jnp.sum(avg_pos * avg_pos, axis=0, keepdims=True)
                      + jnp.sum(avg_neg * avg_neg, axis=0, keepdims=True))
            nonzero = jnp.sum(((cnt_pos + cnt_neg) > 0.0).astype(jnp.float32),
                              axis=0, keepdims=True)
            return ts_sum / nonzero                                      # (1, 1)

        rsat = ts_ratio_half(acc_fw_ref[...]) / ts_ratio_half(acc_zero_ref[...])   # (1, 1)
        out_ref[...] = jnp.broadcast_to(rsat, (1, 128)).reshape(1, 1, 128)


@functools.partial(jax.jit,
                   static_argnames=("passes", "res", "flow_scaling", "n_tile"))
def rsat_pallas(event_list, flow_list, *, passes, res=(16, 16), flow_scaling=128.0, n_tile=512):
    """event_list: (B, N, 4) [ts, y, x, p]; flow_list: (B, N, 2) per-event flow -> (B,) RSAT."""
    B, N, _ = event_list.shape
    H, W = res

    # Single (B, 8, N) slab: rows ts, y, x, p, fy, fx, 0, 0 — one DMA stream, 8-sublane tile,
    # events on the lane axis.
    slab = jnp.concatenate([event_list.astype(jnp.float32),
                            flow_list.astype(jnp.float32),
                            jnp.zeros((B, N, 2), jnp.float32)], axis=2)   # (B, N, 8)
    slab = jnp.transpose(slab, (0, 2, 1))                                 # (B, 8, N)

    # Pad the event axis to a multiple of n_tile with p=0 events (zero weight -> exact).
    n_pad = ((N + n_tile - 1) // n_tile) * n_tile
    if n_pad != N:
        slab = jnp.pad(slab, ((0, 0), (0, 0), (0, n_pad - N)))
    k_steps = n_pad // n_tile

    kernel = functools.partial(_rsat_kernel, H=H, W=W,
                               max_ts=float(passes), flow_scaling=float(flow_scaling))
    out = pl.pallas_call(
        kernel,
        out_shape=jax.ShapeDtypeStruct((B, 1, 128), jnp.float32),
        grid=(B, k_steps),
        in_specs=[pl.BlockSpec((1, 8, n_tile), lambda b, k: (b, 0, k))],
        out_specs=pl.BlockSpec((1, 1, 128), lambda b, k: (b, 0, 0)),      # lane-dense scalar store
        scratch_shapes=[pltpu.VMEM((H * W, 4), jnp.float32),              # fw accumulator
                        pltpu.VMEM((H * W, 4), jnp.float32)],             # zero-flow accumulator
        compiler_params=pltpu.CompilerParams(
            dimension_semantics=("parallel", "arbitrary"),
            vmem_limit_bytes=32 * 1024 * 1024),
    )(slab)
    return out[:, 0, 0]


# --------------------------------------------------------------------------------------
# Plain-JAX port of the state bookkeeping (BaseValidationMetric.event_flow_association)
# --------------------------------------------------------------------------------------
class RSATPallas:
    """JAX/Pallas port of RSAT.  forward() computes fw_ts_sum / zero_ts_sum per batch."""

    def __init__(self, resolution=(16, 16), flow_scaling=128.0):
        self.res = resolution
        self.flow_scaling = flow_scaling
        self.reset()

    def reset(self):
        self._passes = 0
        self._event_list = None
        self._flow_list = None

    def event_flow_association(self, flow_map, event_list):
        """flow_map: (B, 2, H, W); event_list: (B, N, 4) rows [ts, y, x, p]."""
        # Row-major flat pixel index y*W + x — consistent with the flow_map flattening below
        # AND with the in-kernel scatter index (fixes the y + x*W mismatch from review).
        flow_idx = (event_list[:, :, 1] * self.res[1] + event_list[:, :, 2]).astype(jnp.int32)
        flow = jnp.transpose(flow_map.reshape(flow_map.shape[0], 2, -1), (0, 2, 1))  # (B, HW, 2)
        event_flow = jnp.take_along_axis(flow, jnp.repeat(flow_idx[..., None], 2, axis=2), axis=1)
        if self._flow_list is None:
            self._flow_list = event_flow
        else:
            self._flow_list = jnp.concatenate([self._flow_list, event_flow], axis=1)
        if self._event_list is None:
            self._event_list = event_list
        else:
            ev = event_list.at[:, :, 0:1].add(float(self._passes))   # timestamp offset per pass
            self._event_list = jnp.concatenate([self._event_list, ev], axis=1)
        self._passes += 1

    def forward(self):
        return rsat_pallas(self._event_list, self._flow_list,
                           passes=self._passes, res=self.res,
                           flow_scaling=self.flow_scaling, n_tile=512)


# --------------------------------------------------------------------------------------
# Plain-JAX reference (scatter-add based) used only for in-script validation.
# --------------------------------------------------------------------------------------
def rsat_reference(event_list, flow_list, passes, res, flow_scaling):
    H, W = res
    HW = H * W
    max_ts = float(passes)
    ts = event_list[..., 0]
    p = event_list[..., 3]
    pos = (p == 1.0).astype(jnp.float32)
    neg = (p == -1.0).astype(jnp.float32)

    def half(flow):
        warped = event_list[..., 1:3] + (max_ts - event_list[..., 0:1]) * flow * flow_scaling
        ridx = jnp.round(warped)
        mask = ((ridx[..., 0] >= 0) & (ridx[..., 0] < H)
                & (ridx[..., 1] >= 0) & (ridx[..., 1] < W))
        ridx = ridx * mask[..., None]
        flat = (ridx[..., 0] * W + ridx[..., 1]).astype(jnp.int32)
        w = mask.astype(jnp.float32)

        def scat(vals):
            return jax.vmap(lambda i, v: jnp.zeros((HW,), jnp.float32).at[i].add(v))(flat, vals)

        iwe_pos, iwe_neg = scat(w * pos), scat(w * neg)
        iwe_pos_ts, iwe_neg_ts = scat(w * ts * pos), scat(w * ts * neg)
        avg_pos = iwe_pos_ts / (iwe_pos + 1e-9) / max_ts
        avg_neg = iwe_neg_ts / (iwe_neg + 1e-9) / max_ts
        ts_sum = jnp.sum(avg_pos ** 2, axis=1) + jnp.sum(avg_neg ** 2, axis=1)
        nonzero = jnp.sum(((iwe_pos + iwe_neg) > 0).astype(jnp.float32), axis=1)
        return ts_sum / nonzero

    return half(flow_list) / half(flow_list * 0.0)


if __name__ == "__main__":
    B, N_PER_PASS, H, W = 2, 512, 16, 16
    PASSES = 2
    FLOW_SCALING = 128.0

    key = jax.random.PRNGKey(0)
    metric = RSATPallas(resolution=(H, W), flow_scaling=FLOW_SCALING)

    for _ in range(PASSES):
        key, k_ts, k_y, k_x, k_p, k_f = jax.random.split(key, 6)
        ts = jax.random.uniform(k_ts, (B, N_PER_PASS, 1), jnp.float32)
        ey = jnp.floor(jax.random.uniform(k_y, (B, N_PER_PASS, 1), jnp.float32) * H)
        ex = jnp.floor(jax.random.uniform(k_x, (B, N_PER_PASS, 1), jnp.float32) * W)
        ep = jnp.where(jax.random.uniform(k_p, (B, N_PER_PASS, 1)) < 0.5, -1.0, 1.0)
        event_list = jnp.concatenate([ts, ey, ex, ep.astype(jnp.float32)], axis=2)   # (B, N, 4)
        flow_map = jax.random.uniform(k_f, (B, 2, H, W), jnp.float32, -0.04, 0.04)
        metric.event_flow_association(flow_map, event_list)

    out = metric.forward()                       # (B,) RSAT per batch element
    jax.block_until_ready(out)

    ref = rsat_reference(metric._event_list, metric._flow_list, metric._passes,
                         (H, W), FLOW_SCALING)
    if not bool(jnp.allclose(out, ref, rtol=1e-3, atol=1e-5)):
        raise SystemExit(f"mismatch: pallas={out} reference={ref}")

    print("KERNEL_OK")
</pallas_src>

<mosaic_0001>
module attributes {stable_mosaic.version = 11 : i64} {
  func.func @_rsat_kernel(%arg0: i32, %arg1: i32, %arg2: memref<1x8x512xf32, #tpu.memory_space<vmem>>, %arg3: memref<1x1x128xf32, #tpu.memory_space<vmem>>, %arg4: memref<256x4xf32, #tpu.memory_space<vmem>>, %arg5: memref<256x4xf32, #tpu.memory_space<vmem>>) attributes {dimension_semantics = [#tpu.dimension_semantics<parallel>, #tpu.dimension_semantics<arbitrary>], iteration_bounds = array<i64: 2, 2>, scalar_prefetch = 0 : i64, scratch_operands = 2 : i64, tpu.core_type = #tpu.core_type<tc>, window_params = [{transform_indices = @transform_0, window_bounds = array<i64: 1, 8, 512>}, {transform_indices = @transform_1, window_bounds = array<i64: 1, 1, 128>}]} {
    %c0_i32 = arith.constant 0 : i32
    %0 = arith.cmpi eq, %arg1, %c0_i32 : i32
    %1 = arith.extui %0 : i1 to i32
    %c0_i32_0 = arith.constant 0 : i32
    %2 = arith.cmpi ne, %1, %c0_i32_0 : i32
    scf.if %2 {
      %cst_39 = arith.constant 0.000000e+00 : f32
      %144 = vector.broadcast %cst_39 : f32 to vector<256x4xf32>
      %c0_40 = arith.constant 0 : index
      %c0_41 = arith.constant 0 : index
      %145 = vector.load %arg4[%c0_40, %c0_41] : memref<256x4xf32, #tpu.memory_space<vmem>>, vector<256x4xf32>
      tpu.vector_store %arg4[%c0_40, %c0_41], %144 {strides = array<i32>} : memref<256x4xf32, #tpu.memory_space<vmem>>, vector<256x4xf32>,
      %cst_42 = arith.constant 0.000000e+00 : f32
      %146 = vector.broadcast %cst_42 : f32 to vector<256x4xf32>
      %c0_43 = arith.constant 0 : index
      %c0_44 = arith.constant 0 : index
      %147 = vector.load %arg5[%c0_43, %c0_44] : memref<256x4xf32, #tpu.memory_space<vmem>>, vector<256x4xf32>
      tpu.vector_store %arg5[%c0_43, %c0_44], %146 {strides = array<i32>} : memref<256x4xf32, #tpu.memory_space<vmem>>, vector<256x4xf32>,
    } else {
    }
    %c0 = arith.constant 0 : index
    %c0_1 = arith.constant 0 : index
    %c0_2 = arith.constant 0 : index
    %3 = vector.load %arg2[%c0, %c0_1, %c0_2] : memref<1x8x512xf32, #tpu.memory_space<vmem>>, vector<1x8x512xf32>
    %4 = vector.shape_cast %3 : vector<1x8x512xf32> to vector<8x512xf32>
    %5 = vector.extract_strided_slice %4 {offsets = [0, 0], sizes = [1, 512], strides = [1, 1]} : vector<8x512xf32> to vector<1x512xf32>
    %6 = vector.extract_strided_slice %4 {offsets = [1, 0], sizes = [2, 512], strides = [1, 1]} : vector<8x512xf32> to vector<2x512xf32>
    %7 = vector.extract_strided_slice %4 {offsets = [3, 0], sizes = [1, 512], strides = [1, 1]} : vector<8x512xf32> to vector<1x512xf32>
    %8 = vector.extract_strided_slice %4 {offsets = [4, 0], sizes = [2, 512], strides = [1, 1]} : vector<8x512xf32> to vector<2x512xf32>
    %cst = arith.constant 2.000000e+00 : f32
    %9 = vector.broadcast %cst : f32 to vector<1x512xf32>
    %10 = arith.subf %9, %5 : vector<1x512xf32>
    %cst_3 = arith.constant 1.000000e+00 : f32
    %11 = vector.broadcast %cst_3 : f32 to vector<1x512xf32>
    %12 = arith.cmpf oeq, %7, %11 : vector<1x512xf32>
    %13 = arith.extui %12 : vector<1x512xi1> to vector<1x512xi32>
    %14 = arith.sitofp %13 : vector<1x512xi32> to vector<1x512xf32>
    %cst_4 = arith.constant -1.000000e+00 : f32
    %15 = vector.broadcast %cst_4 : f32 to vector<1x512xf32>
    %16 = arith.cmpf oeq, %7, %15 : vector<1x512xf32>
    %17 = arith.extui %16 : vector<1x512xi1> to vector<1x512xi32>
    %18 = arith.sitofp %17 : vector<1x512xi32> to vector<1x512xf32>
    %19 = tpu.iota {dimensions = array<i32: 0>} : vector<4x1xi32>
    %c0_i32_5 = arith.constant 0 : i32
    %20 = vector.broadcast %c0_i32_5 : i32 to vector<4x1xi32>
    %21 = arith.cmpi eq, %19, %20 : vector<4x1xi32>
    %c2_i32 = arith.constant 2 : i32
    %22 = vector.broadcast %c2_i32 : i32 to vector<4x1xi32>
    %23 = arith.cmpi eq, %19, %22 : vector<4x1xi32>
    %24 = arith.ori %21, %23 : vector<4x1xi1>
    %25 = vector.shape_cast %24 : vector<4x1xi1> to vector<4x1xi1>
    %26 = vector.broadcast %25 : vector<4x1xi1> to vector<4x512xi1>
    %27 = vector.shape_cast %14 : vector<1x512xf32> to vector<1x512xf32>
    %28 = vector.broadcast %27 : vector<1x512xf32> to vector<4x512xf32>
    %29 = vector.shape_cast %18 : vector<1x512xf32> to vector<1x512xf32>
    %30 = vector.broadcast %29 : vector<1x512xf32> to vector<4x512xf32>
    %31 = arith.select %26, %28, %30 : vector<4x512xi1>, vector<4x512xf32>
    %c2_i32_6 = arith.constant 2 : i32
    %32 = vector.broadcast %c2_i32_6 : i32 to vector<4x1xi32>
    %33 = arith.cmpi slt, %19, %32 : vector<4x1xi32>
    %34 = vector.broadcast %5 : vector<1x512xf32> to vector<4x512xf32>
    %35 = arith.mulf %31, %34 : vector<4x512xf32>
    %36 = vector.shape_cast %33 : vector<4x1xi1> to vector<4x1xi1>
    %37 = vector.broadcast %36 : vector<4x1xi1> to vector<4x512xi1>
    %38 = arith.select %37, %31, %35 : vector<4x512xi1>, vector<4x512xf32>
    %39 = tpu.iota {dimensions = array<i32: 0>} : vector<256x1xi32>
    %c0_7 = arith.constant 0 : index
    %c0_8 = arith.constant 0 : index
    %40 = vector.load %arg4[%c0_7, %c0_8] : memref<256x4xf32, #tpu.memory_space<vmem>>, vector<256x4xf32>
    %cst_9 = arith.constant 1.280000e+02 : f32
    %41 = vector.broadcast %cst_9 : f32 to vector<1x512xf32>
    %42 = arith.mulf %10, %41 : vector<1x512xf32>
    %43 = vector.broadcast %42 : vector<1x512xf32> to vector<2x512xf32>
    %44 = arith.mulf %43, %8 : vector<2x512xf32>
    %45 = arith.addf %6, %44 : vector<2x512xf32>
    %46 = math.floor %45 : vector<2x512xf32>
    %47 = arith.subf %45, %46 : vector<2x512xf32>
    %cst_10 = arith.constant 1.000000e+00 : f32
    %48 = vector.broadcast %cst_10 : f32 to vector<2x512xf32>
    %49 = arith.addf %46, %48 : vector<2x512xf32>
    %cst_11 = arith.constant 5.000000e-01 : f32
    %50 = vector.broadcast %cst_11 : f32 to vector<2x512xf32>
    %51 = arith.mulf %46, %50 : vector<2x512xf32>
    %52 = math.floor %51 : vector<2x512xf32>
    %cst_12 = arith.constant 2.000000e+00 : f32
    %53 = vector.broadcast %cst_12 : f32 to vector<2x512xf32>
    %54 = arith.mulf %52, %53 : vector<2x512xf32>
    %55 = arith.cmpf oeq, %54, %46 : vector<2x512xf32>
    %cst_13 = arith.constant 5.000000e-01 : f32
    %56 = vector.broadcast %cst_13 : f32 to vector<2x512xf32>
    %57 = arith.cmpf ogt, %47, %56 : vector<2x512xf32>
    %58 = arith.select %57, %49, %46 : vector<2x512xi1>, vector<2x512xf32>
    %cst_14 = arith.constant 5.000000e-01 : f32
    %59 = vector.broadcast %cst_14 : f32 to vector<2x512xf32>
    %60 = arith.cmpf oeq, %47, %59 : vector<2x512xf32>
    %61 = arith.select %55, %46, %49 : vector<2x512xi1>, vector<2x512xf32>
    %62 = arith.select %60, %61, %58 : vector<2x512xi1>, vector<2x512xf32>
    %63 = vector.extract_strided_slice %62 {offsets = [0, 0], sizes = [1, 512], strides = [1, 1]} : vector<2x512xf32> to vector<1x512xf32>
    %64 = vector.extract_strided_slice %62 {offsets = [1, 0], sizes = [1, 512], strides = [1, 1]} : vector<2x512xf32> to vector<1x512xf32>
    %cst_15 = arith.constant 0.000000e+00 : f32
    %65 = vector.broadcast %cst_15 : f32 to vector<1x512xf32>
    %66 = arith.cmpf oge, %63, %65 : vector<1x512xf32>
    %cst_16 = arith.constant 1.600000e+01 : f32
    %67 = vector.broadcast %cst_16 : f32 to vector<1x512xf32>
    %68 = arith.cmpf olt, %63, %67 : vector<1x512xf32>
    %69 = arith.andi %66, %68 : vector<1x512xi1>
    %cst_17 = arith.constant 0.000000e+00 : f32
    %70 = vector.broadcast %cst_17 : f32 to vector<1x512xf32>
    %71 = arith.cmpf oge, %64, %70 : vector<1x512xf32>
    %72 = arith.andi %69, %71 : vector<1x512xi1>
    %cst_18 = arith.constant 1.600000e+01 : f32
    %73 = vector.broadcast %cst_18 : f32 to vector<1x512xf32>
    %74 = arith.cmpf olt, %64, %73 : vector<1x512xf32>
    %75 = arith.andi %72, %74 : vector<1x512xi1>
    %76 = arith.extui %75 : vector<1x512xi1> to vector<1x512xi32>
    %77 = arith.sitofp %76 : vector<1x512xi32> to vector<1x512xf32>
    %cst_19 = arith.constant 1.600000e+01 : f32
    %78 = vector.broadcast %cst_19 : f32 to vector<1x512xf32>
    %79 = arith.mulf %63, %78 : vector<1x512xf32>
    %80 = arith.addf %79, %64 : vector<1x512xf32>
    %81 = arith.mulf %80, %77 : vector<1x512xf32>
    %82 = arith.fptosi %81 : vector<1x512xf32> to vector<1x512xi32>
    %83 = vector.broadcast %39 : vector<256x1xi32> to vector<256x512xi32>
    %84 = vector.broadcast %82 : vector<1x512xi32> to vector<256x512xi32>
    %85 = arith.cmpi eq, %83, %84 : vector<256x512xi32>
    %86 = arith.extui %85 : vector<256x512xi1> to vector<256x512xi32>
    %87 = arith.sitofp %86 : vector<256x512xi32> to vector<256x512xf32>
    %88 = vector.broadcast %77 : vector<1x512xf32> to vector<4x512xf32>
    %89 = arith.mulf %38, %88 : vector<4x512xf32>
    %cst_20 = arith.constant dense<0.000000e+00> : vector<256x4xf32>
    %90 = tpu.matmul %87, %89, %cst_20 {dimension_numbers = #tpu.dot_dimension_numbers<[1], [1], [0], [0], [0, 0, 1, 0], [], []>} : vector<256x512xf32>, vector<4x512xf32>, vector<256x4xf32> -> vector<256x4xf32>
    %91 = arith.addf %40, %90 : vector<256x4xf32>
    %c0_21 = arith.constant 0 : index
    %c0_22 = arith.constant 0 : index
    %92 = vector.load %arg4[%c0_21, %c0_22] : memref<256x4xf32, #tpu.memory_space<vmem>>, vector<256x4xf32>
    tpu.vector_store %arg4[%c0_21, %c0_22], %91 {strides = array<i32>} : memref<256x4xf32, #tpu.memory_space<vmem>>, vector<256x4xf32>,
    %c0_23 = arith.constant 0 : index
    %c0_24 = arith.constant 0 : index
    %93 = vector.load %arg5[%c0_23, %c0_24] : memref<256x4xf32, #tpu.memory_space<vmem>>, vector<256x4xf32>
    %94 = math.floor %6 : vector<2x512xf32>
    %95 = arith.subf %6, %94 : vector<2x512xf32>
    %cst_25 = arith.constant 1.000000e+00 : f32
    %96 = vector.broadcast %cst_25 : f32 to vector<2x512xf32>
    %97 = arith.addf %94, %96 : vector<2x512xf32>
    %cst_26 = arith.constant 5.000000e-01 : f32
    %98 = vector.broadcast %cst_26 : f32 to vector<2x512xf32>
    %99 = arith.mulf %94, %98 : vector<2x512xf32>
    %100 = math.floor %99 : vector<2x512xf32>
    %cst_27 = arith.constant 2.000000e+00 : f32
    %101 = vector.broadcast %cst_27 : f32 to vector<2x512xf32>
    %102 = arith.mulf %100, %101 : vector<2x512xf32>
    %103 = arith.cmpf oeq, %102, %94 : vector<2x512xf32>
    %cst_28 = arith.constant 5.000000e-01 : f32
    %104 = vector.broadcast %cst_28 : f32 to vector<2x512xf32>
    %105 = arith.cmpf ogt, %95, %104 : vector<2x512xf32>
    %106 = arith.select %105, %97, %94 : vector<2x512xi1>, vector<2x512xf32>
    %cst_29 = arith.constant 5.000000e-01 : f32
    %107 = vector.broadcast %cst_29 : f32 to vector<2x512xf32>
    %108 = arith.cmpf oeq, %95, %107 : vector<2x512xf32>
    %109 = arith.select %103, %94, %97 : vector<2x512xi1>, vector<2x512xf32>
    %110 = arith.select %108, %109, %106 : vector<2x512xi1>, vector<2x512xf32>
    %111 = vector.extract_strided_slice %110 {offsets = [0, 0], sizes = [1, 512], strides = [1, 1]} : vector<2x512xf32> to vector<1x512xf32>
    %112 = vector.extract_strided_slice %110 {offsets = [1, 0], sizes = [1, 512], strides = [1, 1]} : vector<2x512xf32> to vector<1x512xf32>
    %cst_30 = arith.constant 0.000000e+00 : f32
    %113 = vector.broadcast %cst_30 : f32 to vector<1x512xf32>
    %114 = arith.cmpf oge, %111, %113 : vector<1x512xf32>
    %cst_31 = arith.constant 1.600000e+01 : f32
    %115 = vector.broadcast %cst_31 : f32 to vector<1x512xf32>
    %116 = arith.cmpf olt, %111, %115 : vector<1x512xf32>
    %117 = arith.andi %114, %116 : vector<1x512xi1>
    %cst_32 = arith.constant 0.000000e+00 : f32
    %118 = vector.broadcast %cst_32 : f32 to vector<1x512xf32>
    %119 = arith.cmpf oge, %112, %118 : vector<1x512xf32>
    %120 = arith.andi %117, %119 : vector<1x512xi1>
    %cst_33 = arith.constant 1.600000e+01 : f32
    %121 = vector.broadcast %cst_33 : f32 to vector<1x512xf32>
    %122 = arith.cmpf olt, %112, %121 : vector<1x512xf32>
    %123 = arith.andi %120, %122 : vector<1x512xi1>
    %124 = arith.extui %123 : vector<1x512xi1> to vector<1x512xi32>
    %125 = arith.sitofp %124 : vector<1x512xi32> to vector<1x512xf32>
    %cst_34 = arith.constant 1.600000e+01 : f32
    %126 = vector.broadcast %cst_34 : f32 to vector<1x512xf32>
    %127 = arith.mulf %111, %126 : vector<1x512xf32>
    %128 = arith.addf %127, %112 : vector<1x512xf32>
    %129 = arith.mulf %128, %125 : vector<1x512xf32>
    %130 = arith.fptosi %129 : vector<1x512xf32> to vector<1x512xi32>
    %131 = vector.broadcast %39 : vector<256x1xi32> to vector<256x512xi32>
    %132 = vector.broadcast %130 : vector<1x512xi32> to vector<256x512xi32>
    %133 = arith.cmpi eq, %131, %132 : vector<256x512xi32>
    %134 = arith.extui %133 : vector<256x512xi1> to vector<256x512xi32>
    %135 = arith.sitofp %134 : vector<256x512xi32> to vector<256x512xf32>
    %136 = vector.broadcast %125 : vector<1x512xf32> to vector<4x512xf32>
    %137 = arith.mulf %38, %136 : vector<4x512xf32>
    %cst_35 = arith.constant dense<0.000000e+00> : vector<256x4xf32>
    %138 = tpu.matmul %135, %137, %cst_35 {dimension_numbers = #tpu.dot_dimension_numbers<[1], [1], [0], [0], [0, 0, 1, 0], [], []>} : vector<256x512xf32>, vector<4x512xf32>, vector<256x4xf32> -> vector<256x4xf32>
    %139 = arith.addf %93, %138 : vector<256x4xf32>
    %c0_36 = arith.constant 0 : index
    %c0_37 = arith.constant 0 : index
    %140 = vector.load %arg5[%c0_36, %c0_37] : memref<256x4xf32, #tpu.memory_space<vmem>>, vector<256x4xf32>
    tpu.vector_store %arg5[%c0_36, %c0_37], %139 {strides = array<i32>} : memref<256x4xf32, #tpu.memory_space<vmem>>, vector<256x4xf32>,
    %c1_i32 = arith.constant 1 : i32
    %141 = arith.cmpi eq, %arg1, %c1_i32 : i32
    %142 = arith.extui %141 : i1 to i32
    %c0_i32_38 = arith.constant 0 : i32
    %143 = arith.cmpi ne, %142, %c0_i32_38 : i32
    scf.if %143 {
      %c0_39 = arith.constant 0 : index
      %c0_40 = arith.constant 0 : index
      %144 = vector.load %arg4[%c0_39, %c0_40] : memref<256x4xf32, #tpu.memory_space<vmem>>, vector<256x4xf32>
      %145 = vector.extract_strided_slice %144 {offsets = [0, 0], sizes = [256, 1], strides = [1, 1]} : vector<256x4xf32> to vector<256x1xf32>
      %146 = vector.extract_strided_slice %144 {offsets = [0, 1], sizes = [256, 1], strides = [1, 1]} : vector<256x4xf32> to vector<256x1xf32>
      %147 = vector.extract_strided_slice %144 {offsets = [0, 2], sizes = [256, 1], strides = [1, 1]} : vector<256x4xf32> to vector<256x1xf32>
      %cst_41 = arith.constant 9.99999971E-10 : f32
      %148 = vector.broadcast %cst_41 : f32 to vector<256x1xf32>
      %149 = arith.addf %145, %148 : vector<256x1xf32>
      %150 = arith.divf %147, %149 : vector<256x1xf32>
      %cst_42 = arith.constant 5.000000e-01 : f32
      %151 = vector.broadcast %cst_42 : f32 to vector<256x1xf32>
      %152 = arith.mulf %150, %151 : vector<256x1xf32>
      %153 = vector.extract_strided_slice %144 {offsets = [0, 3], sizes = [256, 1], strides = [1, 1]} : vector<256x4xf32> to vector<256x1xf32>
      %cst_43 = arith.constant 9.99999971E-10 : f32
      %154 = vector.broadcast %cst_43 : f32 to vector<256x1xf32>
      %155 = arith.addf %146, %154 : vector<256x1xf32>
      %156 = arith.divf %153, %155 : vector<256x1xf32>
      %cst_44 = arith.constant 5.000000e-01 : f32
      %157 = vector.broadcast %cst_44 : f32 to vector<256x1xf32>
      %158 = arith.mulf %156, %157 : vector<256x1xf32>
      %159 = arith.mulf %152, %152 : vector<256x1xf32>
      %cst_45 = arith.constant dense<0.000000e+00> : vector<1xf32>
      %160 = vector.multi_reduction <add>, %159, %cst_45 [0] : vector<256x1xf32> to vector<1xf32>
      %161 = vector.shape_cast %160 : vector<1xf32> to vector<1x1xf32>
      %162 = arith.mulf %158, %158 : vector<256x1xf32>
      %cst_46 = arith.constant dense<0.000000e+00> : vector<1xf32>
      %163 = vector.multi_reduction <add>, %162, %cst_46 [0] : vector<256x1xf32> to vector<1xf32>
      %164 = vector.shape_cast %163 : vector<1xf32> to vector<1x1xf32>
      %165 = arith.addf %161, %164 : vector<1x1xf32>
      %166 = arith.addf %145, %146 : vector<256x1xf32>
      %cst_47 = arith.constant 0.000000e+00 : f32
      %167 = vector.broadcast %cst_47 : f32 to vector<256x1xf32>
      %168 = arith.cmpf ogt, %166, %167 : vector<256x1xf32>
      %169 = arith.extui %168 : vector<256x1xi1> to vector<256x1xi32>
      %170 = arith.sitofp %169 : vector<256x1xi32> to vector<256x1xf32>
      %cst_48 = arith.constant dense<0.000000e+00> : vector<1xf32>
      %171 = vector.multi_reduction <add>, %170, %cst_48 [0] : vector<256x1xf32> to vector<1xf32>
      %172 = vector.shape_cast %171 : vector<1xf32> to vector<1x1xf32>
      %173 = arith.divf %165, %172 : vector<1x1xf32>
      %c0_49 = arith.constant 0 : index
      %c0_50 = arith.constant 0 : index
      %174 = vector.load %arg5[%c0_49, %c0_50] : memref<256x4xf32, #tpu.memory_space<vmem>>, vector<256x4xf32>
      %175 = vector.extract_strided_slice %174 {offsets = [0, 0], sizes = [256, 1], strides = [1, 1]} : vector<256x4xf32> to vector<256x1xf32>
      %176 = vector.extract_strided_slice %174 {offsets = [0, 1], sizes = [256, 1], strides = [1, 1]} : vector<256x4xf32> to vector<256x1xf32>
      %177 = vector.extract_strided_slice %174 {offsets = [0, 2], sizes = [256, 1], strides = [1, 1]} : vector<256x4xf32> to vector<256x1xf32>
      %cst_51 = arith.constant 9.99999971E-10 : f32
      %178 = vector.broadcast %cst_51 : f32 to vector<256x1xf32>
      %179 = arith.addf %175, %178 : vector<256x1xf32>
      %180 = arith.divf %177, %179 : vector<256x1xf32>
      %cst_52 = arith.constant 5.000000e-01 : f32
      %181 = vector.broadcast %cst_52 : f32 to vector<256x1xf32>
      %182 = arith.mulf %180, %181 : vector<256x1xf32>
      %183 = vector.extract_strided_slice %174 {offsets = [0, 3], sizes = [256, 1], strides = [1, 1]} : vector<256x4xf32> to vector<256x1xf32>
      %cst_53 = arith.constant 9.99999971E-10 : f32
      %184 = vector.broadcast %cst_53 : f32 to vector<256x1xf32>
      %185 = arith.addf %176, %184 : vector<256x1xf32>
      %186 = arith.divf %183, %185 : vector<256x1xf32>
      %cst_54 = arith.constant 5.000000e-01 : f32
      %187 = vector.broadcast %cst_54 : f32 to vector<256x1xf32>
      %188 = arith.mulf %186, %187 : vector<256x1xf32>
      %189 = arith.mulf %182, %182 : vector<256x1xf32>
      %cst_55 = arith.constant dense<0.000000e+00> : vector<1xf32>
      %190 = vector.multi_reduction <add>, %189, %cst_55 [0] : vector<256x1xf32> to vector<1xf32>
      %191 = vector.shape_cast %190 : vector<1xf32> to vector<1x1xf32>
      %192 = arith.mulf %188, %188 : vector<256x1xf32>
      %cst_56 = arith.constant dense<0.000000e+00> : vector<1xf32>
      %193 = vector.multi_reduction <add>, %192, %cst_56 [0] : vector<256x1xf32> to vector<1xf32>
      %194 = vector.shape_cast %193 : vector<1xf32> to vector<1x1xf32>
      %195 = arith.addf %191, %194 : vector<1x1xf32>
      %196 = arith.addf %175, %176 : vector<256x1xf32>
      %cst_57 = arith.constant 0.000000e+00 : f32
      %197 = vector.broadcast %cst_57 : f32 to vector<256x1xf32>
      %198 = arith.cmpf ogt, %196, %197 : vector<256x1xf32>
      %199 = arith.extui %198 : vector<256x1xi1> to vector<256x1xi32>
      %200 = arith.sitofp %199 : vector<256x1xi32> to vector<256x1xf32>
      %cst_58 = arith.constant dense<0.000000e+00> : vector<1xf32>
      %201 = vector.multi_reduction <add>, %200, %cst_58 [0] : vector<256x1xf32> to vector<1xf32>
      %202 = vector.shape_cast %201 : vector<1xf32> to vector<1x1xf32>
      %203 = arith.divf %195, %202 : vector<1x1xf32>
      %204 = arith.divf %173, %203 : vector<1x1xf32>
      %205 = vector.shape_cast %204 : vector<1x1xf32> to vector<1x1xf32>
      %206 = vector.broadcast %205 : vector<1x1xf32> to vector<1x128xf32>
      %207 = vector.shape_cast %206 : vector<1x128xf32> to vector<1x1x128xf32>
      %c0_59 = arith.constant 0 : index
      %c0_60 = arith.constant 0 : index
      %c0_61 = arith.constant 0 : index
      %208 = vector.load %arg3[%c0_59, %c0_60, %c0_61] : memref<1x1x128xf32, #tpu.memory_space<vmem>>, vector<1x1x128xf32>
      tpu.vector_store %arg3[%c0_59, %c0_60, %c0_61], %207 {strides = array<i32>} : memref<1x1x128xf32, #tpu.memory_space<vmem>>, vector<1x1x128xf32>,
    } else {
    }
    return
  }
  func.func @transform_0(%arg0: i32, %arg1: i32) -> (i32, i32, i32) {
    %c0_i32 = arith.constant 0 : i32
    %c0_i32_0 = arith.constant 0 : i32
    return %arg0, %c0_i32, %arg1 : i32, i32, i32
  }
  func.func @transform_1(%arg0: i32, %arg1: i32) -> (i32, i32, i32) {
    %c0_i32 = arith.constant 0 : i32
    %c0_i32_0 = arith.constant 0 : i32
    %c0_i32_1 = arith.constant 0 : i32
    return %arg0, %c0_i32, %c0_i32_0 : i32, i32, i32
  }
}

</mosaic_0001>

<bundles_post_ra>
// kernel: rsat_pallas.1
= control target key start
LH: loop header
LB: loop body
LE: loop exit
PB: predicated region body
PF: predicated region fallthrough
CT: control target
= control target key end

     0   :  { %s5141_s6 = smov 0   ;;  %s5143_s7 = smov 0   ;;  %s7530_s0 = inlined_call_operand.vmem [shape: f32[2,8,1024], index: 0, kind: input, shape index: {}]   ;;  %s7531_s1 = inlined_call_operand.vmem [shape: f32[2,1,128], index: 1, kind: output, shape index: {}]  }
   0x1   :  { %s5145_s8 = smov 0   ;;  %s5147_s9 = smov 0  }
   0x2   :  { %s5149_s10 = smov 0  }
   0x3 LB: > { %s20_s11 = sadd.s32 1, %s5113_s8  ;;  %s23_s12 = sadd.s32 1, %s5117_s9  ;;  %s5121_s10 = sphi %s5149_s10, %s11_s10   ;;  %s5117_s9 = sphi %s5147_s9, %s7604_s9   ;;  %s5113_s8 = sphi %s5145_s8, %s7603_s8   ;;  %s5109_s7 = sphi %s5143_s7, %s7602_s7   ;;  %s5105_s6 = sphi %s5141_s6, %s7601_s6  }
   0x4   : > { %p21_p0 = scmp.ge.s32.totalorder %s20_s11, 2  ;;  %p4243_p1 = scmp.ge.s32.totalorder %s5121_s10, 1 }
   0x5   : > { %p106_p2 = scmp.lt.s32.totalorder %s5121_s10, 5 }
   0x6   : > { %s7606_s11 = smov (%p21_p0, %s20_s11), 0  ;;  %s7608_s12 = smov (!%p21_p0, %s23_s12), %s5117_s9 }
   0x7   : > { %p107_p3 = pnand %p4243_p1, %p106_p2  ;;  %p25_p4 = scmp.ge.s32.totalorder %s7608_s12, 2 }
   0x8   : > { %s4244_s13 = sshll.u32 (!%p107_p3), %s5105_s6, 2  ;;  %p129_p5 = scmp.lt.s32.totalorder (!%p107_p3), %s5109_s7, 1 }
   0x9   : > { %s7610_s12 = smov (%p25_p4, %s7608_s12), 0  ;;  %110 = sbr.rel (%p107_p3) target bundleno = 1259 (0x4eb), region = 24 }
   0xa   : > { %p131_p6 = scmp.lt.s32.totalorder (!%p107_p3), %s4244_s13, 7  ;;  %p4247_p7 = scmp.ne.s32.totalorder (!%p107_p3), %s5105_s6, 0 }
  0x10   : > { %s7612_s7 = smov (!%p129_p5, %s5109_s7), 1  ;;  %s7614_s13 = smov (!%p131_p6, %s4244_s13), 7 }
  0x11   : > { %s4245_s14 = sshll.u32 %s7612_s7, 3  ;;  %s140_s17 = scalar_lea.vmem %s7531_s1, %s7612_s7  ;;  %vm145_vm0 = vcmask (!%p4247_p7), 31744   ;;  %v5123_v0 = vmov (!%p4247_p7), 0.0  }
  0x12   : > { %s134_s18 = sadd.s32 %s4245_s14, %s7614_s13  ;;  %144 = sbr.rel (%p4247_p7) target bundleno = 50 (0x32), region = 28  ;;  %146 = vst.msk [vmem:[#allocation2] sm:$0xff] (!%p4247_p7), %vm145_vm0, %v5123_v0  ;;  %147 = vst.msk [vmem:[#allocation2 + $0x8] sm:$0xff] (!%p4247_p7), %vm145_vm0, %v5123_v0 }
  0x13   : > { %s4246_s19 = sshll.u32 %s134_s18, 3  ;;  %148 = vst.msk [vmem:[#allocation2 + $0x10] sm:$0xff] (!%p4247_p7), %vm145_vm0, %v5123_v0  ;;  %149 = vst.msk [vmem:[#allocation2 + $0x18] sm:$0xff] (!%p4247_p7), %vm145_vm0, %v5123_v0 }
  0x14   : > { %s5184_s22 = scalar_lea.vmem %s7530_s0, %s4246_s19  ;;  %150 = vst.msk [vmem:[#allocation2 + $0x20] sm:$0xff] (!%p4247_p7), %vm145_vm0, %v5123_v0  ;;  %151 = vst.msk [vmem:[#allocation2 + $0x28] sm:$0xff] (!%p4247_p7), %vm145_vm0, %v5123_v0 }
  0x15   : > { %152 = vst.msk [vmem:[#allocation2 + $0x30] sm:$0xff] (!%p4247_p7), %vm145_vm0, %v5123_v0  ;;  %153 = vst.msk [vmem:[#allocation2 + $0x38] sm:$0xff] (!%p4247_p7), %vm145_vm0, %v5123_v0 }
  0x16   : > { %154 = vst.msk [vmem:[#allocation2 + $0x40] sm:$0xff] (!%p4247_p7), %vm145_vm0, %v5123_v0  ;;  %155 = vst.msk [vmem:[#allocation2 + $0x48] sm:$0xff] (!%p4247_p7), %vm145_vm0, %v5123_v0 }
  0x17   : > { %156 = vst.msk [vmem:[#allocation2 + $0x50] sm:$0xff] (!%p4247_p7), %vm145_vm0, %v5123_v0  ;;  %157 = vst.msk [vmem:[#allocation2 + $0x58] sm:$0xff] (!%p4247_p7), %vm145_vm0, %v5123_v0 }
  0x18   : > { %158 = vst.msk [vmem:[#allocation2 + $0x60] sm:$0xff] (!%p4247_p7), %vm145_vm0, %v5123_v0  ;;  %159 = vst.msk [vmem:[#allocation2 + $0x68] sm:$0xff] (!%p4247_p7), %vm145_vm0, %v5123_v0 }
  0x19   : > { %160 = vst.msk [vmem:[#allocation2 + $0x70] sm:$0xff] %vm145_vm0, %v5123_v0  ;;  %161 = vst.msk [vmem:[#allocation2 + $0x78] sm:$0xff] %vm145_vm0, %v5123_v0 }
  0x1a   : > { %162 = vst.msk [vmem:[#allocation2 + $0x80] sm:$0xff] %vm145_vm0, %v5123_v0  ;;  %163 = vst.msk [vmem:[#allocation2 + $0x88] sm:$0xff] %vm145_vm0, %v5123_v0 }
  0x1b   : > { %164 = vst.msk [vmem:[#allocation2 + $0x90] sm:$0xff] %vm145_vm0, %v5123_v0  ;;  %165 = vst.msk [vmem:[#allocation2 + $0x98] sm:$0xff] %vm145_vm0, %v5123_v0 }
  0x1c   : > { %166 = vst.msk [vmem:[#allocation2 + $0xa0] sm:$0xff] %vm145_vm0, %v5123_v0  ;;  %167 = vst.msk [vmem:[#allocation2 + $0xa8] sm:$0xff] %vm145_vm0, %v5123_v0 }
  0x1d   : > { %168 = vst.msk [vmem:[#allocation2 + $0xb0] sm:$0xff] %vm145_vm0, %v5123_v0  ;;  %169 = vst.msk [vmem:[#allocation2 + $0xb8] sm:$0xff] %vm145_vm0, %v5123_v0 }
  0x1e   : > { %170 = vst.msk [vmem:[#allocation2 + $0xc0] sm:$0xff] %vm145_vm0, %v5123_v0  ;;  %171 = vst.msk [vmem:[#allocation2 + $0xc8] sm:$0xff] %vm145_vm0, %v5123_v0 }
  0x1f   : > { %172 = vst.msk [vmem:[#allocation2 + $0xd0] sm:$0xff] %vm145_vm0, %v5123_v0  ;;  %173 = vst.msk [vmem:[#allocation2 + $0xd8] sm:$0xff] %vm145_vm0, %v5123_v0 }
  0x20   : > { %174 = vst.msk [vmem:[#allocation2 + $0xe0] sm:$0xff] %vm145_vm0, %v5123_v0  ;;  %175 = vst.msk [vmem:[#allocation2 + $0xe8] sm:$0xff] %vm145_vm0, %v5123_v0 }
  0x21   : > { %176 = vst.msk [vmem:[#allocation2 + $0xf0] sm:$0xff] %vm145_vm0, %v5123_v0  ;;  %177 = vst.msk [vmem:[#allocation2 + $0xf8] sm:$0xff] %vm145_vm0, %v5123_v0 }
  0x22   : > { %178 = vst.msk [vmem:[#allocation3] sm:$0xff] %vm145_vm0, %v5123_v0  ;;  %179 = vst.msk [vmem:[#allocation3 + $0x8] sm:$0xff] %vm145_vm0, %v5123_v0 }
  0x23   : > { %180 = vst.msk [vmem:[#allocation3 + $0x10] sm:$0xff] %vm145_vm0, %v5123_v0  ;;  %181 = vst.msk [vmem:[#allocation3 + $0x18] sm:$0xff] %vm145_vm0, %v5123_v0 }
  0x24   : > { %182 = vst.msk [vmem:[#allocation3 + $0x20] sm:$0xff] %vm145_vm0, %v5123_v0  ;;  %183 = vst.msk [vmem:[#allocation3 + $0x28] sm:$0xff] %vm145_vm0, %v5123_v0 }
  0x25   : > { %184 = vst.msk [vmem:[#allocation3 + $0x30] sm:$0xff] %vm145_vm0, %v5123_v0  ;;  %185 = vst.msk [vmem:[#allocation3 + $0x38] sm:$0xff] %vm145_vm0, %v5123_v0 }
  0x26   : > { %186 = vst.msk [vmem:[#allocation3 + $0x40] sm:$0xff] %vm145_vm0, %v5123_v0  ;;  %187 = vst.msk [vmem:[#allocation3 + $0x48] sm:$0xff] %vm145_vm0, %v5123_v0 }
  0x27   : > { %188 = vst.msk [vmem:[#allocation3 + $0x50] sm:$0xff] %vm145_vm0, %v5123_v0  ;;  %189 = vst.msk [vmem:[#allocation3 + $0x58] sm:$0xff] %vm145_vm0, %v5123_v0 }
  0x28   : > { %190 = vst.msk [vmem:[#allocation3 + $0x60] sm:$0xff] %vm145_vm0, %v5123_v0  ;;  %191 = vst.msk [vmem:[#allocation3 + $0x68] sm:$0xff] %vm145_vm0, %v5123_v0 }
  0x29   : > { %192 = vst.msk [vmem:[#allocation3 + $0x70] sm:$0xff] %vm145_vm0, %v5123_v0  ;;  %193 = vst.msk [vmem:[#allocation3 + $0x78] sm:$0xff] %vm145_vm0, %v5123_v0 }
  0x2a   : > { %194 = vst.msk [vmem:[#allocation3 + $0x80] sm:$0xff] %vm145_vm0, %v5123_v0  ;;  %195 = vst.msk [vmem:[#allocation3 + $0x88] sm:$0xff] %vm145_vm0, %v5123_v0 }
  0x2b   : > { %196 = vst.msk [vmem:[#allocation3 + $0x90] sm:$0xff] %vm145_vm0, %v5123_v0  ;;  %197 = vst.msk [vmem:[#allocation3 + $0x98] sm:$0xff] %vm145_vm0, %v5123_v0 }
  0x2c   : > { %198 = vst.msk [vmem:[#allocation3 + $0xa0] sm:$0xff] %vm145_vm0, %v5123_v0  ;;  %199 = vst.msk [vmem:[#allocation3 + $0xa8] sm:$0xff] %vm145_vm0, %v5123_v0 }
  0x2d   : > { %200 = vst.msk [vmem:[#allocation3 + $0xb0] sm:$0xff] %vm145_vm0, %v5123_v0  ;;  %201 = vst.msk [vmem:[#allocation3 + $0xb8] sm:$0xff] %vm145_vm0, %v5123_v0 }
  0x2e   : > { %202 = vst.msk [vmem:[#allocation3 + $0xc0] sm:$0xff] %vm145_vm0, %v5123_v0  ;;  %203 = vst.msk [vmem:[#allocation3 + $0xc8] sm:$0xff] %vm145_vm0, %v5123_v0 }
  0x2f   : > { %204 = vst.msk [vmem:[#allocation3 + $0xd0] sm:$0xff] %vm145_vm0, %v5123_v0  ;;  %205 = vst.msk [vmem:[#allocation3 + $0xd8] sm:$0xff] %vm145_vm0, %v5123_v0 }
  0x30   : > { %206 = vst.msk [vmem:[#allocation3 + $0xe0] sm:$0xff] %vm145_vm0, %v5123_v0  ;;  %207 = vst.msk [vmem:[#allocation3 + $0xe8] sm:$0xff] %vm145_vm0, %v5123_v0 }
  0x31   : > { %208 = vst.msk [vmem:[#allocation3 + $0xf0] sm:$0xff] %vm145_vm0, %v5123_v0  ;;  %209 = vst.msk [vmem:[#allocation3 + $0xf8] sm:$0xff] %vm145_vm0, %v5123_v0 }
  0x32 PF: > { %v5316_v1 = vld [vmem:[%s5184_s22 + $0x8] sm:$0xff]  ;;  %v242_v2 = vlaneseq  ;;  %v5325_v10 = vld [vmem:[%s5184_s22 + $0x18] sm:$0xff]  ;;  %v5124_v14 = vmov 0.0   ;;  %v5125_v33 = vmov 0   ;;  %p4776_p8 = scmp.ne.s32.totalorder %s5105_s6, 1 }
  0x33   : > { %v215_v3 = vsub.f32 2.0, %v5316_v1  ;;  %v1511_v4 = vfloor.f32 %v5316_v1  ;;  %vm219_vm1 = vcmp.eq.f32.partialorder %v5316_v1, 1.0  ;;  %vm231_vm3 = vcmp.eq.f32.partialorder %v5316_v1, -1.0 }
  0x34   : > { %v5320_v5 = vshrl.u32 %v242_v2, 7  ;;  %v4249_v15 = vsel %vm219_vm1, 1.0, %v5124_v14  ;;  %v217_v18 = vsub.f32 2.0, %v5325_v10  ;;  %v4253_v20 = vsel %vm231_vm3, 1.0, %v5124_v14 }
  0x35   : > { %v376_v6 = vmul.f32 128.0, %v215_v3  ;;  %v1515_v7 = vsub.f32 %v5316_v1, %v1511_v4  ;;  %v1523_v8 = vmul.f32 0.5, %v1511_v4  ;;  %v1519_v9 = vadd.f32 1.0, %v1511_v4 }
  0x36   : > { %v5328_v11 = vsub.s32 0, %v5320_v5  ;;  %v5332_v13 = vsub.s32 3, %v5320_v5  ;;  %vm244_vm6 = vcmp.eq.s32.totalorder %v5320_v5, 0  ;;  %vm245_vm7 = vcmp.eq.s32.totalorder %v5320_v5, 2 }
  0x37   : > { %v1527_v12 = vfloor.f32 %v1523_v8  ;;  %vm1539_vm2 = vcmp.gt.f32.partialorder %v1515_v7, 0.5  ;;  %vm1547_vm4 = vcmp.eq.f32.partialorder %v1515_v7, 0.5  ;;  %v378_v26 = vmul.f32 128.0, %v217_v18  ;;  %vm5343_vm10 = vmor %vm244_vm6, %vm245_vm7 }
  0x38   : > { %v386_v16 = vrot.slane %v376_v6, %v5328_v11  ;;  %v1543_v19 = vsel %vm1539_vm2, %v1519_v9, %v1511_v4  ;;  %v256_v22 = vrot.slane %v4249_v15, %v5332_v13  ;;  %v1513_v27 = vfloor.f32 %v5325_v10  ;;  %v5384_v6 = vld [vmem:[%s5184_s22] sm:$0xff] }
  0x39   : > { %v1531_v17 = vmul.f32 2.0, %v1527_v12  ;;  %v272_v31 = vrot.slane %v4253_v20, %v5332_v13  ;;  %v293_v36 = vrot.slane %v5316_v1, %v5328_v11  ;;  %vm221_vm12 = vcmp.eq.f32.partialorder %v5325_v10, 1.0 }
  0x3a   : > { %v396_v21 = vmul.f32 %v386_v16, %v5316_v1  ;;  %vm233_vm13 = vcmp.eq.f32.partialorder %v5325_v10, -1.0  ;;  %v394_v42 = vrot.slane %v378_v26, %v5328_v11  ;;  %v1517_v43 = vsub.f32 %v5325_v10, %v1513_v27 }
  0x3b   : > { %vm1535_vm5 = vcmp.eq.f32.partialorder %v1531_v17, %v1511_v4  ;;  %v1525_v44 = vmul.f32 0.5, %v1513_v27  ;;  %v282_v45 = vsel %vm5343_vm10, %v256_v22, %v272_v31  ;;  %v4251_v50 = vsel %vm221_vm12, 1.0, %v5124_v14 }
  0x3c   : > { %v1551_v23 = vsel %vm1535_vm5, %v1511_v4, %v1519_v9  ;;  %v404_v24 = vrot.slane %v396_v21, 3  ;;  %v398_v48 = vmul.f32 %v394_v42, %v5325_v10  ;;  %v4255_v51 = vsel %vm233_vm13, 1.0, %v5124_v14 }
  0x3d   : > { %v1555_v25 = vsel %vm1547_vm4, %v1551_v23, %v1543_v19  ;;  %v1529_v52 = vfloor.f32 %v1525_v44  ;;  %v1521_v55 = vadd.f32 1.0, %v1513_v27  ;;  %vm285_vm3 = vcmp.lt.s32.totalorder %v5320_v5, 2 }
  0x3e   : > { %vm1559_vm8 = vcmp.ge.f32.partialorder %v1555_v25, 0.0  ;;  %vm1563_vm9 = vcmp.lt.f32.partialorder %v1555_v25, 16.0  ;;  %v1611_v28 = vmul.f32 16.0, %v1555_v25  ;;  %v1619_v29 = vrot.slane %v1555_v25, 1 }
  0x3f   : > { %v412_v32 = vadd.f32 %v404_v24, %v5316_v1  ;;  %v1571_v34 = vsel %vm1559_vm8, 1, %v5125_v33  ;;  %v1587_v35 = vsel %vm1563_vm9, 1, %v5125_v33  ;;  %vm5353_vm11 = vmand %vm1559_vm8, %vm1563_vm9  ;;  %v406_v57 = vrot.slane %v398_v48, 3 }
  0x40   : > { %v1575_v38 = vrot.slane %v1571_v34, 1  ;;  %v1591_v39 = vrot.slane %v1587_v35, 1  ;;  %v1627_v41 = vadd.f32 %v1619_v29, %v1611_v28  ;;  %vm1541_vm4 = vcmp.gt.f32.partialorder %v1517_v43, 0.5 }
  0x41   : > { %v416_v40 = vfloor.f32 %v412_v32  ;;  %v303_v58 = vmul.f32 %v293_v36, %v282_v45  ;;  %v264_v60 = vrot.slane %v4251_v50, %v5332_v13  ;;  %v1533_v61 = vmul.f32 2.0, %v1529_v52 }
  0x42   : > { %vm1579_vm14 = vcmp.ne.s32.totalorder %v1575_v38, 0  ;;  %vm1595_vm15 = vcmp.ne.s32.totalorder %v1591_v39, 0  ;;  %v280_v63 = vrot.slane %v4255_v51, %v5332_v13  ;;  %v414_v0 = vadd.f32 %v406_v57, %v5325_v10 }
  0x43   : > { %v420_v46 = vsub.f32 %v412_v32, %v416_v40  ;;  %v428_v47 = vmul.f32 0.5, %v416_v40  ;;  %vm1583_vm0 = vmand %vm5353_vm11, %vm1579_vm14  ;;  %v424_v49 = vadd.f32 1.0, %v416_v40  ;;  %vm1537_vm7 = vcmp.eq.f32.partialorder %v1533_v61, %v1513_v27 }
  0x44   : > { %vm1599_vm1 = vmand %vm1583_vm0, %vm1595_vm15  ;;  %v1545_v1 = vsel %vm1541_vm4, %v1521_v55, %v1513_v27  ;;  %vm1549_vm8 = vcmp.eq.f32.partialorder %v1517_v43, 0.5  ;;  %v5381_v3 = vsub.s32 1, %v5320_v5  ;;  %v1553_v4 = vsel %vm1537_vm7, %v1513_v27, %v1521_v55 }
  0x45   : > { %v432_v53 = vfloor.f32 %v428_v47  ;;  %vm444_vm2 = vcmp.gt.f32.partialorder %v420_v46, 0.5  ;;  %v5371_v54 = vsel %vm1599_vm1, 1.0, %v5124_v14  ;;  %vm452_vm5 = vcmp.eq.f32.partialorder %v420_v46, 0.5 }
  0x46   : > { %v5375_v56 = vmul.f32 %v5371_v54, %v1627_v41  ;;  %v448_v62 = vsel %vm444_vm2, %v424_v49, %v416_v40  ;;  %v5388_v7 = vsel %vm285_vm3, %v282_v45, %v303_v58  ;;  %v301_v9 = vrot.slane %v5325_v10, %v5328_v11 }
  0x47   : > { %v436_v59 = vmul.f32 2.0, %v432_v53  ;;  %v418_v12 = vfloor.f32 %v414_v0  ;;  %v5394_v15 = vsel %vm5343_vm10, %v264_v60, %v280_v63  ;;  %v1557_v16 = vsel %vm1549_vm8, %v1553_v4, %v1545_v1 }
  0x48   : > { %v214_v20 = vsub.f32 2.0, %v5384_v6  ;;  %vm218_vm13 = vcmp.eq.f32.partialorder %v5384_v6, 1.0  ;;  %vm230_vm14 = vcmp.eq.f32.partialorder %v5384_v6, -1.0  ;;  %vm1561_vm15 = vcmp.ge.f32.partialorder %v1557_v16, 0.0 }
  0x49   : > { %vm440_vm6 = vcmp.eq.f32.partialorder %v436_v59, %v416_v40  ;;  %v422_v19 = vsub.f32 %v414_v0, %v418_v12  ;;  %v426_v25 = vadd.f32 1.0, %v418_v12  ;;  %v430_v26 = vmul.f32 0.5, %v418_v12 }
  0x4a   : > { %v456_v2 = vsel %vm440_vm6, %v416_v40, %v424_v49  ;;  %vm1565_vm4 = vcmp.lt.f32.partialorder %v1557_v16, 16.0  ;;  %v1573_v28 = vsel %vm1561_vm15, 1, %v5125_v33  ;;  %v1613_v31 = vmul.f32 16.0, %v1557_v16 }
  0x4b   : > { %v460_v8 = vsel %vm452_vm5, %v456_v2, %v448_v62  ;;  %vm446_vm2 = vcmp.gt.f32.partialorder %v422_v19, 0.5  ;;  %v434_v27 = vfloor.f32 %v430_v26  ;;  %v1589_v29 = vsel %vm1565_vm4, 1, %v5125_v33  ;;  %vm1569_vm8 = vmand %vm1561_vm15, %vm1565_vm4 }
  0x4c   : > { %vm464_vm9 = vcmp.ge.f32.partialorder %v460_v8, 0.0  ;;  %vm468_vm11 = vcmp.lt.f32.partialorder %v460_v8, 16.0  ;;  %v516_v24 = vmul.f32 16.0, %v460_v8  ;;  %v524_v32 = vrot.slane %v460_v8, 1 }
  0x4d   : > { %v476_v17 = vsel %vm464_vm9, 1, %v5125_v33  ;;  %v492_v18 = vsel %vm468_vm11, 1, %v5125_v33  ;;  %vm5399_vm12 = vmand %vm464_vm9, %vm468_vm11  ;;  %v1577_v34 = vrot.slane %v1573_v28, 1  ;;  %v1593_v35 = vrot.slane %v1589_v29, 1 }
  0x4e   : > { %v480_v22 = vrot.slane %v476_v17, 1  ;;  %v496_v23 = vrot.slane %v492_v18, 1  ;;  %v1621_v36 = vrot.slane %v1557_v16, 1  ;;  %v438_v38 = vmul.f32 2.0, %v434_v27 }
  0x4f   : > { %vm454_vm7 = vcmp.eq.f32.partialorder %v422_v19, 0.5  ;;  %v375_v39 = vmul.f32 128.0, %v214_v20  ;;  %v450_v41 = vsel %vm446_vm2, %v426_v25, %v418_v12  ;;  %vm1581_vm9 = vcmp.ne.s32.totalorder %v1577_v34, 0  ;;  %v5457_v20 = vld [vmem:[%s5184_s22 + $0x10] sm:$0xff] }
  0x50   : > { %vm484_vm0 = vcmp.ne.s32.totalorder %v480_v22, 0  ;;  %vm500_vm1 = vcmp.ne.s32.totalorder %v496_v23, 0  ;;  %vm1597_vm11 = vcmp.ne.s32.totalorder %v1593_v35, 0  ;;  %v1629_v42 = vadd.f32 %v1621_v36, %v1613_v31 }
  0x51   : > { %vm488_vm5 = vmand %vm5399_vm12, %vm484_vm0  ;;  %vm442_vm12 = vcmp.eq.f32.partialorder %v438_v38, %v418_v12  ;;  %v4248_v43 = vsel %vm218_vm13, 1.0, %v5124_v14  ;;  %v382_v44 = vrot.slane %v375_v39, %v5328_v11  ;;  %v4252_v47 = vsel %vm230_vm14, 1.0, %v5124_v14 }
  0x52   : > { %vm504_vm6 = vmand %vm488_vm5, %vm500_vm1  ;;  %v458_v46 = vsel %vm442_vm12, %v418_v12, %v426_v25  ;;  %v1510_v48 = vfloor.f32 %v5384_v6  ;;  %v532_v49 = vadd.f32 %v524_v32, %v516_v24  ;;  %v305_v61 = vmul.f32 %v301_v9, %v5394_v15 }
  0x53   : > { %v4257_v37 = vsel %vm504_vm6, 1.0, %v5124_v14  ;;  %vm1585_vm0 = vmand %vm1569_vm8, %vm1581_vm9  ;;  %v462_v50 = vsel %vm454_vm7, %v458_v46, %v450_v41  ;;  %v395_v52 = vmul.f32 %v382_v44, %v5384_v6  ;;  %v252_v2 = vrot.slane %v4248_v43, %v5332_v13 }
  0x54   : > { %v950_v40 = vrot.slane %v4257_v37, %v5381_v3  ;;  %vm1601_vm15 = vmand %vm1585_vm0, %vm1597_vm11  ;;  %vm466_vm13 = vcmp.ge.f32.partialorder %v462_v50, 0.0  ;;  %vm470_vm1 = vcmp.lt.f32.partialorder %v462_v50, 16.0  ;;  %v518_v53 = vmul.f32 16.0, %v462_v50 }
  0x55   : > { %v5425_v51 = vsel %vm1601_vm15, 1.0, %v5124_v14  ;;  %v1514_v55 = vsub.f32 %v5384_v6, %v1510_v48  ;;  %v478_v57 = vsel %vm466_vm13, 1, %v5125_v33  ;;  %v494_v58 = vsel %vm470_vm1, 1, %v5125_v33  ;;  %vm5438_vm14 = vmand %vm466_vm13, %vm470_vm1 }
  0x56   : > { %v960_v45 = vmul.f32 %v950_v40, %v5388_v7  ;;  %v526_v59 = vrot.slane %v462_v50, 1  ;;  %v5432_v60 = vmul.f32 %v5425_v51, %v1629_v42  ;;  %v482_v63 = vrot.slane %v478_v57, 1 }
  0x57   : > { %v498_v0 = vrot.slane %v494_v58, 1  ;;  %v536_v1 = vmul.f32 %v4257_v37, %v532_v49  ;;  %v268_v4 = vrot.slane %v4252_v47, %v5332_v13  ;;  %v403_v8 = vrot.slane %v395_v52, 3 }
  0x58   : > { %963 = vmatprep.subr.mxu0 %v960_v45  ;;  %vm486_vm2 = vcmp.ne.s32.totalorder %v482_v63, 0  ;;  %v534_v12 = vadd.f32 %v526_v59, %v518_v53  ;;  %v1518_v16 = vadd.f32 1.0, %v1510_v48  ;;  %v1522_v9 = vmul.f32 0.5, %v1510_v48 }
  0x59   : > { %vm502_vm4 = vcmp.ne.s32.totalorder %v498_v0, 0  ;;  %vm490_vm5 = vmand %vm5438_vm14, %vm486_vm2  ;;  %v411_v10 = vadd.f32 %v403_v8, %v5384_v6  ;;  %vm1538_vm6 = vcmp.gt.f32.partialorder %v1514_v55, 0.5  ;;  %v2045_v17 = vrot.slane %v5371_v54, %v5381_v3 }
  0x5a   : > { %v5452_v18 = vsel %vm285_vm3, %v5394_v15, %v305_v61  ;;  %vm506_vm7 = vmand %vm490_vm5, %vm502_vm4  ;;  %v289_v19 = vrot.slane %v5384_v6, %v5328_v11  ;;  %v5462_v22 = vsel %vm5343_vm10, %v252_v2, %v268_v4  ;;  %v1526_v24 = vfloor.f32 %v1522_v9 }
  0x5b   : > { %v4259_v21 = vsel %vm506_vm7, 1.0, %v5124_v14  ;;  %v415_v23 = vfloor.f32 %v411_v10  ;;  %v4845_v54 = vtrunc.f32 %v536_v1  ;;  %v1542_v15 = vsel %vm1538_vm6, %v1518_v16, %v1510_v48 }
  0x5c   : > { %v538_v25 = vmul.f32 %v4259_v21, %v534_v12  ;;  %v958_v26 = vrot.slane %v4259_v21, %v5381_v3  ;;  %v1530_v29 = vmul.f32 2.0, %v1526_v24  ;;  %v216_v6 = vsub.f32 2.0, %v5457_v20 }
  0x5d   : > { %v419_v27 = vsub.f32 %v411_v10, %v415_v23  ;;  %v427_v28 = vmul.f32 0.5, %v415_v23  ;;  %v423_v34 = vadd.f32 1.0, %v415_v23  ;;  %vm1546_vm8 = vcmp.eq.f32.partialorder %v1514_v55, 0.5 }
  0x5e   : > { %v4849_v31 = vtrunc.f32 %v538_v25  ;;  %v962_v32 = vmul.f32 %v958_v26, %v5452_v18  ;;  %v5468_v35 = vmul.f32 %v2045_v17, %v5388_v7  ;;  %vm1534_vm11 = vcmp.eq.f32.partialorder %v1530_v29, %v1510_v48 }
  0x5f   : > { %v431_v36 = vfloor.f32 %v427_v28  ;;  %vm443_vm9 = vcmp.gt.f32.partialorder %v419_v27, 0.5  ;;  %v4846_v37 = vcvt.f32.s32 %v4845_v54  ;;  %v302_v38 = vmul.f32 %v289_v19, %v5462_v22 }
  0x60   : > { %1188 = vmatprep.subr.mxu1 %v962_v32  ;;  %vm451_vm12 = vcmp.eq.f32.partialorder %v419_v27, 0.5  ;;  %v1550_v39 = vsel %vm1534_vm11, %v1510_v48, %v1518_v16  ;;  %v4850_v40 = vcvt.f32.s32 %v4849_v31  ;;  %v377_v43 = vmul.f32 128.0, %v216_v6 }
  0x61   : > { %v435_v41 = vmul.f32 2.0, %v431_v36  ;;  %v1554_v42 = vsel %vm1546_vm8, %v1550_v39, %v1542_v15  ;;  %v447_v44 = vsel %vm443_vm9, %v423_v34, %v415_v23  ;;  %v5474_v49 = vrot.slane %v4846_v37, %v5381_v3 }
  0x62   : > { %vm1558_vm0 = vcmp.ge.f32.partialorder %v1554_v42, 0.0  ;;  %vm1562_vm15 = vcmp.lt.f32.partialorder %v1554_v42, 16.0  ;;  %v1610_v45 = vmul.f32 16.0, %v1554_v42  ;;  %v1618_v47 = vrot.slane %v1554_v42, 1 }
  0x63   : > { %vm439_vm13 = vcmp.eq.f32.partialorder %v435_v41, %v415_v23  ;;  %v1570_v7 = vsel %vm1558_vm0, 1, %v5125_v33  ;;  %v1586_v46 = vsel %vm1562_vm15, 1, %v5125_v33  ;;  %v5477_v53 = vrot.slane %v4850_v40, %v5381_v3  ;;  %vm5480_vm1 = vmand %vm1558_vm0, %vm1562_vm15 }
  0x64   : > { %v455_v50 = vsel %vm439_vm13, %v415_v23, %v423_v34  ;;  %v1574_v52 = vrot.slane %v1570_v7, 1  ;;  %v1590_v48 = vrot.slane %v1586_v46, 1  ;;  %v1626_v58 = vadd.f32 %v1618_v47, %v1610_v45 }
  0x65   : > { %v459_v55 = vsel %vm451_vm12, %v455_v50, %v447_v44  ;;  %v390_v59 = vrot.slane %v377_v43, %v5328_v11  ;;  %vm220_vm8 = vcmp.eq.f32.partialorder %v5457_v20, 1.0  ;;  %vm232_vm9 = vcmp.eq.f32.partialorder %v5457_v20, -1.0 }
  0x66   : > { %vm463_vm14 = vcmp.ge.f32.partialorder %v459_v55, 0.0  ;;  %vm467_vm2 = vcmp.lt.f32.partialorder %v459_v55, 16.0  ;;  %v515_v61 = vmul.f32 16.0, %v459_v55  ;;  %v523_v62 = vrot.slane %v459_v55, 1 }
  0x67   : > { %vm5485_vm4 = vmand %vm463_vm14, %vm467_vm2  ;;  %v475_v0 = vsel %vm463_vm14, 1, %v5125_v33  ;;  %v491_v1 = vsel %vm467_vm2, 1, %v5125_v33  ;;  %vm1578_vm5 = vcmp.ne.s32.totalorder %v1574_v52, 0  ;;  %vm1594_vm6 = vcmp.ne.s32.totalorder %v1590_v48, 0 }
  0x68   : > { %v479_v2 = vrot.slane %v475_v0, 1  ;;  %v495_v4 = vrot.slane %v491_v1, 1  ;;  %vm1582_vm7 = vmand %vm5480_vm1, %vm1578_vm5  ;;  %v397_v8 = vmul.f32 %v390_v59, %v5457_v20  ;;  %v1512_v12 = vfloor.f32 %v5457_v20 }
  0x69   : > { %vm1598_vm11 = vmand %vm1582_vm7, %vm1594_vm6  ;;  %vm560_vm12 = vcmp.eq.s32.totalorder %v5320_v5, %v5474_v49  ;;  %vm562_vm0 = vcmp.eq.s32.totalorder %v5320_v5, %v5477_v53  ;;  %v531_v16 = vadd.f32 %v523_v62, %v515_v61  ;;  %v5126_v9 = vmov 1.0  }
  0x6a   : > { %vm483_vm15 = vcmp.ne.s32.totalorder %v479_v2, 0  ;;  %vm499_vm13 = vcmp.ne.s32.totalorder %v495_v4, 0  ;;  %v4516_v10 = vsel %vm1598_vm11, 1.0, %v5124_v14  ;;  %4388 = vmatprep.mubr.msk.f32.mxu0 %vm560_vm12, %v5126_v9  ;;  %4452 = vmatprep.mubr.msk.f32.mxu1 %vm562_vm0, %v5126_v9  ;;  %v308_v17 = vsel %vm285_vm3, %v5462_v22, %v302_v38 }
  0x6b   : > { %vm487_vm1 = vmand %vm5485_vm4, %vm483_vm15  ;;  %v5509_v19 = vmul.f32 %v4516_v10, %v1626_v58  ;;  %v405_v21 = vrot.slane %v397_v8, 3  ;;  %v1516_v23 = vsub.f32 %v5457_v20, %v1512_v12  ;;  %v4250_v24 = vsel %vm220_vm8, 1.0, %v5124_v14 }
  0x6c   : > { %vm503_vm14 = vmand %vm487_vm1, %vm499_vm13  ;;  %v4254_v54 = vsel %vm232_vm9, 1.0, %v5124_v14  ;;  %v1520_v25 = vadd.f32 1.0, %v1512_v12  ;;  %v1524_v26 = vmul.f32 0.5, %v1512_v12  ;;  %v2041_v15 = vrot.slane %v4516_v10, %v5381_v3 }
  0x6d   : > { %v4256_v22 = vsel %vm503_vm14, 1.0, %v5124_v14  ;;  %v413_v27 = vadd.f32 %v405_v21, %v5457_v20  ;;  %v5522_v28 = vadd.s32 8, %v5320_v5  ;;  %vm1540_vm2 = vcmp.gt.f32.partialorder %v1516_v23, 0.5 }
  0x6e   : > { %v535_v29 = vmul.f32 %v4256_v22, %v531_v16  ;;  %v946_v6 = vrot.slane %v4256_v22, %v5381_v3  ;;  %v1528_v31 = vfloor.f32 %v1524_v26  ;;  %v260_v32 = vrot.slane %v4250_v24, %v5332_v13 }
  0x6f   : > { %v276_v34 = vrot.slane %v4254_v54, %v5332_v13  ;;  %v297_v36 = vrot.slane %v5457_v20, %v5328_v11  ;;  %v417_v37 = vfloor.f32 %v413_v27  ;;  %v1544_v41 = vsel %vm1540_vm2, %v1520_v25, %v1512_v12 }
  0x70   : > { %v4843_v38 = vtrunc.f32 %v535_v29  ;;  %v959_v39 = vmul.f32 %v946_v6, %v308_v17  ;;  %v1532_v40 = vmul.f32 2.0, %v1528_v31  ;;  %vm1548_vm4 = vcmp.eq.f32.partialorder %v1516_v23, 0.5 }
  0x71   : > { %v421_v42 = vsub.f32 %v413_v27, %v417_v37  ;;  %v425_v43 = vadd.f32 1.0, %v417_v37  ;;  %v429_v44 = vmul.f32 0.5, %v417_v37  ;;  %v2054_v7 = vmul.f32 %v2041_v15, %v308_v17 }
  0x72   : > { %v4844_v45 = vcvt.f32.s32 %v4843_v38  ;;  %964 = vmatpush1.xpose.msra.mxu0 %v959_v39  ;;  %vm1536_vm5 = vcmp.eq.f32.partialorder %v1532_v40, %v1512_v12  ;;  %vm564_vm6 = vcmp.eq.s32.totalorder %v5522_v28, %v5474_v49  ;;  %v5533_v11 = vadd.s32 16, %v5320_v5 }
  0x73   : > { %v433_v13 = vfloor.f32 %v429_v44  ;;  %vm445_vm7 = vcmp.gt.f32.partialorder %v421_v42, 0.5  ;;  %v1552_v46 = vsel %vm1536_vm5, %v1512_v12, %v1520_v25  ;;  %2058 = vmatprep.subr.mxu0 %v5468_v35  ;;  %vm453_vm8 = vcmp.eq.f32.partialorder %v421_v42, 0.5 }
  0x74   : > { %v5536_v20 = vrot.slane %v4844_v45, %v5381_v3  ;;  %v449_v47 = vsel %vm445_vm7, %v425_v43, %v417_v37  ;;  %v1556_v50 = vsel %vm1548_vm4, %v1552_v46, %v1544_v41  ;;  %v283_v35 = vsel %vm5343_vm10, %v260_v32, %v276_v34 }
  0x75   : > { %v437_v52 = vmul.f32 2.0, %v433_v13  ;;  %vm1560_vm9 = vcmp.ge.f32.partialorder %v1556_v50, 0.0  ;;  %vm1564_vm11 = vcmp.lt.f32.partialorder %v1556_v50, 16.0  ;;  %v1612_v48 = vmul.f32 16.0, %v1556_v50 }
  0x76   : > { %v1572_v55 = vsel %vm1560_vm9, 1, %v5125_v33  ;;  %v1588_v57 = vsel %vm1564_vm11, 1, %v5125_v33  ;;  %v1620_v58 = vrot.slane %v1556_v50, 1  ;;  %vm559_vm12 = vcmp.eq.s32.totalorder %v5320_v5, %v5536_v20  ;;  %vm5544_vm15 = vmand %vm1560_vm9, %vm1564_vm11 }
  0x77   : > { %vm441_vm0 = vcmp.eq.f32.partialorder %v437_v52, %v417_v37  ;;  %v1576_v61 = vrot.slane %v1572_v55, 1  ;;  %v1592_v62 = vrot.slane %v1588_v57, 1  ;;  %4389 = vmatmul.mubr.msk.f32.vlgmr.msra.gmra.mrb[0].mxu0 %vm559_vm12, %v5126_v9  ;;  %vm563_vm13 = vcmp.eq.s32.totalorder %v5522_v28, %v5536_v20 }
  0x78   : > { %v457_v63 = vsel %vm441_vm0, %v417_v37, %v425_v43  ;;  %2059 = vmatpush1.xpose.msra.mxu0 %v2054_v7  ;;  %4390 = vmatprep.mubr.msk.f32.mxu0 %vm564_vm6, %v5126_v9  ;;  %vm568_vm10 = vcmp.eq.s32.totalorder %v5533_v11, %v5474_v49  ;;  %v5558_v30 = vadd.s32 24, %v5320_v5  ;;  %v1628_v2 = vadd.f32 %v1620_v58, %v1612_v48 }
  0x79   : > { %v461_v0 = vsel %vm453_vm8, %v457_v63, %v449_v47  ;;  %vm5561_vm1 = vcmp.ne.s32.totalorder %v1576_v61, 0  ;;  %vm1596_vm14 = vcmp.ne.s32.totalorder %v1592_v62, 0  ;;  %vm567_vm8 = vcmp.eq.s32.totalorder %v5533_v11, %v5536_v20 }
  0x7a   : > { %vm465_vm2 = vcmp.ge.f32.partialorder %v461_v0, 0.0  ;;  %vm469_vm4 = vcmp.lt.f32.partialorder %v461_v0, 16.0  ;;  %v517_v4 = vmul.f32 16.0, %v461_v0  ;;  %v525_v8 = vrot.slane %v461_v0, 1  ;;  %vm1584_vm5 = vmand %vm5544_vm15, %vm5561_vm1 }
  0x7b   : > { %vm5569_vm6 = vmand %vm465_vm2, %vm469_vm4  ;;  %v477_v16 = vsel %vm465_vm2, 1, %v5125_v33  ;;  %v493_v10 = vsel %vm469_vm4, 1, %v5125_v33  ;;  %4391 = vmatmul.mubr.msk.f32.gmra.mrb[2].mxu0 %vm563_vm13, %v5126_v9  ;;  %v304_v23 = vmul.f32 %v297_v36, %v283_v35  ;;  %vm572_vm9 = vcmp.eq.s32.totalorder %v5558_v30, %v5474_v49 }
  0x7c   : > { %v481_v17 = vrot.slane %v477_v16, 1  ;;  %v497_v21 = vrot.slane %v493_v10, 1  ;;  %vm1600_vm7 = vmand %vm1584_vm5, %vm1596_vm14  ;;  %4392 = vmatprep.mubr.msk.f32.mxu0 %vm568_vm10, %v5126_v9  ;;  %v5586_v33 = vadd.s32 32, %v5320_v5  ;;  %v533_v54 = vadd.f32 %v525_v8, %v517_v4 }
  0x7d   : > { %v4518_v24 = vsel %vm1600_vm7, 1.0, %v5124_v14  ;;  %v2053_v26 = vrot.slane %v5425_v51, %v5381_v3  ;;  %vm571_vm13 = vcmp.eq.s32.totalorder %v5558_v30, %v5536_v20  ;;  %v310_v22 = vsel %vm285_vm3, %v283_v35, %v304_v23 }
  0x7e   : > { %vm485_vm11 = vcmp.ne.s32.totalorder %v481_v17, 0  ;;  %vm501_vm12 = vcmp.ne.s32.totalorder %v497_v21, 0  ;;  %v5588_v25 = vmul.f32 %v4518_v24, %v1628_v2  ;;  %vm576_vm10 = vcmp.eq.s32.totalorder %v5586_v33, %v5474_v49 }
  0x7f   : > { %vm489_vm0 = vmand %vm5569_vm6, %vm485_vm11  ;;  %4393 = vmatmul.mubr.msk.f32.gmra.mrb[4].mxu0 %vm567_vm8, %v5126_v9  ;;  %v5604_v51 = vadd.s32 40, %v5320_v5  ;;  %v2057_v6 = vmul.f32 %v2053_v26, %v5452_v18  ;;  %v2049_v34 = vrot.slane %v4518_v24, %v5381_v3  ;;  %vm575_vm3 = vcmp.eq.s32.totalorder %v5586_v33, %v5536_v20 }
  0x80   : > { %vm505_vm15 = vmand %vm489_vm0, %vm501_vm12  ;;  %4394 = vmatprep.mubr.msk.f32.mxu0 %vm572_vm9, %v5126_v9  ;;  %v5616_v36 = vadd.s32 48, %v5320_v5  ;;  %vm566_vm2 = vcmp.eq.s32.totalorder %v5522_v28, %v5477_v53  ;;  %v5628_v38 = vadd.s32 56, %v5320_v5  ;;  %vm570_vm8 = vcmp.eq.s32.totalorder %v5533_v11, %v5477_v53 }
  0x81   : > { %v4258_v15 = vsel %vm505_vm15, 1.0, %v5124_v14  ;;  %vm580_vm1 = vcmp.eq.s32.totalorder %v5604_v51, %v5474_v49  ;;  %v2056_v37 = vmul.f32 %v2049_v34, %v310_v22  ;;  %vm579_vm14 = vcmp.eq.s32.totalorder %v5604_v51, %v5536_v20 }
  0x82   : > { %v537_v27 = vmul.f32 %v4258_v15, %v533_v54  ;;  %v954_v29 = vrot.slane %v4258_v15, %v5381_v3  ;;  %vm584_vm5 = vcmp.eq.s32.totalorder %v5616_v36, %v5474_v49  ;;  %vm583_vm7 = vcmp.eq.s32.totalorder %v5616_v36, %v5536_v20  ;;  %v343_v54 = vld [vmem:[#allocation2] sm:$0xff] }
  0x83   : > { %4395 = vmatmul.mubr.msk.f32.gmra.mrb[6].mxu0 %vm571_vm13, %v5126_v9  ;;  %vm588_vm9 = vcmp.eq.s32.totalorder %v5628_v38, %v5474_v49  ;;  %v5647_v39 = vadd.s32 64, %v5320_v5  ;;  %vm587_vm12 = vcmp.eq.s32.totalorder %v5628_v38, %v5536_v20  ;;  %vm574_vm0 = vcmp.eq.s32.totalorder %v5558_v30, %v5477_v53 }
  0x84   : > { %v4847_v31 = vtrunc.f32 %v537_v27  ;;  %v961_v32 = vmul.f32 %v954_v29, %v310_v22  ;;  %4396 = vmatprep.mubr.msk.f32.mxu0 %vm576_vm10, %v5126_v9  ;;  %v5662_v40 = vadd.s32 72, %v5320_v5  ;;  %v5677_v41 = vadd.s32 80, %v5320_v5  ;;  %v344_v29 = vld [vmem:[#allocation2 + $0x8] sm:$0xff] }
  0x85   : > { %vm592_vm15 = vcmp.eq.s32.totalorder %v5647_v39, %v5474_v49  ;;  %vm591_vm10 = vcmp.eq.s32.totalorder %v5647_v39, %v5536_v20  ;;  %v5692_v42 = vadd.s32 88, %v5320_v5  ;;  %v5707_v43 = vadd.s32 96, %v5320_v5 }
  0x86   : > { %v4848_v14 = vcvt.f32.s32 %v4847_v31  ;;  %1189 = vmatpush1.xpose.msra.mxu1 %v961_v32  ;;  %v5722_v44 = vadd.s32 104, %v5320_v5  ;;  %v5737_v45 = vadd.s32 112, %v5320_v5  ;;  %v5752_v7 = vadd.s32 120, %v5320_v5 }
  0x87   : > { %2283 = vmatprep.subr.mxu1 %v2057_v6  ;;  %4397 = vmatmul.mubr.msk.f32.gmra.mrb[8].mxu0 %vm575_vm3, %v5126_v9  ;;  %vm578_vm3 = vcmp.eq.s32.totalorder %v5586_v33, %v5477_v53  ;;  %v5767_v13 = vadd.s32 128, %v5320_v5  ;;  %v5782_v46 = vadd.s32 136, %v5320_v5  ;;  %v5797_v47 = vadd.s32 144, %v5320_v5 }
  0x88   : > { %v5620_v18 = vrot.slane %v4848_v14, %v5381_v3  ;;  %4398 = vmatprep.mubr.msk.f32.mxu0 %vm580_vm1, %v5126_v9  ;;  %vm596_vm1 = vcmp.eq.s32.totalorder %v5662_v40, %v5474_v49  ;;  %v5812_v50 = vadd.s32 152, %v5320_v5  ;;  %v5827_v52 = vadd.s32 160, %v5320_v5 }
  0x89   : > { %v5842_v48 = vadd.s32 168, %v5320_v5  ;;  %v5857_v55 = vadd.s32 176, %v5320_v5  ;;  %v5872_v57 = vadd.s32 184, %v5320_v5  ;;  %v5887_v58 = vadd.s32 192, %v5320_v5 }
  0x8a   : > { %vm561_vm4 = vcmp.eq.s32.totalorder %v5320_v5, %v5620_v18  ;;  %vm565_vm6 = vcmp.eq.s32.totalorder %v5522_v28, %v5620_v18  ;;  %vm569_vm11 = vcmp.eq.s32.totalorder %v5533_v11, %v5620_v18  ;;  %vm573_vm13 = vcmp.eq.s32.totalorder %v5558_v30, %v5620_v18 }
  0x8b   : > { %4453 = vmatmul.mubr.msk.f32.vlgmr.msra.gmra.mrb[0].mxu1 %vm561_vm4, %v5126_v9  ;;  %4399 = vmatmul.mubr.msk.f32.gmra.mrb[10].mxu0 %vm579_vm14, %v5126_v9  ;;  %vm577_vm14 = vcmp.eq.s32.totalorder %v5586_v33, %v5620_v18  ;;  %vm582_vm4 = vcmp.eq.s32.totalorder %v5604_v51, %v5477_v53  ;;  %v5902_v35 = vadd.s32 200, %v5320_v5  ;;  %v5917_v59 = vadd.s32 208, %v5320_v5 }
  0x8c   : > { %2284 = vmatpush1.xpose.msra.mxu1 %v2056_v37  ;;  %4454 = vmatprep.mubr.msk.f32.mxu1 %vm566_vm2, %v5126_v9  ;;  %vm595_vm2 = vcmp.eq.s32.totalorder %v5662_v40, %v5536_v20  ;;  %v5932_v61 = vadd.s32 216, %v5320_v5  ;;  %v5947_v62 = vadd.s32 224, %v5320_v5  ;;  %v5962_v63 = vadd.s32 232, %v5320_v5 }
  0x8d   : > { %4400 = vmatprep.mubr.msk.f32.mxu0 %vm584_vm5, %v5126_v9  ;;  %vm600_vm5 = vcmp.eq.s32.totalorder %v5677_v41, %v5474_v49  ;;  %v4853_v0 = vtrunc.f32 %v5375_v56  ;;  %v5978_v1 = vadd.s32 240, %v5320_v5  ;;  %v4851_v2 = vtrunc.f32 %v5509_v19 }
  0x8e   : > { %v5994_v4 = vadd.s32 248, %v5320_v5 }
  0x8f   : > { %4455 = vmatmul.mubr.msk.f32.gmra.mrb[2].mxu1 %vm565_vm6, %v5126_v9  ;;  %4401 = vmatmul.mubr.msk.f32.gmra.mrb[12].mxu0 %vm583_vm7, %v5126_v9  ;;  %vm581_vm6 = vcmp.eq.s32.totalorder %v5604_v51, %v5620_v18  ;;  %vm599_vm7 = vcmp.eq.s32.totalorder %v5677_v41, %v5536_v20  ;;  %v4854_v56 = vcvt.f32.s32 %v4853_v0  ;;  %v4852_v19 = vcvt.f32.s32 %v4851_v2  ;;  %v348_v0 = vld [vmem:[#allocation2 + $0x28] sm:$0xff] }
  0x90   : > { %4456 = vmatprep.mubr.msk.f32.mxu1 %vm570_vm8, %v5126_v9  ;;  %4402 = vmatprep.mubr.msk.f32.mxu0 %vm588_vm9, %v5126_v9  ;;  %vm586_vm8 = vcmp.eq.s32.totalorder %v5616_v36, %v5477_v53  ;;  %vm604_vm9 = vcmp.eq.s32.totalorder %v5692_v42, %v5474_v49 }
  0x91   : > { %v6005_v8 = vrot.slane %v4854_v56, %v5381_v3  ;;  %v6014_v12 = vrot.slane %v4852_v19, %v5381_v3 }
  0x93   : > { %4457 = vmatmul.mubr.msk.f32.gmra.mrb[4].mxu1 %vm569_vm11, %v5126_v9  ;;  %4403 = vmatmul.mubr.msk.f32.gmra.mrb[14].mxu0 %vm587_vm12, %v5126_v9  ;;  %vm585_vm11 = vcmp.eq.s32.totalorder %v5616_v36, %v5620_v18  ;;  %vm603_vm12 = vcmp.eq.s32.totalorder %v5692_v42, %v5536_v20 }
  0x94   : > { %4458 = vmatprep.mubr.msk.f32.mxu1 %vm574_vm0, %v5126_v9  ;;  %4404 = vmatprep.mubr.msk.f32.mxu0 %vm592_vm15, %v5126_v9  ;;  %vm590_vm0 = vcmp.eq.s32.totalorder %v5628_v38, %v5477_v53  ;;  %vm608_vm15 = vcmp.eq.s32.totalorder %v5707_v43, %v5474_v49 }
  0x97   : > { %4459 = vmatmul.mubr.msk.f32.gmra.mrb[6].mxu1 %vm573_vm13, %v5126_v9  ;;  %4405 = vmatmul.mubr.msk.f32.gmra.mrb[16].mxu0 %vm591_vm10, %v5126_v9  ;;  %vm589_vm13 = vcmp.eq.s32.totalorder %v5628_v38, %v5620_v18  ;;  %vm607_vm10 = vcmp.eq.s32.totalorder %v5707_v43, %v5536_v20 }
  0x98   : > { %4460 = vmatprep.mubr.msk.f32.mxu1 %vm578_vm3, %v5126_v9  ;;  %4406 = vmatprep.mubr.msk.f32.mxu0 %vm596_vm1, %v5126_v9  ;;  %vm594_vm3 = vcmp.eq.s32.totalorder %v5647_v39, %v5477_v53  ;;  %vm612_vm1 = vcmp.eq.s32.totalorder %v5722_v44, %v5474_v49 }
  0x9b   : > { %4461 = vmatmul.mubr.msk.f32.gmra.mrb[8].mxu1 %vm577_vm14, %v5126_v9  ;;  %4407 = vmatmul.mubr.msk.f32.gmra.mrb[18].mxu0 %vm595_vm2, %v5126_v9  ;;  %vm593_vm14 = vcmp.eq.s32.totalorder %v5647_v39, %v5620_v18  ;;  %vm611_vm2 = vcmp.eq.s32.totalorder %v5722_v44, %v5536_v20 }
  0x9c   : > { %4462 = vmatprep.mubr.msk.f32.mxu1 %vm582_vm4, %v5126_v9  ;;  %4408 = vmatprep.mubr.msk.f32.mxu0 %vm600_vm5, %v5126_v9  ;;  %vm598_vm4 = vcmp.eq.s32.totalorder %v5662_v40, %v5477_v53  ;;  %vm616_vm5 = vcmp.eq.s32.totalorder %v5737_v45, %v5474_v49 }
  0x9f   : > { %4463 = vmatmul.mubr.msk.f32.gmra.mrb[10].mxu1 %vm581_vm6, %v5126_v9  ;;  %4409 = vmatmul.mubr.msk.f32.gmra.mrb[20].mxu0 %vm599_vm7, %v5126_v9  ;;  %vm597_vm6 = vcmp.eq.s32.totalorder %v5662_v40, %v5620_v18  ;;  %vm615_vm7 = vcmp.eq.s32.totalorder %v5737_v45, %v5536_v20 }
  0xa0   : > { %4464 = vmatprep.mubr.msk.f32.mxu1 %vm586_vm8, %v5126_v9  ;;  %4410 = vmatprep.mubr.msk.f32.mxu0 %vm604_vm9, %v5126_v9  ;;  %vm602_vm8 = vcmp.eq.s32.totalorder %v5677_v41, %v5477_v53  ;;  %vm620_vm9 = vcmp.eq.s32.totalorder %v5752_v7, %v5474_v49 }
  0xa3   : > { %4465 = vmatmul.mubr.msk.f32.gmra.mrb[12].mxu1 %vm585_vm11, %v5126_v9  ;;  %4411 = vmatmul.mubr.msk.f32.gmra.mrb[22].mxu0 %vm603_vm12, %v5126_v9  ;;  %vm601_vm11 = vcmp.eq.s32.totalorder %v5677_v41, %v5620_v18  ;;  %vm619_vm12 = vcmp.eq.s32.totalorder %v5752_v7, %v5536_v20 }
  0xa4   : > { %4466 = vmatprep.mubr.msk.f32.mxu1 %vm590_vm0, %v5126_v9  ;;  %4412 = vmatprep.mubr.msk.f32.mxu0 %vm608_vm15, %v5126_v9  ;;  %vm606_vm0 = vcmp.eq.s32.totalorder %v5692_v42, %v5477_v53  ;;  %vm624_vm15 = vcmp.eq.s32.totalorder %v5767_v13, %v5474_v49 }
  0xa7   : > { %4467 = vmatmul.mubr.msk.f32.gmra.mrb[14].mxu1 %vm589_vm13, %v5126_v9  ;;  %4413 = vmatmul.mubr.msk.f32.gmra.mrb[24].mxu0 %vm607_vm10, %v5126_v9  ;;  %vm605_vm13 = vcmp.eq.s32.totalorder %v5692_v42, %v5620_v18  ;;  %vm623_vm10 = vcmp.eq.s32.totalorder %v5767_v13, %v5536_v20 }
  0xa8   : > { %4468 = vmatprep.mubr.msk.f32.mxu1 %vm594_vm3, %v5126_v9  ;;  %4414 = vmatprep.mubr.msk.f32.mxu0 %vm612_vm1, %v5126_v9  ;;  %vm610_vm3 = vcmp.eq.s32.totalorder %v5707_v43, %v5477_v53  ;;  %vm628_vm1 = vcmp.eq.s32.totalorder %v5782_v46, %v5474_v49 }
  0xab   : > { %4469 = vmatmul.mubr.msk.f32.gmra.mrb[16].mxu1 %vm593_vm14, %v5126_v9  ;;  %4415 = vmatmul.mubr.msk.f32.gmra.mrb[26].mxu0 %vm611_vm2, %v5126_v9  ;;  %vm609_vm14 = vcmp.eq.s32.totalorder %v5707_v43, %v5620_v18  ;;  %vm627_vm2 = vcmp.eq.s32.totalorder %v5782_v46, %v5536_v20 }
  0xac   : > { %4470 = vmatprep.mubr.msk.f32.mxu1 %vm598_vm4, %v5126_v9  ;;  %4416 = vmatprep.mubr.msk.f32.mxu0 %vm616_vm5, %v5126_v9  ;;  %vm614_vm4 = vcmp.eq.s32.totalorder %v5722_v44, %v5477_v53  ;;  %vm632_vm5 = vcmp.eq.s32.totalorder %v5797_v47, %v5474_v49 }
  0xaf   : > { %4471 = vmatmul.mubr.msk.f32.gmra.mrb[18].mxu1 %vm597_vm6, %v5126_v9  ;;  %4417 = vmatmul.mubr.msk.f32.gmra.mrb[28].mxu0 %vm615_vm7, %v5126_v9  ;;  %vm613_vm6 = vcmp.eq.s32.totalorder %v5722_v44, %v5620_v18  ;;  %vm631_vm7 = vcmp.eq.s32.totalorder %v5797_v47, %v5536_v20 }
  0xb0   : > { %4472 = vmatprep.mubr.msk.f32.mxu1 %vm602_vm8, %v5126_v9  ;;  %4418 = vmatprep.mubr.msk.f32.mxu0 %vm620_vm9, %v5126_v9  ;;  %vm618_vm8 = vcmp.eq.s32.totalorder %v5737_v45, %v5477_v53  ;;  %vm636_vm9 = vcmp.eq.s32.totalorder %v5812_v50, %v5474_v49 }
  0xb3   : > { %4473 = vmatmul.mubr.msk.f32.gmra.mrb[20].mxu1 %vm601_vm11, %v5126_v9  ;;  %4419 = vmatmul.mubr.msk.f32.gmra.mrb[30].mxu0 %vm619_vm12, %v5126_v9  ;;  %vm617_vm11 = vcmp.eq.s32.totalorder %v5737_v45, %v5620_v18  ;;  %vm635_vm12 = vcmp.eq.s32.totalorder %v5812_v50, %v5536_v20 }
  0xb4   : > { %4474 = vmatprep.mubr.msk.f32.mxu1 %vm606_vm0, %v5126_v9  ;;  %4420 = vmatprep.mubr.msk.f32.mxu0 %vm624_vm15, %v5126_v9  ;;  %vm622_vm0 = vcmp.eq.s32.totalorder %v5752_v7, %v5477_v53  ;;  %vm640_vm15 = vcmp.eq.s32.totalorder %v5827_v52, %v5474_v49 }
  0xb7   : > { %4475 = vmatmul.mubr.msk.f32.gmra.mrb[22].mxu1 %vm605_vm13, %v5126_v9  ;;  %4421 = vmatmul.mubr.msk.f32.gmra.mrb[32].mxu0 %vm623_vm10, %v5126_v9  ;;  %vm621_vm13 = vcmp.eq.s32.totalorder %v5752_v7, %v5620_v18  ;;  %vm639_vm10 = vcmp.eq.s32.totalorder %v5827_v52, %v5536_v20 }
  0xb8   : > { %4476 = vmatprep.mubr.msk.f32.mxu1 %vm610_vm3, %v5126_v9  ;;  %4422 = vmatprep.mubr.msk.f32.mxu0 %vm628_vm1, %v5126_v9  ;;  %vm626_vm3 = vcmp.eq.s32.totalorder %v5767_v13, %v5477_v53  ;;  %vm644_vm1 = vcmp.eq.s32.totalorder %v5842_v48, %v5474_v49 }
  0xbb   : > { %4477 = vmatmul.mubr.msk.f32.gmra.mrb[24].mxu1 %vm609_vm14, %v5126_v9  ;;  %4423 = vmatmul.mubr.msk.f32.gmra.mrb[34].mxu0 %vm627_vm2, %v5126_v9  ;;  %vm625_vm14 = vcmp.eq.s32.totalorder %v5767_v13, %v5620_v18  ;;  %vm643_vm2 = vcmp.eq.s32.totalorder %v5842_v48, %v5536_v20 }
  0xbc   : > { %4478 = vmatprep.mubr.msk.f32.mxu1 %vm614_vm4, %v5126_v9  ;;  %4424 = vmatprep.mubr.msk.f32.mxu0 %vm632_vm5, %v5126_v9  ;;  %vm630_vm4 = vcmp.eq.s32.totalorder %v5782_v46, %v5477_v53  ;;  %vm648_vm5 = vcmp.eq.s32.totalorder %v5857_v55, %v5474_v49 }
  0xbf   : > { %4479 = vmatmul.mubr.msk.f32.gmra.mrb[26].mxu1 %vm613_vm6, %v5126_v9  ;;  %4425 = vmatmul.mubr.msk.f32.gmra.mrb[36].mxu0 %vm631_vm7, %v5126_v9  ;;  %vm629_vm6 = vcmp.eq.s32.totalorder %v5782_v46, %v5620_v18  ;;  %vm647_vm7 = vcmp.eq.s32.totalorder %v5857_v55, %v5536_v20 }
  0xc0   : > { %4480 = vmatprep.mubr.msk.f32.mxu1 %vm618_vm8, %v5126_v9  ;;  %4426 = vmatprep.mubr.msk.f32.mxu0 %vm636_vm9, %v5126_v9  ;;  %vm634_vm8 = vcmp.eq.s32.totalorder %v5797_v47, %v5477_v53  ;;  %vm652_vm9 = vcmp.eq.s32.totalorder %v5872_v57, %v5474_v49 }
  0xc3   : > { %4481 = vmatmul.mubr.msk.f32.gmra.mrb[28].mxu1 %vm617_vm11, %v5126_v9  ;;  %4427 = vmatmul.mubr.msk.f32.gmra.mrb[38].mxu0 %vm635_vm12, %v5126_v9  ;;  %vm633_vm11 = vcmp.eq.s32.totalorder %v5797_v47, %v5620_v18  ;;  %vm651_vm12 = vcmp.eq.s32.totalorder %v5872_v57, %v5536_v20 }
  0xc4   : > { %4482 = vmatprep.mubr.msk.f32.mxu1 %vm622_vm0, %v5126_v9  ;;  %4428 = vmatprep.mubr.msk.f32.mxu0 %vm640_vm15, %v5126_v9  ;;  %vm638_vm0 = vcmp.eq.s32.totalorder %v5812_v50, %v5477_v53  ;;  %vm656_vm15 = vcmp.eq.s32.totalorder %v5887_v58, %v5474_v49 }
  0xc7   : > { %4483 = vmatmul.mubr.msk.f32.gmra.mrb[30].mxu1 %vm621_vm13, %v5126_v9  ;;  %4429 = vmatmul.mubr.msk.f32.gmra.mrb[40].mxu0 %vm639_vm10, %v5126_v9  ;;  %vm637_vm13 = vcmp.eq.s32.totalorder %v5812_v50, %v5620_v18  ;;  %vm655_vm10 = vcmp.eq.s32.totalorder %v5887_v58, %v5536_v20 }
  0xc8   : > { %4484 = vmatprep.mubr.msk.f32.mxu1 %vm626_vm3, %v5126_v9  ;;  %4430 = vmatprep.mubr.msk.f32.mxu0 %vm644_vm1, %v5126_v9  ;;  %vm642_vm3 = vcmp.eq.s32.totalorder %v5827_v52, %v5477_v53  ;;  %vm660_vm1 = vcmp.eq.s32.totalorder %v5902_v35, %v5474_v49 }
  0xcb   : > { %4485 = vmatmul.mubr.msk.f32.gmra.mrb[32].mxu1 %vm625_vm14, %v5126_v9  ;;  %4431 = vmatmul.mubr.msk.f32.gmra.mrb[42].mxu0 %vm643_vm2, %v5126_v9  ;;  %vm641_vm14 = vcmp.eq.s32.totalorder %v5827_v52, %v5620_v18  ;;  %vm659_vm2 = vcmp.eq.s32.totalorder %v5902_v35, %v5536_v20 }
  0xcc   : > { %4486 = vmatprep.mubr.msk.f32.mxu1 %vm630_vm4, %v5126_v9  ;;  %4432 = vmatprep.mubr.msk.f32.mxu0 %vm648_vm5, %v5126_v9  ;;  %vm646_vm4 = vcmp.eq.s32.totalorder %v5842_v48, %v5477_v53  ;;  %vm664_vm5 = vcmp.eq.s32.totalorder %v5917_v59, %v5474_v49 }
  0xcf   : > { %4487 = vmatmul.mubr.msk.f32.gmra.mrb[34].mxu1 %vm629_vm6, %v5126_v9  ;;  %4433 = vmatmul.mubr.msk.f32.gmra.mrb[44].mxu0 %vm647_vm7, %v5126_v9  ;;  %vm645_vm6 = vcmp.eq.s32.totalorder %v5842_v48, %v5620_v18  ;;  %vm663_vm7 = vcmp.eq.s32.totalorder %v5917_v59, %v5536_v20 }
  0xd0   : > { %4488 = vmatprep.mubr.msk.f32.mxu1 %vm634_vm8, %v5126_v9  ;;  %4434 = vmatprep.mubr.msk.f32.mxu0 %vm652_vm9, %v5126_v9  ;;  %vm650_vm8 = vcmp.eq.s32.totalorder %v5857_v55, %v5477_v53  ;;  %vm668_vm9 = vcmp.eq.s32.totalorder %v5932_v61, %v5474_v49 }
  0xd3   : > { %4489 = vmatmul.mubr.msk.f32.gmra.mrb[36].mxu1 %vm633_vm11, %v5126_v9  ;;  %4435 = vmatmul.mubr.msk.f32.gmra.mrb[46].mxu0 %vm651_vm12, %v5126_v9  ;;  %vm649_vm11 = vcmp.eq.s32.totalorder %v5857_v55, %v5620_v18  ;;  %vm667_vm12 = vcmp.eq.s32.totalorder %v5932_v61, %v5536_v20 }
  0xd4   : > { %4490 = vmatprep.mubr.msk.f32.mxu1 %vm638_vm0, %v5126_v9  ;;  %4436 = vmatprep.mubr.msk.f32.mxu0 %vm656_vm15, %v5126_v9  ;;  %vm654_vm0 = vcmp.eq.s32.totalorder %v5872_v57, %v5477_v53  ;;  %vm672_vm15 = vcmp.eq.s32.totalorder %v5947_v62, %v5474_v49 }
  0xd7   : > { %4491 = vmatmul.mubr.msk.f32.gmra.mrb[38].mxu1 %vm637_vm13, %v5126_v9  ;;  %4437 = vmatmul.mubr.msk.f32.gmra.mrb[48].mxu0 %vm655_vm10, %v5126_v9  ;;  %vm653_vm13 = vcmp.eq.s32.totalorder %v5872_v57, %v5620_v18  ;;  %vm671_vm10 = vcmp.eq.s32.totalorder %v5947_v62, %v5536_v20 }
  0xd8   : > { %4492 = vmatprep.mubr.msk.f32.mxu1 %vm642_vm3, %v5126_v9  ;;  %4438 = vmatprep.mubr.msk.f32.mxu0 %vm660_vm1, %v5126_v9  ;;  %vm658_vm3 = vcmp.eq.s32.totalorder %v5887_v58, %v5477_v53  ;;  %vm676_vm1 = vcmp.eq.s32.totalorder %v5962_v63, %v5474_v49 }
  0xdb   : > { %4493 = vmatmul.mubr.msk.f32.gmra.mrb[40].mxu1 %vm641_vm14, %v5126_v9  ;;  %4439 = vmatmul.mubr.msk.f32.gmra.mrb[50].mxu0 %vm659_vm2, %v5126_v9  ;;  %vm657_vm14 = vcmp.eq.s32.totalorder %v5887_v58, %v5620_v18  ;;  %vm675_vm2 = vcmp.eq.s32.totalorder %v5962_v63, %v5536_v20 }
  0xdc   : > { %4494 = vmatprep.mubr.msk.f32.mxu1 %vm646_vm4, %v5126_v9  ;;  %4440 = vmatprep.mubr.msk.f32.mxu0 %vm664_vm5, %v5126_v9  ;;  %vm662_vm4 = vcmp.eq.s32.totalorder %v5902_v35, %v5477_v53  ;;  %vm680_vm5 = vcmp.eq.s32.totalorder %v5978_v1, %v5474_v49 }
  0xdf   : > { %4495 = vmatmul.mubr.msk.f32.gmra.mrb[42].mxu1 %vm645_vm6, %v5126_v9  ;;  %4441 = vmatmul.mubr.msk.f32.gmra.mrb[52].mxu0 %vm663_vm7, %v5126_v9  ;;  %vm661_vm6 = vcmp.eq.s32.totalorder %v5902_v35, %v5620_v18  ;;  %vm679_vm7 = vcmp.eq.s32.totalorder %v5978_v1, %v5536_v20 }
  0xe0   : > { %4496 = vmatprep.mubr.msk.f32.mxu1 %vm650_vm8, %v5126_v9  ;;  %4442 = vmatprep.mubr.msk.f32.mxu0 %vm668_vm9, %v5126_v9  ;;  %vm666_vm8 = vcmp.eq.s32.totalorder %v5917_v59, %v5477_v53  ;;  %vm684_vm9 = vcmp.eq.s32.totalorder %v5994_v4, %v5474_v49  ;;  %v4857_v49 = vtrunc.f32 %v5432_v60 }
  0xe2   : > { %v4858_v60 = vcvt.f32.s32 %v4857_v49  ;;  %v349_v49 = vld [vmem:[#allocation2 + $0x30] sm:$0xff] }
  0xe3   : > { %4497 = vmatmul.mubr.msk.f32.gmra.mrb[44].mxu1 %vm649_vm11, %v5126_v9  ;;  %4443 = vmatmul.mubr.msk.f32.gmra.mrb[54].mxu0 %vm667_vm12, %v5126_v9  ;;  %vm665_vm11 = vcmp.eq.s32.totalorder %v5917_v59, %v5620_v18  ;;  %vm683_vm12 = vcmp.eq.s32.totalorder %v5994_v4, %v5536_v20  ;;  %v4855_v20 = vtrunc.f32 %v5588_v25 }
  0xe4   : > { %4498 = vmatprep.mubr.msk.f32.mxu1 %vm654_vm0, %v5126_v9  ;;  %4444 = vmatprep.mubr.msk.f32.mxu0 %vm672_vm15, %v5126_v9  ;;  %vm670_vm0 = vcmp.eq.s32.totalorder %v5932_v61, %v5477_v53  ;;  %vm1655_vm15 = vcmp.eq.s32.totalorder %v5320_v5, %v6005_v8  ;;  %v6073_v10 = vrot.slane %v4858_v60, %v5381_v3 }
  0xe5   : > { %v4856_v16 = vcvt.f32.s32 %v4855_v20 }
  0xe7   : > { %4499 = vmatmul.mubr.msk.f32.gmra.mrb[46].mxu1 %vm653_vm13, %v5126_v9  ;;  %4445 = vmatmul.mubr.msk.f32.gmra.mrb[56].mxu0 %vm671_vm10, %v5126_v9  ;;  %vm669_vm13 = vcmp.eq.s32.totalorder %v5932_v61, %v5620_v18  ;;  %vm1654_vm10 = vcmp.eq.s32.totalorder %v5320_v5, %v6014_v12  ;;  %v6082_v17 = vrot.slane %v4856_v16, %v5381_v3 }
  0xe8   : > { %4500 = vmatprep.mubr.msk.f32.mxu1 %vm658_vm3, %v5126_v9  ;;  %4446 = vmatprep.mubr.msk.f32.mxu0 %vm676_vm1, %v5126_v9  ;;  %vm674_vm3 = vcmp.eq.s32.totalorder %v5947_v62, %v5477_v53  ;;  %vm1659_vm1 = vcmp.eq.s32.totalorder %v5522_v28, %v6005_v8 }
  0xeb   : > { %4501 = vmatmul.mubr.msk.f32.gmra.mrb[48].mxu1 %vm657_vm14, %v5126_v9  ;;  %4447 = vmatmul.mubr.msk.f32.gmra.mrb[58].mxu0 %vm675_vm2, %v5126_v9  ;;  %vm673_vm14 = vcmp.eq.s32.totalorder %v5947_v62, %v5620_v18  ;;  %vm1658_vm2 = vcmp.eq.s32.totalorder %v5522_v28, %v6014_v12 }
  0xec   : > { %4502 = vmatprep.mubr.msk.f32.mxu1 %vm662_vm4, %v5126_v9  ;;  %4448 = vmatprep.mubr.msk.f32.mxu0 %vm680_vm5, %v5126_v9  ;;  %vm678_vm4 = vcmp.eq.s32.totalorder %v5962_v63, %v5477_v53  ;;  %vm1663_vm5 = vcmp.eq.s32.totalorder %v5533_v11, %v6005_v8 }
  0xef   : > { %4503 = vmatmul.mubr.msk.f32.gmra.mrb[50].mxu1 %vm661_vm6, %v5126_v9  ;;  %4449 = vmatmul.mubr.msk.f32.gmra.mrb[60].mxu0 %vm679_vm7, %v5126_v9  ;;  %vm677_vm6 = vcmp.eq.s32.totalorder %v5962_v63, %v5620_v18  ;;  %vm1662_vm7 = vcmp.eq.s32.totalorder %v5533_v11, %v6014_v12 }
  0xf0   : > { %4504 = vmatprep.mubr.msk.f32.mxu1 %vm666_vm8, %v5126_v9  ;;  %4450 = vmatprep.mubr.msk.f32.mxu0 %vm684_vm9, %v5126_v9  ;;  %vm682_vm8 = vcmp.eq.s32.totalorder %v5978_v1, %v5477_v53  ;;  %vm1667_vm9 = vcmp.eq.s32.totalorder %v5558_v30, %v6005_v8 }
  0xf3   : > { %4505 = vmatmul.mubr.msk.f32.gmra.mrb[52].mxu1 %vm665_vm11, %v5126_v9  ;;  %4451 = vmatmul.mubr.msk.f32.gmra.mrb[62].mxu0 %vm683_vm12, %v5126_v9  ;;  %vm681_vm11 = vcmp.eq.s32.totalorder %v5978_v1, %v5620_v18  ;;  %vm1666_vm12 = vcmp.eq.s32.totalorder %v5558_v30, %v6014_v12 }
  0xf4   : > { %4506 = vmatprep.mubr.msk.f32.mxu1 %vm670_vm0, %v5126_v9  ;;  %4648 = vmatprep.mubr.msk.f32.mxu0 %vm1655_vm15, %v5126_v9  ;;  %vm686_vm0 = vcmp.eq.s32.totalorder %v5994_v4, %v5477_v53  ;;  %vm1671_vm15 = vcmp.eq.s32.totalorder %v5586_v33, %v6005_v8 }
  0xf7   : > { %4507 = vmatmul.mubr.msk.f32.gmra.mrb[54].mxu1 %vm669_vm13, %v5126_v9  ;;  %4649 = vmatmul.mubr.msk.f32.vlgmr.msra.gmra.mrb[64].mxu0 %vm1654_vm10, %v5126_v9  ;;  %vm685_vm13 = vcmp.eq.s32.totalorder %v5994_v4, %v5620_v18  ;;  %vm1670_vm10 = vcmp.eq.s32.totalorder %v5586_v33, %v6014_v12  ;;  %v345_v18 = vld [vmem:[#allocation2 + $0x10] sm:$0xff] }
  0xf8   : > { %4508 = vmatprep.mubr.msk.f32.mxu1 %vm674_vm3, %v5126_v9  ;;  %4650 = vmatprep.mubr.msk.f32.mxu0 %vm1659_vm1, %v5126_v9  ;;  %vm1657_vm3 = vcmp.eq.s32.totalorder %v5320_v5, %v6073_v10  ;;  %vm1675_vm1 = vcmp.eq.s32.totalorder %v5604_v51, %v6005_v8 }
  0xfb   : > { %4509 = vmatmul.mubr.msk.f32.gmra.mrb[56].mxu1 %vm673_vm14, %v5126_v9  ;;  %4651 = vmatmul.mubr.msk.f32.gmra.mrb[66].mxu0 %vm1658_vm2, %v5126_v9  ;;  %vm1656_vm14 = vcmp.eq.s32.totalorder %v5320_v5, %v6082_v17  ;;  %vm1674_vm2 = vcmp.eq.s32.totalorder %v5604_v51, %v6014_v12 }
  0xfc   : > { %4510 = vmatprep.mubr.msk.f32.mxu1 %vm678_vm4, %v5126_v9  ;;  %4652 = vmatprep.mubr.msk.f32.mxu0 %vm1663_vm5, %v5126_v9  ;;  %vm1661_vm4 = vcmp.eq.s32.totalorder %v5522_v28, %v6073_v10  ;;  %vm1679_vm5 = vcmp.eq.s32.totalorder %v5616_v36, %v6005_v8 }
  0xff   : > { %4511 = vmatmul.mubr.msk.f32.gmra.mrb[58].mxu1 %vm677_vm6, %v5126_v9  ;;  %4653 = vmatmul.mubr.msk.f32.gmra.mrb[68].mxu0 %vm1662_vm7, %v5126_v9  ;;  %vm1660_vm6 = vcmp.eq.s32.totalorder %v5522_v28, %v6082_v17  ;;  %vm1678_vm7 = vcmp.eq.s32.totalorder %v5616_v36, %v6014_v12 }
 0x100   : > { %4512 = vmatprep.mubr.msk.f32.mxu1 %vm682_vm8, %v5126_v9  ;;  %4654 = vmatprep.mubr.msk.f32.mxu0 %vm1667_vm9, %v5126_v9  ;;  %vm1665_vm8 = vcmp.eq.s32.totalorder %v5533_v11, %v6073_v10  ;;  %vm1683_vm9 = vcmp.eq.s32.totalorder %v5628_v38, %v6005_v8 }
 0x103   : > { %4513 = vmatmul.mubr.msk.f32.gmra.mrb[60].mxu1 %vm681_vm11, %v5126_v9  ;;  %4655 = vmatmul.mubr.msk.f32.gmra.mrb[70].mxu0 %vm1666_vm12, %v5126_v9  ;;  %vm1664_vm11 = vcmp.eq.s32.totalorder %v5533_v11, %v6082_v17  ;;  %vm1682_vm12 = vcmp.eq.s32.totalorder %v5628_v38, %v6014_v12 }
 0x104   : > { %4514 = vmatprep.mubr.msk.f32.mxu1 %vm686_vm0, %v5126_v9  ;;  %4656 = vmatprep.mubr.msk.f32.mxu0 %vm1671_vm15, %v5126_v9  ;;  %vm1669_vm0 = vcmp.eq.s32.totalorder %v5558_v30, %v6073_v10  ;;  %vm1687_vm15 = vcmp.eq.s32.totalorder %v5647_v39, %v6005_v8 }
 0x107   : > { %4515 = vmatmul.mubr.msk.f32.gmra.mrb[62].mxu1 %vm685_vm13, %v5126_v9  ;;  %4657 = vmatmul.mubr.msk.f32.gmra.mrb[72].mxu0 %vm1670_vm10, %v5126_v9  ;;  %vm1668_vm13 = vcmp.eq.s32.totalorder %v5558_v30, %v6082_v17  ;;  %vm1686_vm10 = vcmp.eq.s32.totalorder %v5647_v39, %v6014_v12 }
 0x108   : > { %4712 = vmatprep.mubr.msk.f32.mxu1 %vm1657_vm3, %v5126_v9  ;;  %4658 = vmatprep.mubr.msk.f32.mxu0 %vm1675_vm1, %v5126_v9  ;;  %vm1673_vm3 = vcmp.eq.s32.totalorder %v5586_v33, %v6073_v10  ;;  %vm1691_vm1 = vcmp.eq.s32.totalorder %v5662_v40, %v6005_v8 }
 0x10b   : > { %4713 = vmatmul.mubr.msk.f32.vlgmr.msra.gmra.mrb[64].mxu1 %vm1656_vm14, %v5126_v9  ;;  %4659 = vmatmul.mubr.msk.f32.gmra.mrb[74].mxu0 %vm1674_vm2, %v5126_v9  ;;  %vm1672_vm14 = vcmp.eq.s32.totalorder %v5586_v33, %v6082_v17  ;;  %vm1690_vm2 = vcmp.eq.s32.totalorder %v5662_v40, %v6014_v12 }
 0x10c   : > { %4714 = vmatprep.mubr.msk.f32.mxu1 %vm1661_vm4, %v5126_v9  ;;  %4660 = vmatprep.mubr.msk.f32.mxu0 %vm1679_vm5, %v5126_v9  ;;  %vm1677_vm4 = vcmp.eq.s32.totalorder %v5604_v51, %v6073_v10  ;;  %vm1695_vm5 = vcmp.eq.s32.totalorder %v5677_v41, %v6005_v8 }
 0x10f   : > { %4715 = vmatmul.mubr.msk.f32.gmra.mrb[66].mxu1 %vm1660_vm6, %v5126_v9  ;;  %4661 = vmatmul.mubr.msk.f32.gmra.mrb[76].mxu0 %vm1678_vm7, %v5126_v9  ;;  %vm1676_vm6 = vcmp.eq.s32.totalorder %v5604_v51, %v6082_v17  ;;  %vm1694_vm7 = vcmp.eq.s32.totalorder %v5677_v41, %v6014_v12 }
 0x110   : > { %4716 = vmatprep.mubr.msk.f32.mxu1 %vm1665_vm8, %v5126_v9  ;;  %4662 = vmatprep.mubr.msk.f32.mxu0 %vm1683_vm9, %v5126_v9  ;;  %vm1681_vm8 = vcmp.eq.s32.totalorder %v5616_v36, %v6073_v10  ;;  %vm1699_vm9 = vcmp.eq.s32.totalorder %v5692_v42, %v6005_v8 }
 0x113   : > { %4717 = vmatmul.mubr.msk.f32.gmra.mrb[68].mxu1 %vm1664_vm11, %v5126_v9  ;;  %4663 = vmatmul.mubr.msk.f32.gmra.mrb[78].mxu0 %vm1682_vm12, %v5126_v9  ;;  %vm1680_vm11 = vcmp.eq.s32.totalorder %v5616_v36, %v6082_v17  ;;  %vm1698_vm12 = vcmp.eq.s32.totalorder %v5692_v42, %v6014_v12 }
 0x114   : > { %4718 = vmatprep.mubr.msk.f32.mxu1 %vm1669_vm0, %v5126_v9  ;;  %4664 = vmatprep.mubr.msk.f32.mxu0 %vm1687_vm15, %v5126_v9  ;;  %vm1685_vm0 = vcmp.eq.s32.totalorder %v5628_v38, %v6073_v10  ;;  %vm1703_vm15 = vcmp.eq.s32.totalorder %v5707_v43, %v6005_v8 }
 0x117   : > { %4719 = vmatmul.mubr.msk.f32.gmra.mrb[70].mxu1 %vm1668_vm13, %v5126_v9  ;;  %4665 = vmatmul.mubr.msk.f32.gmra.mrb[80].mxu0 %vm1686_vm10, %v5126_v9  ;;  %vm1684_vm13 = vcmp.eq.s32.totalorder %v5628_v38, %v6082_v17  ;;  %vm1702_vm10 = vcmp.eq.s32.totalorder %v5707_v43, %v6014_v12 }
 0x118   : > { %4720 = vmatprep.mubr.msk.f32.mxu1 %vm1673_vm3, %v5126_v9  ;;  %4666 = vmatprep.mubr.msk.f32.mxu0 %vm1691_vm1, %v5126_v9  ;;  %vm1689_vm3 = vcmp.eq.s32.totalorder %v5647_v39, %v6073_v10  ;;  %vm1707_vm1 = vcmp.eq.s32.totalorder %v5722_v44, %v6005_v8 }
 0x11b   : > { %4721 = vmatmul.mubr.msk.f32.gmra.mrb[72].mxu1 %vm1672_vm14, %v5126_v9  ;;  %4667 = vmatmul.mubr.msk.f32.gmra.mrb[82].mxu0 %vm1690_vm2, %v5126_v9  ;;  %vm1688_vm14 = vcmp.eq.s32.totalorder %v5647_v39, %v6082_v17  ;;  %vm1706_vm2 = vcmp.eq.s32.totalorder %v5722_v44, %v6014_v12 }
 0x11c   : > { %4722 = vmatprep.mubr.msk.f32.mxu1 %vm1677_vm4, %v5126_v9  ;;  %4668 = vmatprep.mubr.msk.f32.mxu0 %vm1695_vm5, %v5126_v9  ;;  %vm1693_vm4 = vcmp.eq.s32.totalorder %v5662_v40, %v6073_v10  ;;  %vm1711_vm5 = vcmp.eq.s32.totalorder %v5737_v45, %v6005_v8 }
 0x11f   : > { %4723 = vmatmul.mubr.msk.f32.gmra.mrb[74].mxu1 %vm1676_vm6, %v5126_v9  ;;  %4669 = vmatmul.mubr.msk.f32.gmra.mrb[84].mxu0 %vm1694_vm7, %v5126_v9  ;;  %vm1692_vm6 = vcmp.eq.s32.totalorder %v5662_v40, %v6082_v17  ;;  %vm1710_vm7 = vcmp.eq.s32.totalorder %v5737_v45, %v6014_v12 }
 0x120   : > { %4724 = vmatprep.mubr.msk.f32.mxu1 %vm1681_vm8, %v5126_v9  ;;  %4670 = vmatprep.mubr.msk.f32.mxu0 %vm1699_vm9, %v5126_v9  ;;  %vm1697_vm8 = vcmp.eq.s32.totalorder %v5677_v41, %v6073_v10  ;;  %vm1715_vm9 = vcmp.eq.s32.totalorder %v5752_v7, %v6005_v8 }
 0x123   : > { %4725 = vmatmul.mubr.msk.f32.gmra.mrb[76].mxu1 %vm1680_vm11, %v5126_v9  ;;  %4671 = vmatmul.mubr.msk.f32.gmra.mrb[86].mxu0 %vm1698_vm12, %v5126_v9  ;;  %vm1696_vm11 = vcmp.eq.s32.totalorder %v5677_v41, %v6082_v17  ;;  %vm1714_vm12 = vcmp.eq.s32.totalorder %v5752_v7, %v6014_v12 }
 0x124   : > { %4726 = vmatprep.mubr.msk.f32.mxu1 %vm1685_vm0, %v5126_v9  ;;  %4672 = vmatprep.mubr.msk.f32.mxu0 %vm1703_vm15, %v5126_v9  ;;  %vm1701_vm0 = vcmp.eq.s32.totalorder %v5692_v42, %v6073_v10  ;;  %vm1719_vm15 = vcmp.eq.s32.totalorder %v5767_v13, %v6005_v8 }
 0x127   : > { %4727 = vmatmul.mubr.msk.f32.gmra.mrb[78].mxu1 %vm1684_vm13, %v5126_v9  ;;  %4673 = vmatmul.mubr.msk.f32.gmra.mrb[88].mxu0 %vm1702_vm10, %v5126_v9  ;;  %vm1700_vm13 = vcmp.eq.s32.totalorder %v5692_v42, %v6082_v17  ;;  %vm1718_vm10 = vcmp.eq.s32.totalorder %v5767_v13, %v6014_v12 }
 0x128   : > { %4728 = vmatprep.mubr.msk.f32.mxu1 %vm1689_vm3, %v5126_v9  ;;  %4674 = vmatprep.mubr.msk.f32.mxu0 %vm1707_vm1, %v5126_v9  ;;  %vm1705_vm3 = vcmp.eq.s32.totalorder %v5707_v43, %v6073_v10  ;;  %vm1723_vm1 = vcmp.eq.s32.totalorder %v5782_v46, %v6005_v8 }
 0x12b   : > { %4729 = vmatmul.mubr.msk.f32.gmra.mrb[80].mxu1 %vm1688_vm14, %v5126_v9  ;;  %4675 = vmatmul.mubr.msk.f32.gmra.mrb[90].mxu0 %vm1706_vm2, %v5126_v9  ;;  %vm1704_vm14 = vcmp.eq.s32.totalorder %v5707_v43, %v6082_v17  ;;  %vm1722_vm2 = vcmp.eq.s32.totalorder %v5782_v46, %v6014_v12  ;;  %v346_v43 = vld [vmem:[#allocation2 + $0x18] sm:$0xff] }
 0x12c   : > { %4730 = vmatprep.mubr.msk.f32.mxu1 %vm1693_vm4, %v5126_v9  ;;  %4676 = vmatprep.mubr.msk.f32.mxu0 %vm1711_vm5, %v5126_v9  ;;  %vm1709_vm4 = vcmp.eq.s32.totalorder %v5722_v44, %v6073_v10  ;;  %vm1727_vm5 = vcmp.eq.s32.totalorder %v5797_v47, %v6005_v8 }
 0x12f   : > { %4731 = vmatmul.mubr.msk.f32.gmra.mrb[82].mxu1 %vm1692_vm6, %v5126_v9  ;;  %4677 = vmatmul.mubr.msk.f32.gmra.mrb[92].mxu0 %vm1710_vm7, %v5126_v9  ;;  %vm1708_vm6 = vcmp.eq.s32.totalorder %v5722_v44, %v6082_v17  ;;  %vm1726_vm7 = vcmp.eq.s32.totalorder %v5797_v47, %v6014_v12 }
 0x130   : > { %4732 = vmatprep.mubr.msk.f32.mxu1 %vm1697_vm8, %v5126_v9  ;;  %4678 = vmatprep.mubr.msk.f32.mxu0 %vm1715_vm9, %v5126_v9  ;;  %vm1713_vm8 = vcmp.eq.s32.totalorder %v5737_v45, %v6073_v10  ;;  %vm1731_vm9 = vcmp.eq.s32.totalorder %v5812_v50, %v6005_v8 }
 0x133   : > { %4733 = vmatmul.mubr.msk.f32.gmra.mrb[84].mxu1 %vm1696_vm11, %v5126_v9  ;;  %4679 = vmatmul.mubr.msk.f32.gmra.mrb[94].mxu0 %vm1714_vm12, %v5126_v9  ;;  %vm1712_vm11 = vcmp.eq.s32.totalorder %v5737_v45, %v6082_v17  ;;  %vm1730_vm12 = vcmp.eq.s32.totalorder %v5812_v50, %v6014_v12 }
 0x134   : > { %4734 = vmatprep.mubr.msk.f32.mxu1 %vm1701_vm0, %v5126_v9  ;;  %4680 = vmatprep.mubr.msk.f32.mxu0 %vm1719_vm15, %v5126_v9  ;;  %vm1717_vm0 = vcmp.eq.s32.totalorder %v5752_v7, %v6073_v10  ;;  %vm1735_vm15 = vcmp.eq.s32.totalorder %v5827_v52, %v6005_v8 }
 0x137   : > { %4735 = vmatmul.mubr.msk.f32.gmra.mrb[86].mxu1 %vm1700_vm13, %v5126_v9  ;;  %4681 = vmatmul.mubr.msk.f32.gmra.mrb[96].mxu0 %vm1718_vm10, %v5126_v9  ;;  %vm1716_vm13 = vcmp.eq.s32.totalorder %v5752_v7, %v6082_v17  ;;  %vm1734_vm10 = vcmp.eq.s32.totalorder %v5827_v52, %v6014_v12 }
 0x138   : > { %4736 = vmatprep.mubr.msk.f32.mxu1 %vm1705_vm3, %v5126_v9  ;;  %4682 = vmatprep.mubr.msk.f32.mxu0 %vm1723_vm1, %v5126_v9  ;;  %vm1721_vm3 = vcmp.eq.s32.totalorder %v5767_v13, %v6073_v10  ;;  %vm1739_vm1 = vcmp.eq.s32.totalorder %v5842_v48, %v6005_v8 }
 0x13b   : > { %4737 = vmatmul.mubr.msk.f32.gmra.mrb[88].mxu1 %vm1704_vm14, %v5126_v9  ;;  %4683 = vmatmul.mubr.msk.f32.gmra.mrb[98].mxu0 %vm1722_vm2, %v5126_v9  ;;  %vm1720_vm14 = vcmp.eq.s32.totalorder %v5767_v13, %v6082_v17  ;;  %vm1738_vm2 = vcmp.eq.s32.totalorder %v5842_v48, %v6014_v12 }
 0x13c   : > { %4738 = vmatprep.mubr.msk.f32.mxu1 %vm1709_vm4, %v5126_v9  ;;  %4684 = vmatprep.mubr.msk.f32.mxu0 %vm1727_vm5, %v5126_v9  ;;  %vm1725_vm4 = vcmp.eq.s32.totalorder %v5782_v46, %v6073_v10  ;;  %vm1743_vm5 = vcmp.eq.s32.totalorder %v5857_v55, %v6005_v8 }
 0x13f   : > { %4739 = vmatmul.mubr.msk.f32.gmra.mrb[90].mxu1 %vm1708_vm6, %v5126_v9  ;;  %4685 = vmatmul.mubr.msk.f32.gmra.mrb[100].mxu0 %vm1726_vm7, %v5126_v9  ;;  %vm1724_vm6 = vcmp.eq.s32.totalorder %v5782_v46, %v6082_v17  ;;  %vm1742_vm7 = vcmp.eq.s32.totalorder %v5857_v55, %v6014_v12 }
 0x140   : > { %4740 = vmatprep.mubr.msk.f32.mxu1 %vm1713_vm8, %v5126_v9  ;;  %4686 = vmatprep.mubr.msk.f32.mxu0 %vm1731_vm9, %v5126_v9  ;;  %vm1729_vm8 = vcmp.eq.s32.totalorder %v5797_v47, %v6073_v10  ;;  %vm1747_vm9 = vcmp.eq.s32.totalorder %v5872_v57, %v6005_v8 }
 0x143   : > { %4741 = vmatmul.mubr.msk.f32.gmra.mrb[92].mxu1 %vm1712_vm11, %v5126_v9  ;;  %4687 = vmatmul.mubr.msk.f32.gmra.mrb[102].mxu0 %vm1730_vm12, %v5126_v9  ;;  %vm1728_vm11 = vcmp.eq.s32.totalorder %v5797_v47, %v6082_v17  ;;  %vm1746_vm12 = vcmp.eq.s32.totalorder %v5872_v57, %v6014_v12 }
 0x144   : > { %4742 = vmatprep.mubr.msk.f32.mxu1 %vm1717_vm0, %v5126_v9  ;;  %4688 = vmatprep.mubr.msk.f32.mxu0 %vm1735_vm15, %v5126_v9  ;;  %vm1733_vm0 = vcmp.eq.s32.totalorder %v5812_v50, %v6073_v10  ;;  %vm1751_vm15 = vcmp.eq.s32.totalorder %v5887_v58, %v6005_v8 }
 0x147   : > { %4743 = vmatmul.mubr.msk.f32.gmra.mrb[94].mxu1 %vm1716_vm13, %v5126_v9  ;;  %4689 = vmatmul.mubr.msk.f32.gmra.mrb[104].mxu0 %vm1734_vm10, %v5126_v9  ;;  %vm1732_vm13 = vcmp.eq.s32.totalorder %v5812_v50, %v6082_v17  ;;  %vm1750_vm10 = vcmp.eq.s32.totalorder %v5887_v58, %v6014_v12  ;;  %v347_v50 = vld [vmem:[#allocation2 + $0x20] sm:$0xff] }
 0x148   : > { %4744 = vmatprep.mubr.msk.f32.mxu1 %vm1721_vm3, %v5126_v9  ;;  %4690 = vmatprep.mubr.msk.f32.mxu0 %vm1739_vm1, %v5126_v9  ;;  %vm1737_vm3 = vcmp.eq.s32.totalorder %v5827_v52, %v6073_v10  ;;  %vm1755_vm1 = vcmp.eq.s32.totalorder %v5902_v35, %v6005_v8 }
 0x14a   : > { %v1029_v5 = vpop.f32.mrb[0].mxu0 }
 0x14b   : > { %4745 = vmatmul.mubr.msk.f32.gmra.mrb[96].mxu1 %vm1720_vm14, %v5126_v9  ;;  %v1031_v3 = vpop.f32.mrb[1].mxu0  ;;  %4691 = vmatmul.mubr.msk.f32.gmra.mrb[106].mxu0 %vm1738_vm2, %v5126_v9  ;;  %vm1736_vm14 = vcmp.eq.s32.totalorder %v5827_v52, %v6082_v17  ;;  %vm1754_vm2 = vcmp.eq.s32.totalorder %v5902_v35, %v6014_v12 }
 0x14c   : > { %4746 = vmatprep.mubr.msk.f32.mxu1 %vm1725_vm4, %v5126_v9  ;;  %4692 = vmatprep.mubr.msk.f32.mxu0 %vm1743_vm5, %v5126_v9  ;;  %vm1741_vm4 = vcmp.eq.s32.totalorder %v5842_v48, %v6073_v10  ;;  %vm1759_vm5 = vcmp.eq.s32.totalorder %v5917_v59, %v6005_v8 }
 0x14e   : > { %v1034_v53 = vpop.f32.mrb[2].mxu0 }
 0x14f   : > { %4747 = vmatmul.mubr.msk.f32.gmra.mrb[98].mxu1 %vm1724_vm6, %v5126_v9  ;;  %v1036_v28 = vpop.f32.mrb[3].mxu0  ;;  %4693 = vmatmul.mubr.msk.f32.gmra.mrb[108].mxu0 %vm1742_vm7, %v5126_v9  ;;  %vm1740_vm6 = vcmp.eq.s32.totalorder %v5842_v48, %v6082_v17  ;;  %vm1758_vm7 = vcmp.eq.s32.totalorder %v5917_v59, %v6014_v12 }
 0x150   : > { %4748 = vmatprep.mubr.msk.f32.mxu1 %vm1729_vm8, %v5126_v9  ;;  %4694 = vmatprep.mubr.msk.f32.mxu0 %vm1747_vm9, %v5126_v9  ;;  %vm1745_vm8 = vcmp.eq.s32.totalorder %v5857_v55, %v6073_v10  ;;  %vm1763_vm9 = vcmp.eq.s32.totalorder %v5932_v61, %v6005_v8 }
 0x152   : > { %v6322_v11 = vpop.f32.mrb[4].mxu0 }
 0x153   : > { %4749 = vmatmul.mubr.msk.f32.gmra.mrb[100].mxu1 %vm1728_vm11, %v5126_v9  ;;  %v1041_v30 = vpop.f32.mrb[5].mxu0  ;;  %4695 = vmatmul.mubr.msk.f32.gmra.mrb[110].mxu0 %vm1746_vm12, %v5126_v9  ;;  %vm1445_vm11 = vcmask 31744   ;;  %vm1744_vm12 = vcmp.eq.s32.totalorder %v5857_v55, %v6082_v17 }
 0x154   : > { %4750 = vmatprep.mubr.msk.f32.mxu1 %vm1733_vm0, %v5126_v9  ;;  %4696 = vmatprep.mubr.msk.f32.mxu0 %vm1751_vm15, %v5126_v9  ;;  %vm1762_vm0 = vcmp.eq.s32.totalorder %v5932_v61, %v6014_v12  ;;  %vm1749_vm15 = vcmp.eq.s32.totalorder %v5872_v57, %v6073_v10 }
 0x156   : > { %v6336_v21 = vpop.f32.mrb[6].mxu0 }
 0x157   : > { %4751 = vmatmul.mubr.msk.f32.gmra.mrb[102].mxu1 %vm1732_vm13, %v5126_v9  ;;  %v1046_v23 = vpop.f32.mrb[7].mxu0  ;;  %4697 = vmatmul.mubr.msk.f32.gmra.mrb[112].mxu0 %vm1750_vm10, %v5126_v9  ;;  %vm1767_vm13 = vcmp.eq.s32.totalorder %v5947_v62, %v6005_v8  ;;  %vm1748_vm10 = vcmp.eq.s32.totalorder %v5872_v57, %v6082_v17 }
 0x158   : > { %4752 = vmatprep.mubr.msk.f32.mxu1 %vm1737_vm3, %v5126_v9  ;;  %4698 = vmatprep.mubr.msk.f32.mxu0 %vm1755_vm1, %v5126_v9  ;;  %vm1766_vm3 = vcmp.eq.s32.totalorder %v5947_v62, %v6014_v12  ;;  %vm1753_vm1 = vcmp.eq.s32.totalorder %v5887_v58, %v6073_v10 }
 0x15a   : > { %v6350_v24 = vpop.f32.mrb[8].mxu0 }
 0x15b   : > { %4753 = vmatmul.mubr.msk.f32.gmra.mrb[104].mxu1 %vm1736_vm14, %v5126_v9  ;;  %v1051_v33 = vpop.f32.mrb[9].mxu0  ;;  %4699 = vmatmul.mubr.msk.f32.gmra.mrb[114].mxu0 %vm1754_vm2, %v5126_v9  ;;  %vm1771_vm14 = vcmp.eq.s32.totalorder %v5962_v63, %v6005_v8  ;;  %vm1752_vm2 = vcmp.eq.s32.totalorder %v5887_v58, %v6082_v17 }
 0x15c   : > { %4754 = vmatprep.mubr.msk.f32.mxu1 %vm1741_vm4, %v5126_v9  ;;  %4700 = vmatprep.mubr.msk.f32.mxu0 %vm1759_vm5, %v5126_v9  ;;  %vm1770_vm4 = vcmp.eq.s32.totalorder %v5962_v63, %v6014_v12  ;;  %vm1757_vm5 = vcmp.eq.s32.totalorder %v5902_v35, %v6073_v10 }
 0x15e   : > { %v1254_v25 = vpop.f32.mrb[0].mxu1  ;;  %v6364_v26 = vpop.f32.mrb[10].mxu0 }
 0x15f   : > { %v1255_v22 = vadd.f32 %v1254_v25, %v1029_v5  ;;  %v1256_v15 = vpop.f32.mrb[1].mxu1  ;;  %4755 = vmatmul.mubr.msk.f32.gmra.mrb[106].mxu1 %vm1740_vm6, %v5126_v9  ;;  %v1056_v51 = vpop.f32.mrb[11].mxu0  ;;  %4701 = vmatmul.mubr.msk.f32.gmra.mrb[116].mxu0 %vm1758_vm7, %v5126_v9  ;;  %vm1775_vm6 = vcmp.eq.s32.totalorder %v5978_v1, %v6005_v8  ;;  %vm1756_vm7 = vcmp.eq.s32.totalorder %v5902_v35, %v6082_v17 }
 0x160   : > { %4756 = vmatprep.mubr.msk.f32.mxu1 %vm1745_vm8, %v5126_v9  ;;  %4702 = vmatprep.mubr.msk.f32.mxu0 %vm1763_vm9, %v5126_v9  ;;  %vm1774_vm8 = vcmp.eq.s32.totalorder %v5978_v1, %v6014_v12  ;;  %vm1761_vm9 = vcmp.eq.s32.totalorder %v5917_v59, %v6073_v10  ;;  %v352_v15 = vld [vmem:[#allocation2 + $0x48] sm:$0xff] }
 0x161   : > { %v1413_v27 = vadd.f32 %v1255_v22, %v343_v54 }
 0x162   : > { %v1259_v6 = vpop.f32.mrb[2].mxu1  ;;  %v6378_v31 = vpop.f32.mrb[12].mxu0 }
 0x163   : > { %1446 = vst.msk [vmem:[#allocation2] sm:$0xff] %vm1445_vm11, %v1413_v27  ;;  %v1260_v32 = vadd.f32 %v1259_v6, %v1034_v53  ;;  %v1261_v34 = vpop.f32.mrb[3].mxu1  ;;  %4757 = vmatmul.mubr.msk.f32.gmra.mrb[108].mxu1 %vm1744_vm12, %v5126_v9  ;;  %v1061_v14 = vpop.f32.mrb[13].mxu0  ;;  %4703 = vmatmul.mubr.msk.f32.gmra.mrb[118].mxu0 %vm1762_vm0, %v5126_v9  ;;  %vm1779_vm12 = vcmp.eq.s32.totalorder %v5994_v4, %v6005_v8  ;;  %v350_v53 = vld [vmem:[#allocation2 + $0x38] sm:$0xff] }
 0x164   : > { %4758 = vmatprep.mubr.msk.f32.mxu1 %vm1749_vm15, %v5126_v9  ;;  %4704 = vmatprep.mubr.msk.f32.mxu0 %vm1767_vm13, %v5126_v9  ;;  %vm1760_vm0 = vcmp.eq.s32.totalorder %v5917_v59, %v6082_v17  ;;  %vm1778_vm15 = vcmp.eq.s32.totalorder %v5994_v4, %v6014_v12  ;;  %vm1765_vm13 = vcmp.eq.s32.totalorder %v5932_v61, %v6073_v10 }
 0x165   : > { %v1414_v36 = vadd.f32 %v1260_v32, %v344_v29  ;;  %v353_v32 = vld [vmem:[#allocation2 + $0x50] sm:$0xff] }
 0x166   : > { %v1264_v37 = vpop.f32.mrb[4].mxu1  ;;  %v6393_v38 = vpop.f32.mrb[14].mxu0 }
 0x167   : > { %1447 = vst.msk [vmem:[#allocation2 + $0x8] sm:$0xff] %vm1445_vm11, %v1414_v36  ;;  %v1265_v39 = vadd.f32 %v1264_v37, %v6322_v11  ;;  %v1266_v40 = vpop.f32.mrb[5].mxu1  ;;  %4759 = vmatmul.mubr.msk.f32.gmra.mrb[110].mxu1 %vm1748_vm10, %v5126_v9  ;;  %v1066_v41 = vpop.f32.mrb[15].mxu0  ;;  %4705 = vmatmul.mubr.msk.f32.gmra.mrb[120].mxu0 %vm1766_vm3, %v5126_v9  ;;  %vm1764_vm10 = vcmp.eq.s32.totalorder %v5932_v61, %v6082_v17 }
 0x168   : > { %4760 = vmatprep.mubr.msk.f32.mxu1 %vm1753_vm1, %v5126_v9  ;;  %4706 = vmatprep.mubr.msk.f32.mxu0 %vm1771_vm14, %v5126_v9  ;;  %vm1769_vm3 = vcmp.eq.s32.totalorder %v5947_v62, %v6073_v10  ;;  %vm1768_vm1 = vcmp.eq.s32.totalorder %v5947_v62, %v6082_v17  ;;  %vm1773_vm14 = vcmp.eq.s32.totalorder %v5962_v63, %v6073_v10 }
 0x169   : > { %v1415_v42 = vadd.f32 %v1265_v39, %v345_v18 }
 0x16a   : > { %v1269_v44 = vpop.f32.mrb[6].mxu1  ;;  %v6409_v45 = vpop.f32.mrb[16].mxu0 }
 0x16b   : > { %1448 = vst.msk [vmem:[#allocation2 + $0x10] sm:$0xff] %vm1445_vm11, %v1415_v42  ;;  %v1270_v7 = vadd.f32 %v1269_v44, %v6336_v21  ;;  %v1271_v13 = vpop.f32.mrb[7].mxu1  ;;  %4761 = vmatmul.mubr.msk.f32.gmra.mrb[112].mxu1 %vm1752_vm2, %v5126_v9  ;;  %v1071_v46 = vpop.f32.mrb[17].mxu0  ;;  %4707 = vmatmul.mubr.msk.f32.gmra.mrb[122].mxu0 %vm1770_vm4, %v5126_v9  ;;  %vm1772_vm2 = vcmp.eq.s32.totalorder %v5962_v63, %v6082_v17 }
 0x16c   : > { %4762 = vmatprep.mubr.msk.f32.mxu1 %vm1757_vm5, %v5126_v9  ;;  %4708 = vmatprep.mubr.msk.f32.mxu0 %vm1775_vm6, %v5126_v9  ;;  %vm1777_vm4 = vcmp.eq.s32.totalorder %v5978_v1, %v6073_v10  ;;  %vm1776_vm5 = vcmp.eq.s32.totalorder %v5978_v1, %v6082_v17  ;;  %vm1781_vm6 = vcmp.eq.s32.totalorder %v5994_v4, %v6073_v10 }
 0x16d   : > { %v1416_v47 = vadd.f32 %v1270_v7, %v346_v43  ;;  %v355_v43 = vld [vmem:[#allocation2 + $0x60] sm:$0xff] }
 0x16e   : > { %v1274_v52 = vpop.f32.mrb[8].mxu1  ;;  %v6425_v48 = vpop.f32.mrb[18].mxu0 }
 0x16f   : > { %1449 = vst.msk [vmem:[#allocation2 + $0x18] sm:$0xff] %vm1445_vm11, %v1416_v47  ;;  %v1275_v55 = vadd.f32 %v1274_v52, %v6350_v24  ;;  %v1276_v57 = vpop.f32.mrb[9].mxu1  ;;  %4763 = vmatmul.mubr.msk.f32.gmra.mrb[114].mxu1 %vm1756_vm7, %v5126_v9  ;;  %v1076_v58 = vpop.f32.mrb[19].mxu0  ;;  %4709 = vmatmul.mubr.msk.f32.gmra.mrb[124].mxu0 %vm1774_vm8, %v5126_v9  ;;  %v351_v24 = vld [vmem:[#allocation2 + $0x40] sm:$0xff]  ;;  %vm1780_vm7 = vcmp.eq.s32.totalorder %v5994_v4, %v6082_v17  ;;  %v356_v47 = vld [vmem:[#allocation2 + $0x68] sm:$0xff] }
 0x170   : > { %4764 = vmatprep.mubr.msk.f32.mxu1 %vm1761_vm9, %v5126_v9  ;;  %4710 = vmatprep.mubr.msk.f32.mxu0 %vm1779_vm12, %v5126_v9 }
 0x171   : > { %v1417_v35 = vadd.f32 %v1275_v55, %v347_v50 }
 0x172   : > { %v1279_v2 = vpop.f32.mrb[10].mxu1  ;;  %v1079_v56 = vpop.f32.mrb[20].mxu0 }
 0x173   : > { %1450 = vst.msk [vmem:[#allocation2 + $0x20] sm:$0xff] %vm1445_vm11, %v1417_v35  ;;  %v1280_v19 = vadd.f32 %v1279_v2, %v6364_v26  ;;  %v1281_v8 = vpop.f32.mrb[11].mxu1  ;;  %4765 = vmatmul.mubr.msk.f32.gmra.mrb[116].mxu1 %vm1760_vm0, %v5126_v9  ;;  %v1081_v59 = vpop.f32.mrb[21].mxu0  ;;  %4711 = vmatmul.mubr.msk.f32.gmra.mrb[126].mxu0 %vm1778_vm15, %v5126_v9  ;;  %v357_v35 = vld [vmem:[#allocation2 + $0x70] sm:$0xff] }
 0x174   : > { %4766 = vmatprep.mubr.msk.f32.mxu1 %vm1765_vm13, %v5126_v9 }
 0x175   : > { %v1418_v12 = vadd.f32 %v1280_v19, %v348_v0 }
 0x176   : > { %v1284_v20 = vpop.f32.mrb[12].mxu1  ;;  %v1084_v60 = vpop.f32.mrb[22].mxu0 }
 0x177   : > { %1451 = vst.msk [vmem:[#allocation2 + $0x28] sm:$0xff] %vm1445_vm11, %v1418_v12  ;;  %v1285_v16 = vadd.f32 %v1284_v20, %v6378_v31  ;;  %v1286_v5 = vpop.f32.mrb[13].mxu1  ;;  %4767 = vmatmul.mubr.msk.f32.gmra.mrb[118].mxu1 %vm1764_vm10, %v5126_v9  ;;  %v1086_v3 = vpop.f32.mrb[23].mxu0  ;;  %v358_v12 = vld [vmem:[#allocation2 + $0x78] sm:$0xff] }
 0x178   : > { %4768 = vmatprep.mubr.msk.f32.mxu1 %vm1769_vm3, %v5126_v9 }
 0x179   : > { %v1419_v61 = vadd.f32 %v1285_v16, %v349_v49 }
 0x17a   : > { %v1289_v28 = vpop.f32.mrb[14].mxu1  ;;  %v1089_v11 = vpop.f32.mrb[24].mxu0 }
 0x17b   : > { %1452 = vst.msk [vmem:[#allocation2 + $0x30] sm:$0xff] %vm1445_vm11, %v1419_v61  ;;  %v1290_v30 = vadd.f32 %v1289_v28, %v6393_v38  ;;  %v1291_v21 = vpop.f32.mrb[15].mxu1  ;;  %4769 = vmatmul.mubr.msk.f32.gmra.mrb[120].mxu1 %vm1768_vm1, %v5126_v9  ;;  %v1091_v23 = vpop.f32.mrb[25].mxu0  ;;  %v354_v38 = vld [vmem:[#allocation2 + $0x58] sm:$0xff]  ;;  %v359_v61 = vld [vmem:[#allocation2 + $0x80] sm:$0xff] }
 0x17c   : > { %4770 = vmatprep.mubr.msk.f32.mxu1 %vm1773_vm14, %v5126_v9 }
 0x17d   : > { %v1420_v62 = vadd.f32 %v1290_v30, %v350_v53 }
 0x17e   : > { %v1294_v33 = vpop.f32.mrb[16].mxu1  ;;  %v1094_v54 = vpop.f32.mrb[26].mxu0 }
 0x17f   : > { %1453 = vst.msk [vmem:[#allocation2 + $0x38] sm:$0xff] %vm1445_vm11, %v1420_v62  ;;  %v1295_v25 = vadd.f32 %v1294_v33, %v6409_v45  ;;  %v1296_v26 = vpop.f32.mrb[17].mxu1  ;;  %4771 = vmatmul.mubr.msk.f32.gmra.mrb[122].mxu1 %vm1772_vm2, %v5126_v9  ;;  %v1096_v22 = vpop.f32.mrb[27].mxu0  ;;  %v360_v62 = vld [vmem:[#allocation2 + $0x88] sm:$0xff] }
 0x180   : > { %4772 = vmatprep.mubr.msk.f32.mxu1 %vm1777_vm4, %v5126_v9 }
 0x181   : > { %v1421_v63 = vadd.f32 %v1295_v25, %v351_v24 }
 0x182   : > { %v1299_v51 = vpop.f32.mrb[18].mxu1  ;;  %v1099_v27 = vpop.f32.mrb[28].mxu0 }
 0x183   : > { %1454 = vst.msk [vmem:[#allocation2 + $0x40] sm:$0xff] %vm1445_vm11, %v1421_v63  ;;  %v1300_v29 = vadd.f32 %v1299_v51, %v6425_v48  ;;  %v1301_v6 = vpop.f32.mrb[19].mxu1  ;;  %4773 = vmatmul.mubr.msk.f32.gmra.mrb[124].mxu1 %vm1776_vm5, %v5126_v9  ;;  %v1101_v31 = vpop.f32.mrb[29].mxu0  ;;  %v361_v63 = vld [vmem:[#allocation2 + $0x90] sm:$0xff] }
 0x184   : > { %4774 = vmatprep.mubr.msk.f32.mxu1 %vm1781_vm6, %v5126_v9 }
 0x185   : > { %v1422_v1 = vadd.f32 %v1300_v29, %v352_v15 }
 0x186   : > { %v1304_v34 = vpop.f32.mrb[20].mxu1  ;;  %v1104_v10 = vpop.f32.mrb[30].mxu0 }
 0x187   : > { %1455 = vst.msk [vmem:[#allocation2 + $0x48] sm:$0xff] %vm1445_vm11, %v1422_v1  ;;  %v1305_v14 = vadd.f32 %v1304_v34, %v1079_v56  ;;  %v1306_v36 = vpop.f32.mrb[21].mxu1  ;;  %4775 = vmatmul.mubr.msk.f32.gmra.mrb[126].mxu1 %vm1780_vm7, %v5126_v9  ;;  %v1106_v18 = vpop.f32.mrb[31].mxu0  ;;  %v362_v1 = vld [vmem:[#allocation2 + $0x98] sm:$0xff] }
 0x189   : > { %v1423_v37 = vadd.f32 %v1305_v14, %v353_v32 }
 0x18a   : > { %v1309_v39 = vpop.f32.mrb[22].mxu1  ;;  %v1109_v40 = vpop.f32.mrb[32].mxu0 }
 0x18b   : > { %1456 = vst.msk [vmem:[#allocation2 + $0x50] sm:$0xff] %vm1445_vm11, %v1423_v37  ;;  %v1310_v41 = vadd.f32 %v1309_v39, %v1084_v60  ;;  %v1311_v42 = vpop.f32.mrb[23].mxu1  ;;  %v1111_v4 = vpop.f32.mrb[33].mxu0  ;;  %v363_v37 = vld [vmem:[#allocation2 + $0xa0] sm:$0xff] }
 0x18d   : > { %v1424_v17 = vadd.f32 %v1310_v41, %v354_v38 }
 0x18e   : > { %v1314_v44 = vpop.f32.mrb[24].mxu1  ;;  %v1114_v45 = vpop.f32.mrb[34].mxu0 }
 0x18f   : > { %1457 = vst.msk [vmem:[#allocation2 + $0x58] sm:$0xff] %vm1445_vm11, %v1424_v17  ;;  %v1315_v7 = vadd.f32 %v1314_v44, %v1089_v11  ;;  %v1316_v13 = vpop.f32.mrb[25].mxu1  ;;  %v1116_v46 = vpop.f32.mrb[35].mxu0  ;;  %v364_v17 = vld [vmem:[#allocation2 + $0xa8] sm:$0xff] }
 0x191   : > { %v1425_v9 = vadd.f32 %v1315_v7, %v355_v43 }
 0x192   : > { %v1319_v50 = vpop.f32.mrb[26].mxu1  ;;  %v1119_v52 = vpop.f32.mrb[36].mxu0 }
 0x193   : > { %1458 = vst.msk [vmem:[#allocation2 + $0x60] sm:$0xff] %vm1445_vm11, %v1425_v9  ;;  %v1320_v48 = vadd.f32 %v1319_v50, %v1094_v54  ;;  %v1321_v55 = vpop.f32.mrb[27].mxu1  ;;  %v1121_v57 = vpop.f32.mrb[37].mxu0  ;;  %v365_v9 = vld [vmem:[#allocation2 + $0xb0] sm:$0xff] }
 0x195   : > { %v1426_v58 = vadd.f32 %v1320_v48, %v356_v47 }
 0x196   : > { %v1324_v0 = vpop.f32.mrb[28].mxu1  ;;  %v1124_v2 = vpop.f32.mrb[38].mxu0 }
 0x197   : > { %1459 = vst.msk [vmem:[#allocation2 + $0x68] sm:$0xff] %vm1445_vm11, %v1426_v58  ;;  %v1325_v56 = vadd.f32 %v1324_v0, %v1099_v27  ;;  %v1326_v19 = vpop.f32.mrb[29].mxu1  ;;  %v1126_v8 = vpop.f32.mrb[39].mxu0  ;;  %v366_v58 = vld [vmem:[#allocation2 + $0xb8] sm:$0xff] }
 0x199   : > { %v1427_v59 = vadd.f32 %v1325_v56, %v357_v35 }
 0x19a   : > { %v1329_v49 = vpop.f32.mrb[30].mxu1  ;;  %v1129_v20 = vpop.f32.mrb[40].mxu0 }
 0x19b   : > { %1460 = vst.msk [vmem:[#allocation2 + $0x70] sm:$0xff] %vm1445_vm11, %v1427_v59  ;;  %v1330_v60 = vadd.f32 %v1329_v49, %v1104_v10  ;;  %v1331_v16 = vpop.f32.mrb[31].mxu1  ;;  %v1131_v5 = vpop.f32.mrb[41].mxu0  ;;  %v367_v59 = vld [vmem:[#allocation2 + $0xc0] sm:$0xff] }
 0x19d   : > { %v1428_v3 = vadd.f32 %v1330_v60, %v358_v12 }
 0x19e   : > { %v1334_v53 = vpop.f32.mrb[32].mxu1  ;;  %v1134_v28 = vpop.f32.mrb[42].mxu0 }
 0x19f   : > { %1461 = vst.msk [vmem:[#allocation2 + $0x78] sm:$0xff] %vm1445_vm11, %v1428_v3  ;;  %v1335_v11 = vadd.f32 %v1334_v53, %v1109_v40  ;;  %v1336_v30 = vpop.f32.mrb[33].mxu1  ;;  %v1136_v21 = vpop.f32.mrb[43].mxu0  ;;  %v368_v3 = vld [vmem:[#allocation2 + $0xc8] sm:$0xff] }
 0x1a1   : > { %v1429_v23 = vadd.f32 %v1335_v11, %v359_v61 }
 0x1a2   : > { %v1339_v24 = vpop.f32.mrb[34].mxu1  ;;  %v1139_v33 = vpop.f32.mrb[44].mxu0 }
 0x1a3   : > { %1462 = vst.msk [vmem:[#allocation2 + $0x80] sm:$0xff] %vm1445_vm11, %v1429_v23  ;;  %v1340_v54 = vadd.f32 %v1339_v24, %v1114_v45  ;;  %v1341_v25 = vpop.f32.mrb[35].mxu1  ;;  %v1141_v26 = vpop.f32.mrb[45].mxu0  ;;  %v369_v23 = vld [vmem:[#allocation2 + $0xd0] sm:$0xff] }
 0x1a5   : > { %v1430_v22 = vadd.f32 %v1340_v54, %v360_v62 }
 0x1a6   : > { %v1344_v15 = vpop.f32.mrb[36].mxu1  ;;  %v1144_v51 = vpop.f32.mrb[46].mxu0 }
 0x1a7   : > { %1463 = vst.msk [vmem:[#allocation2 + $0x88] sm:$0xff] %vm1445_vm11, %v1430_v22  ;;  %v1345_v27 = vadd.f32 %v1344_v15, %v1119_v52  ;;  %v1346_v29 = vpop.f32.mrb[37].mxu1  ;;  %v1146_v6 = vpop.f32.mrb[47].mxu0  ;;  %v370_v22 = vld [vmem:[#allocation2 + $0xd8] sm:$0xff] }
 0x1a9   : > { %v1431_v31 = vadd.f32 %v1345_v27, %v361_v63 }
 0x1aa   : > { %v1349_v32 = vpop.f32.mrb[38].mxu1  ;;  %v1149_v34 = vpop.f32.mrb[48].mxu0 }
 0x1ab   : > { %1464 = vst.msk [vmem:[#allocation2 + $0x90] sm:$0xff] %vm1445_vm11, %v1431_v31  ;;  %v1350_v10 = vadd.f32 %v1349_v32, %v1124_v2  ;;  %v1351_v14 = vpop.f32.mrb[39].mxu1  ;;  %v1151_v36 = vpop.f32.mrb[49].mxu0  ;;  %v371_v31 = vld [vmem:[#allocation2 + $0xe0] sm:$0xff] }
 0x1ad   : > { %v1432_v18 = vadd.f32 %v1350_v10, %v362_v1 }
 0x1ae   : > { %v1354_v38 = vpop.f32.mrb[40].mxu1  ;;  %v1154_v39 = vpop.f32.mrb[50].mxu0 }
 0x1af   : > { %1465 = vst.msk [vmem:[#allocation2 + $0x98] sm:$0xff] %vm1445_vm11, %v1432_v18  ;;  %v1355_v40 = vadd.f32 %v1354_v38, %v1129_v20  ;;  %v1356_v41 = vpop.f32.mrb[41].mxu1  ;;  %v1156_v42 = vpop.f32.mrb[51].mxu0  ;;  %v372_v18 = vld [vmem:[#allocation2 + $0xe8] sm:$0xff] }
 0x1b1   : > { %v1433_v4 = vadd.f32 %v1355_v40, %v363_v37 }
 0x1b2   : > { %v1359_v43 = vpop.f32.mrb[42].mxu1  ;;  %v1159_v44 = vpop.f32.mrb[52].mxu0 }
 0x1b3   : > { %1466 = vst.msk [vmem:[#allocation2 + $0xa0] sm:$0xff] %vm1445_vm11, %v1433_v4  ;;  %v1360_v45 = vadd.f32 %v1359_v43, %v1134_v28  ;;  %v1361_v7 = vpop.f32.mrb[43].mxu1  ;;  %v1161_v13 = vpop.f32.mrb[53].mxu0  ;;  %v373_v4 = vld [vmem:[#allocation2 + $0xf0] sm:$0xff] }
 0x1b5   : > { %v1434_v46 = vadd.f32 %v1360_v45, %v364_v17 }
 0x1b6   : > { %v1364_v47 = vpop.f32.mrb[44].mxu1  ;;  %v1164_v50 = vpop.f32.mrb[54].mxu0 }
 0x1b7   : > { %1467 = vst.msk [vmem:[#allocation2 + $0xa8] sm:$0xff] %vm1445_vm11, %v1434_v46  ;;  %v1365_v52 = vadd.f32 %v1364_v47, %v1139_v33  ;;  %v1366_v48 = vpop.f32.mrb[45].mxu1  ;;  %v1166_v55 = vpop.f32.mrb[55].mxu0  ;;  %v374_v46 = vld [vmem:[#allocation2 + $0xf8] sm:$0xff] }
 0x1b9   : > { %v1435_v57 = vadd.f32 %v1365_v52, %v365_v9 }
 0x1ba   : > { %v1369_v35 = vpop.f32.mrb[46].mxu1  ;;  %v1169_v0 = vpop.f32.mrb[56].mxu0 }
 0x1bb   : > { %1468 = vst.msk [vmem:[#allocation2 + $0xb0] sm:$0xff] %vm1445_vm11, %v1435_v57  ;;  %v1370_v2 = vadd.f32 %v1369_v35, %v1144_v51  ;;  %v1371_v56 = vpop.f32.mrb[47].mxu1  ;;  %v1171_v19 = vpop.f32.mrb[57].mxu0  ;;  %v1478_v57 = vld [vmem:[#allocation3] sm:$0xff] }
 0x1bd   : > { %v1436_v8 = vadd.f32 %v1370_v2, %v366_v58 }
 0x1be   : > { %v1374_v12 = vpop.f32.mrb[48].mxu1  ;;  %v1174_v49 = vpop.f32.mrb[58].mxu0 }
 0x1bf   : > { %1469 = vst.msk [vmem:[#allocation2 + $0xb8] sm:$0xff] %vm1445_vm11, %v1436_v8  ;;  %v1375_v20 = vadd.f32 %v1374_v12, %v1149_v34  ;;  %v1376_v60 = vpop.f32.mrb[49].mxu1  ;;  %v1176_v16 = vpop.f32.mrb[59].mxu0  ;;  %v1479_v8 = vld [vmem:[#allocation3 + $0x8] sm:$0xff] }
 0x1c1   : > { %v1437_v5 = vadd.f32 %v1375_v20, %v367_v59 }
 0x1c2   : > { %v1379_v61 = vpop.f32.mrb[50].mxu1  ;;  %v1179_v53 = vpop.f32.mrb[60].mxu0 }
 0x1c3   : > { %1470 = vst.msk [vmem:[#allocation2 + $0xc0] sm:$0xff] %vm1445_vm11, %v1437_v5  ;;  %v1380_v28 = vadd.f32 %v1379_v61, %v1154_v39  ;;  %v1381_v11 = vpop.f32.mrb[51].mxu1  ;;  %v1181_v30 = vpop.f32.mrb[61].mxu0  ;;  %v1480_v5 = vld [vmem:[#allocation3 + $0x10] sm:$0xff] }
 0x1c5   : > { %v1438_v21 = vadd.f32 %v1380_v28, %v368_v3 }
 0x1c6   : > { %v1384_v62 = vpop.f32.mrb[52].mxu1  ;;  %v1184_v24 = vpop.f32.mrb[62].mxu0 }
 0x1c7   : > { %1471 = vst.msk [vmem:[#allocation2 + $0xc8] sm:$0xff] %vm1445_vm11, %v1438_v21  ;;  %v1385_v33 = vadd.f32 %v1384_v62, %v1159_v44  ;;  %v1386_v54 = vpop.f32.mrb[53].mxu1  ;;  %v1186_v25 = vpop.f32.mrb[63].mxu0  ;;  %v1481_v21 = vld [vmem:[#allocation3 + $0x18] sm:$0xff] }
 0x1c9   : > { %v1439_v26 = vadd.f32 %v1385_v33, %v369_v23 }
 0x1ca   : > { %v1389_v63 = vpop.f32.mrb[54].mxu1  ;;  %v2124_v15 = vpop.f32.mrb[64].mxu0 }
 0x1cb   : > { %1472 = vst.msk [vmem:[#allocation2 + $0xd0] sm:$0xff] %vm1445_vm11, %v1439_v26  ;;  %v1390_v51 = vadd.f32 %v1389_v63, %v1164_v50  ;;  %v1391_v27 = vpop.f32.mrb[55].mxu1  ;;  %v2126_v29 = vpop.f32.mrb[65].mxu0  ;;  %v1482_v26 = vld [vmem:[#allocation3 + $0x20] sm:$0xff] }
 0x1cd   : > { %v1440_v6 = vadd.f32 %v1390_v51, %v370_v22 }
 0x1ce   : > { %v1394_v1 = vpop.f32.mrb[56].mxu1  ;;  %v2129_v32 = vpop.f32.mrb[66].mxu0 }
 0x1cf   : > { %1473 = vst.msk [vmem:[#allocation2 + $0xd8] sm:$0xff] %vm1445_vm11, %v1440_v6  ;;  %v1395_v34 = vadd.f32 %v1394_v1, %v1169_v0  ;;  %v1396_v10 = vpop.f32.mrb[57].mxu1  ;;  %v2131_v14 = vpop.f32.mrb[67].mxu0  ;;  %v1483_v6 = vld [vmem:[#allocation3 + $0x28] sm:$0xff] }
 0x1d1   : > { %v1441_v36 = vadd.f32 %v1395_v34, %v371_v31 }
 0x1d2   : > { %v1399_v37 = vpop.f32.mrb[58].mxu1  ;;  %v2134_v38 = vpop.f32.mrb[68].mxu0 }
 0x1d3   : > { %1474 = vst.msk [vmem:[#allocation2 + $0xe0] sm:$0xff] %vm1445_vm11, %v1441_v36  ;;  %v1400_v39 = vadd.f32 %v1399_v37, %v1174_v49  ;;  %v1401_v40 = vpop.f32.mrb[59].mxu1  ;;  %v2136_v41 = vpop.f32.mrb[69].mxu0  ;;  %v1484_v36 = vld [vmem:[#allocation3 + $0x30] sm:$0xff] }
 0x1d5   : > { %v1442_v42 = vadd.f32 %v1400_v39, %v372_v18 }
 0x1d6   : > { %v1404_v17 = vpop.f32.mrb[60].mxu1  ;;  %v2139_v43 = vpop.f32.mrb[70].mxu0 }
 0x1d7   : > { %1475 = vst.msk [vmem:[#allocation2 + $0xe8] sm:$0xff] %vm1445_vm11, %v1442_v42  ;;  %v1405_v44 = vadd.f32 %v1404_v17, %v1179_v53  ;;  %v1406_v45 = vpop.f32.mrb[61].mxu1  ;;  %v2141_v7 = vpop.f32.mrb[71].mxu0  ;;  %v1485_v42 = vld [vmem:[#allocation3 + $0x38] sm:$0xff] }
 0x1d9   : > { %v1443_v13 = vadd.f32 %v1405_v44, %v373_v4 }
 0x1da   : > { %v1409_v9 = vpop.f32.mrb[62].mxu1  ;;  %v2144_v47 = vpop.f32.mrb[72].mxu0 }
 0x1db   : > { %1476 = vst.msk [vmem:[#allocation2 + $0xf0] sm:$0xff] %vm1445_vm11, %v1443_v13  ;;  %v1410_v50 = vadd.f32 %v1409_v9, %v1184_v24  ;;  %v1411_v52 = vpop.f32.mrb[63].mxu1  ;;  %v2146_v48 = vpop.f32.mrb[73].mxu0  ;;  %v1486_v13 = vld [vmem:[#allocation3 + $0x40] sm:$0xff] }
 0x1dd   : > { %v1444_v55 = vadd.f32 %v1410_v50, %v374_v46 }
 0x1de   : > { %v2349_v58 = vpop.f32.mrb[64].mxu1  ;;  %v2149_v35 = vpop.f32.mrb[74].mxu0 }
 0x1df   : > { %1477 = vst.msk [vmem:[#allocation2 + $0xf8] sm:$0xff] %vm1445_vm11, %v1444_v55  ;;  %v2350_v0 = vadd.f32 %v2349_v58, %v2124_v15  ;;  %v2351_v2 = vpop.f32.mrb[65].mxu1  ;;  %v2151_v56 = vpop.f32.mrb[75].mxu0  ;;  %v1487_v55 = vld [vmem:[#allocation3 + $0x48] sm:$0xff] }
 0x1e1   : > { %v2508_v19 = vadd.f32 %v2350_v0, %v1478_v57 }
 0x1e2   : > { %v2354_v59 = vpop.f32.mrb[66].mxu1  ;;  %v2154_v12 = vpop.f32.mrb[76].mxu0 }
 0x1e3   : > { %2540 = vst.msk [vmem:[#allocation3] sm:$0xff] %vm1445_vm11, %v2508_v19  ;;  %v2355_v49 = vadd.f32 %v2354_v59, %v2129_v32  ;;  %v2356_v20 = vpop.f32.mrb[67].mxu1  ;;  %v2156_v60 = vpop.f32.mrb[77].mxu0  ;;  %v1488_v19 = vld [vmem:[#allocation3 + $0x50] sm:$0xff] }
 0x1e5   : > { %v2509_v16 = vadd.f32 %v2355_v49, %v1479_v8 }
 0x1e6   : > { %v2359_v3 = vpop.f32.mrb[68].mxu1  ;;  %v2159_v61 = vpop.f32.mrb[78].mxu0 }
 0x1e7   : > { %2541 = vst.msk [vmem:[#allocation3 + $0x8] sm:$0xff] %vm1445_vm11, %v2509_v16  ;;  %v2360_v53 = vadd.f32 %v2359_v3, %v2134_v38  ;;  %v2361_v28 = vpop.f32.mrb[69].mxu1  ;;  %v2161_v11 = vpop.f32.mrb[79].mxu0  ;;  %v1489_v16 = vld [vmem:[#allocation3 + $0x58] sm:$0xff] }
 0x1e9   : > { %v2510_v30 = vadd.f32 %v2360_v53, %v1480_v5 }
 0x1ea   : > { %v2364_v23 = vpop.f32.mrb[70].mxu1  ;;  %v2164_v62 = vpop.f32.mrb[80].mxu0 }
 0x1eb   : > { %2542 = vst.msk [vmem:[#allocation3 + $0x10] sm:$0xff] %vm1445_vm11, %v2510_v30  ;;  %v2365_v24 = vadd.f32 %v2364_v23, %v2139_v43  ;;  %v2366_v33 = vpop.f32.mrb[71].mxu1  ;;  %v2166_v54 = vpop.f32.mrb[81].mxu0  ;;  %v1490_v30 = vld [vmem:[#allocation3 + $0x60] sm:$0xff] }
 0x1ed   : > { %v2511_v25 = vadd.f32 %v2365_v24, %v1481_v21 }
 0x1ee   : > { %v2369_v22 = vpop.f32.mrb[72].mxu1  ;;  %v2169_v63 = vpop.f32.mrb[82].mxu0 }
 0x1ef   : > { %2543 = vst.msk [vmem:[#allocation3 + $0x18] sm:$0xff] %vm1445_vm11, %v2511_v25  ;;  %v2370_v15 = vadd.f32 %v2369_v22, %v2144_v47  ;;  %v2371_v51 = vpop.f32.mrb[73].mxu1  ;;  %v2171_v27 = vpop.f32.mrb[83].mxu0  ;;  %v1491_v25 = vld [vmem:[#allocation3 + $0x68] sm:$0xff] }
 0x1f1   : > { %v2512_v29 = vadd.f32 %v2370_v15, %v1482_v26 }
 0x1f2   : > { %v2374_v31 = vpop.f32.mrb[74].mxu1  ;;  %v2174_v1 = vpop.f32.mrb[84].mxu0 }
 0x1f3   : > { %2544 = vst.msk [vmem:[#allocation3 + $0x20] sm:$0xff] %vm1445_vm11, %v2512_v29  ;;  %v2375_v32 = vadd.f32 %v2374_v31, %v2149_v35  ;;  %v2376_v34 = vpop.f32.mrb[75].mxu1  ;;  %v2176_v10 = vpop.f32.mrb[85].mxu0  ;;  %v1492_v29 = vld [vmem:[#allocation3 + $0x70] sm:$0xff] }
 0x1f5   : > { %v2513_v14 = vadd.f32 %v2375_v32, %v1483_v6 }
 0x1f6   : > { %v2379_v18 = vpop.f32.mrb[76].mxu1  ;;  %v2179_v37 = vpop.f32.mrb[86].mxu0 }
 0x1f7   : > { %2545 = vst.msk [vmem:[#allocation3 + $0x28] sm:$0xff] %vm1445_vm11, %v2513_v14  ;;  %v2380_v38 = vadd.f32 %v2379_v18, %v2154_v12  ;;  %v2381_v39 = vpop.f32.mrb[77].mxu1  ;;  %v2181_v40 = vpop.f32.mrb[87].mxu0  ;;  %v1493_v14 = vld [vmem:[#allocation3 + $0x78] sm:$0xff] }
 0x1f9   : > { %v2514_v41 = vadd.f32 %v2380_v38, %v1484_v36 }
 0x1fa   : > { %v2384_v4 = vpop.f32.mrb[78].mxu1  ;;  %v2184_v17 = vpop.f32.mrb[88].mxu0 }
 0x1fb   : > { %2546 = vst.msk [vmem:[#allocation3 + $0x30] sm:$0xff] %vm1445_vm11, %v2514_v41  ;;  %v2385_v43 = vadd.f32 %v2384_v4, %v2159_v61  ;;  %v2386_v44 = vpop.f32.mrb[79].mxu1  ;;  %v2186_v45 = vpop.f32.mrb[89].mxu0  ;;  %v1494_v41 = vld [vmem:[#allocation3 + $0x80] sm:$0xff] }
 0x1fd   : > { %v2515_v7 = vadd.f32 %v2385_v43, %v1485_v42 }
 0x1fe   : > { %v2389_v46 = vpop.f32.mrb[80].mxu1  ;;  %v2189_v9 = vpop.f32.mrb[90].mxu0 }
 0x1ff   : > { %2547 = vst.msk [vmem:[#allocation3 + $0x38] sm:$0xff] %vm1445_vm11, %v2515_v7  ;;  %v2390_v47 = vadd.f32 %v2389_v46, %v2164_v62  ;;  %v2391_v50 = vpop.f32.mrb[81].mxu1  ;;  %v2191_v52 = vpop.f32.mrb[91].mxu0  ;;  %v1495_v7 = vld [vmem:[#allocation3 + $0x88] sm:$0xff] }
 0x201   : > { %v2516_v48 = vadd.f32 %v2390_v47, %v1486_v13 }
 0x202   : > { %v2394_v57 = vpop.f32.mrb[82].mxu1  ;;  %v2194_v58 = vpop.f32.mrb[92].mxu0 }
 0x203   : > { %2548 = vst.msk [vmem:[#allocation3 + $0x40] sm:$0xff] %vm1445_vm11, %v2516_v48  ;;  %v2395_v35 = vadd.f32 %v2394_v57, %v2169_v63  ;;  %v2396_v0 = vpop.f32.mrb[83].mxu1  ;;  %v2196_v2 = vpop.f32.mrb[93].mxu0  ;;  %v1496_v48 = vld [vmem:[#allocation3 + $0x90] sm:$0xff] }
 0x205   : > { %v2517_v56 = vadd.f32 %v2395_v35, %v1487_v55 }
 0x206   : > { %v2399_v8 = vpop.f32.mrb[84].mxu1  ;;  %v2199_v59 = vpop.f32.mrb[94].mxu0 }
 0x207   : > { %2549 = vst.msk [vmem:[#allocation3 + $0x48] sm:$0xff] %vm1445_vm11, %v2517_v56  ;;  %v2400_v12 = vadd.f32 %v2399_v8, %v2174_v1  ;;  %v2401_v49 = vpop.f32.mrb[85].mxu1  ;;  %v2201_v20 = vpop.f32.mrb[95].mxu0  ;;  %v1497_v56 = vld [vmem:[#allocation3 + $0x98] sm:$0xff] }
 0x209   : > { %v2518_v60 = vadd.f32 %v2400_v12, %v1488_v19 }
 0x20a   : > { %v2404_v5 = vpop.f32.mrb[86].mxu1  ;;  %v2204_v3 = vpop.f32.mrb[96].mxu0 }
 0x20b   : > { %2550 = vst.msk [vmem:[#allocation3 + $0x50] sm:$0xff] %vm1445_vm11, %v2518_v60  ;;  %v2405_v61 = vadd.f32 %v2404_v5, %v2179_v37  ;;  %v2406_v53 = vpop.f32.mrb[87].mxu1  ;;  %v2206_v28 = vpop.f32.mrb[97].mxu0  ;;  %v1498_v60 = vld [vmem:[#allocation3 + $0xa0] sm:$0xff] }
 0x20d   : > { %v2519_v11 = vadd.f32 %v2405_v61, %v1489_v16 }
 0x20e   : > { %v2409_v21 = vpop.f32.mrb[88].mxu1  ;;  %v2209_v23 = vpop.f32.mrb[98].mxu0 }
 0x20f   : > { %2551 = vst.msk [vmem:[#allocation3 + $0x58] sm:$0xff] %vm1445_vm11, %v2519_v11  ;;  %v2410_v62 = vadd.f32 %v2409_v21, %v2184_v17  ;;  %v2411_v24 = vpop.f32.mrb[89].mxu1  ;;  %v2211_v33 = vpop.f32.mrb[99].mxu0  ;;  %v1499_v11 = vld [vmem:[#allocation3 + $0xa8] sm:$0xff] }
 0x211   : > { %v2520_v54 = vadd.f32 %v2410_v62, %v1490_v30 }
 0x212   : > { %v2414_v26 = vpop.f32.mrb[90].mxu1  ;;  %v2214_v22 = vpop.f32.mrb[100].mxu0 }
 0x213   : > { %2552 = vst.msk [vmem:[#allocation3 + $0x60] sm:$0xff] %vm1445_vm11, %v2520_v54  ;;  %v2415_v63 = vadd.f32 %v2414_v26, %v2189_v9  ;;  %v2416_v15 = vpop.f32.mrb[91].mxu1  ;;  %v2216_v51 = vpop.f32.mrb[101].mxu0  ;;  %v1500_v54 = vld [vmem:[#allocation3 + $0xb0] sm:$0xff] }
 0x215   : > { %v2521_v27 = vadd.f32 %v2415_v63, %v1491_v25 }
 0x216   : > { %v2419_v6 = vpop.f32.mrb[92].mxu1  ;;  %v2219_v31 = vpop.f32.mrb[102].mxu0 }
 0x217   : > { %2553 = vst.msk [vmem:[#allocation3 + $0x68] sm:$0xff] %vm1445_vm11, %v2521_v27  ;;  %v2420_v1 = vadd.f32 %v2419_v6, %v2194_v58  ;;  %v2421_v32 = vpop.f32.mrb[93].mxu1  ;;  %v2221_v34 = vpop.f32.mrb[103].mxu0  ;;  %v1501_v27 = vld [vmem:[#allocation3 + $0xb8] sm:$0xff] }
 0x219   : > { %v2522_v10 = vadd.f32 %v2420_v1, %v1492_v29 }
 0x21a   : > { %v2424_v36 = vpop.f32.mrb[94].mxu1  ;;  %v2224_v18 = vpop.f32.mrb[104].mxu0 }
 0x21b   : > { %2554 = vst.msk [vmem:[#allocation3 + $0x70] sm:$0xff] %vm1445_vm11, %v2522_v10  ;;  %v2425_v37 = vadd.f32 %v2424_v36, %v2199_v59  ;;  %v2426_v38 = vpop.f32.mrb[95].mxu1  ;;  %v2226_v39 = vpop.f32.mrb[105].mxu0  ;;  %v1502_v10 = vld [vmem:[#allocation3 + $0xc0] sm:$0xff] }
 0x21d   : > { %v2523_v40 = vadd.f32 %v2425_v37, %v1493_v14 }
 0x21e   : > { %v2429_v42 = vpop.f32.mrb[96].mxu1  ;;  %v2229_v4 = vpop.f32.mrb[106].mxu0 }
 0x21f   : > { %2555 = vst.msk [vmem:[#allocation3 + $0x78] sm:$0xff] %vm1445_vm11, %v2523_v40  ;;  %v2430_v17 = vadd.f32 %v2429_v42, %v2204_v3  ;;  %v2431_v43 = vpop.f32.mrb[97].mxu1  ;;  %v2231_v44 = vpop.f32.mrb[107].mxu0  ;;  %v1503_v40 = vld [vmem:[#allocation3 + $0xc8] sm:$0xff] }
 0x221   : > { %v2524_v45 = vadd.f32 %v2430_v17, %v1494_v41 }
 0x222   : > { %v2434_v13 = vpop.f32.mrb[98].mxu1  ;;  %v2234_v46 = vpop.f32.mrb[108].mxu0 }
 0x223   : > { %2556 = vst.msk [vmem:[#allocation3 + $0x80] sm:$0xff] %vm1445_vm11, %v2524_v45  ;;  %v2435_v9 = vadd.f32 %v2434_v13, %v2209_v23  ;;  %v2436_v47 = vpop.f32.mrb[99].mxu1  ;;  %v2236_v50 = vpop.f32.mrb[109].mxu0  ;;  %v1504_v45 = vld [vmem:[#allocation3 + $0xd0] sm:$0xff] }
 0x225   : > { %v2525_v52 = vadd.f32 %v2435_v9, %v1495_v7 }
 0x226   : > { %v2439_v55 = vpop.f32.mrb[100].mxu1  ;;  %v2239_v57 = vpop.f32.mrb[110].mxu0 }
 0x227   : > { %2557 = vst.msk [vmem:[#allocation3 + $0x88] sm:$0xff] %vm1445_vm11, %v2525_v52  ;;  %v2440_v58 = vadd.f32 %v2439_v55, %v2214_v22  ;;  %v2441_v35 = vpop.f32.mrb[101].mxu1  ;;  %v2241_v0 = vpop.f32.mrb[111].mxu0  ;;  %v1505_v52 = vld [vmem:[#allocation3 + $0xd8] sm:$0xff] }
 0x228   : > { %v1506_v35 = vld [vmem:[#allocation3 + $0xe0] sm:$0xff] }
 0x229   : > { %v2526_v2 = vadd.f32 %v2440_v58, %v1496_v48 }
 0x22a   : > { %v2444_v19 = vpop.f32.mrb[102].mxu1  ;;  %v2244_v8 = vpop.f32.mrb[112].mxu0 }
 0x22b   : > { %2558 = vst.msk [vmem:[#allocation3 + $0x90] sm:$0xff] %vm1445_vm11, %v2526_v2  ;;  %v2445_v59 = vadd.f32 %v2444_v19, %v2219_v31  ;;  %v2446_v12 = vpop.f32.mrb[103].mxu1  ;;  %v2246_v49 = vpop.f32.mrb[113].mxu0 }
 0x22d   : > { %v2527_v20 = vadd.f32 %v2445_v59, %v1497_v56 }
 0x22e   : > { %v2449_v16 = vpop.f32.mrb[104].mxu1  ;;  %v2249_v5 = vpop.f32.mrb[114].mxu0 }
 0x22f   : > { %2559 = vst.msk [vmem:[#allocation3 + $0x98] sm:$0xff] %vm1445_vm11, %v2527_v20  ;;  %v2450_v3 = vadd.f32 %v2449_v16, %v2224_v18  ;;  %v2451_v61 = vpop.f32.mrb[105].mxu1  ;;  %v2251_v53 = vpop.f32.mrb[115].mxu0 }
 0x230   : > { %v1509_v53 = vld [vmem:[#allocation3 + $0xf8] sm:$0xff] }
 0x231   : > { %v2528_v28 = vadd.f32 %v2450_v3, %v1498_v60  ;;  %v1508_v60 = vld [vmem:[#allocation3 + $0xf0] sm:$0xff] }
 0x232   : > { %v2454_v30 = vpop.f32.mrb[106].mxu1  ;;  %v2254_v21 = vpop.f32.mrb[116].mxu0 }
 0x233   : > { %2560 = vst.msk [vmem:[#allocation3 + $0xa0] sm:$0xff] %vm1445_vm11, %v2528_v28  ;;  %v2455_v23 = vadd.f32 %v2454_v30, %v2229_v4  ;;  %v2456_v62 = vpop.f32.mrb[107].mxu1  ;;  %v2256_v24 = vpop.f32.mrb[117].mxu0 }
 0x235   : > { %v2529_v33 = vadd.f32 %v2455_v23, %v1499_v11 }
 0x236   : > { %v2459_v25 = vpop.f32.mrb[108].mxu1  ;;  %v2259_v26 = vpop.f32.mrb[118].mxu0 }
 0x237   : > { %2561 = vst.msk [vmem:[#allocation3 + $0xa8] sm:$0xff] %vm1445_vm11, %v2529_v33  ;;  %v2460_v22 = vadd.f32 %v2459_v25, %v2234_v46  ;;  %v2461_v63 = vpop.f32.mrb[109].mxu1  ;;  %v2261_v15 = vpop.f32.mrb[119].mxu0 }
 0x239   : > { %v2530_v51 = vadd.f32 %v2460_v22, %v1500_v54 }
 0x23a   : > { %v2464_v29 = vpop.f32.mrb[110].mxu1  ;;  %v2264_v6 = vpop.f32.mrb[120].mxu0 }
 0x23b   : > { %2562 = vst.msk [vmem:[#allocation3 + $0xb0] sm:$0xff] %vm1445_vm11, %v2530_v51  ;;  %v2465_v31 = vadd.f32 %v2464_v29, %v2239_v57  ;;  %v2466_v1 = vpop.f32.mrb[111].mxu1  ;;  %v2266_v32 = vpop.f32.mrb[121].mxu0 }
 0x23d   : > { %v2531_v34 = vadd.f32 %v2465_v31, %v1501_v27 }
 0x23e   : > { %v2469_v14 = vpop.f32.mrb[112].mxu1  ;;  %v2269_v36 = vpop.f32.mrb[122].mxu0 }
 0x23f   : > { %2563 = vst.msk [vmem:[#allocation3 + $0xb8] sm:$0xff] %vm1445_vm11, %v2531_v34  ;;  %v2470_v18 = vadd.f32 %v2469_v14, %v2244_v8  ;;  %v2471_v37 = vpop.f32.mrb[113].mxu1  ;;  %v2271_v38 = vpop.f32.mrb[123].mxu0  ;;  %v1507_v8 = vld [vmem:[#allocation3 + $0xe8] sm:$0xff] }
 0x241   : > { %v2532_v39 = vadd.f32 %v2470_v18, %v1502_v10 }
 0x242   : > { %v2474_v41 = vpop.f32.mrb[114].mxu1  ;;  %v2274_v42 = vpop.f32.mrb[124].mxu0 }
 0x243   : > { %2564 = vst.msk [vmem:[#allocation3 + $0xc0] sm:$0xff] %vm1445_vm11, %v2532_v39  ;;  %v2475_v4 = vadd.f32 %v2474_v41, %v2249_v5  ;;  %v2476_v17 = vpop.f32.mrb[115].mxu1  ;;  %v2276_v43 = vpop.f32.mrb[125].mxu0 }
 0x245   : > { %v2533_v44 = vadd.f32 %v2475_v4, %v1503_v40 }
 0x246   : > { %v2479_v7 = vpop.f32.mrb[116].mxu1  ;;  %v2279_v13 = vpop.f32.mrb[126].mxu0 }
 0x247   : > { %2565 = vst.msk [vmem:[#allocation3 + $0xc8] sm:$0xff] %vm1445_vm11, %v2533_v44  ;;  %v2480_v46 = vadd.f32 %v2479_v7, %v2254_v21  ;;  %v2481_v9 = vpop.f32.mrb[117].mxu1  ;;  %v2281_v47 = vpop.f32.mrb[127].mxu0 }
 0x249   : > { %v2534_v50 = vadd.f32 %v2480_v46, %v1504_v45 }
 0x24a   : > { %v2484_v48 = vpop.f32.mrb[118].mxu1 }
 0x24b   : > { %2566 = vst.msk [vmem:[#allocation3 + $0xd0] sm:$0xff] %vm1445_vm11, %v2534_v50  ;;  %v2485_v55 = vadd.f32 %v2484_v48, %v2259_v26  ;;  %v2486_v57 = vpop.f32.mrb[119].mxu1 }
 0x24d   : > { %v2535_v58 = vadd.f32 %v2485_v55, %v1505_v52 }
 0x24e   : > { %v2489_v0 = vpop.f32.mrb[120].mxu1 }
 0x24f   : > { %2567 = vst.msk [vmem:[#allocation3 + $0xd8] sm:$0xff] %vm1445_vm11, %v2535_v58  ;;  %v2490_v2 = vadd.f32 %v2489_v0, %v2264_v6  ;;  %v2491_v56 = vpop.f32.mrb[121].mxu1 }
 0x251   : > { %v2536_v19 = vadd.f32 %v2490_v2, %v1506_v35 }
 0x252   : > { %v2494_v59 = vpop.f32.mrb[122].mxu1 }
 0x253   : > { %2568 = vst.msk [vmem:[#allocation3 + $0xe0] sm:$0xff] %vm1445_vm11, %v2536_v19  ;;  %v2495_v12 = vadd.f32 %v2494_v59, %v2269_v36  ;;  %v2496_v49 = vpop.f32.mrb[123].mxu1 }
 0x255   : > { %v2537_v20 = vadd.f32 %v2495_v12, %v1507_v8 }
 0x256   : > { %v2499_v16 = vpop.f32.mrb[124].mxu1 }
 0x257   : > { %2569 = vst.msk [vmem:[#allocation3 + $0xe8] sm:$0xff] %vm1445_vm11, %v2537_v20  ;;  %v2500_v5 = vadd.f32 %v2499_v16, %v2274_v42  ;;  %v2501_v3 = vpop.f32.mrb[125].mxu1 }
 0x259   : > { %v2538_v61 = vadd.f32 %v2500_v5, %v1508_v60  ;;  %2575 = sbr.rel (%p4776_p8) target bundleno = 1259 (0x4eb), region = 32 }
 0x25a   : > { %v2504_v28 = vpop.f32.mrb[126].mxu1 }
 0x25b   : > { %2570 = vst.msk [vmem:[#allocation3 + $0xf0] sm:$0xff] %vm1445_vm11, %v2538_v61  ;;  %v2505_v11 = vadd.f32 %v2504_v28, %v2279_v13  ;;  %v2506_v30 = vpop.f32.mrb[127].mxu1 }
 0x25d   : > { %v2539_v21 = vadd.f32 %v2505_v11, %v1509_v53 }
 0x25f   : > { %2571 = vst.msk [vmem:[#allocation3 + $0xf8] sm:$0xff] %vm1445_vm11, %v2539_v21 }
 0x260   : > { %v6535_v23 = vld [vmem:[#allocation3 + $0x10] sm:$0xff]  ;;  %v6537_v62 = vld [vmem:[#allocation3] sm:$0xff]  ;;  %v6539_v24 = vld [vmem:[#allocation3 + $0x18] sm:$0xff]  ;;  %s5127_s23 = smov 2   ;;  %s5128_s24 = smov 127   ;;  %vm2896_vm11 = vcmask 23568  }
 0x261   : > { %v3407_v33 = vadd.f32 1e-09, %v6535_v23  ;;  %v3405_v54 = vadd.f32 1e-09, %v6537_v62  ;;  %v6543_v25 = vld [vmem:[#allocation3 + $0x8] sm:$0xff]  ;;  %v6551_v63 = vld [vmem:[#allocation3 + $0x20] sm:$0xff] }
 0x262   : > { %v3408_v26 = vadd.f32 1e-09, %v6539_v24  ;;  %v3406_v22 = vadd.f32 1e-09, %v6543_v25  ;;  %v3409_v15 = vadd.f32 1e-09, %v6551_v63 }
 0x263   : > { %3473 = vrot.lane.b32.xlu1 %v3407_v33, %s5127_s23  ;;  %3469 = vrot.lane.b32.xlu0 %v3405_v54, %s5127_s23  ;;  %v6558_v51 = vld [vmem:[#allocation3 + $0x28] sm:$0xff]  ;;  %v6564_v29 = vld [vmem:[#allocation3 + $0x30] sm:$0xff]  ;;  %v6572_v1 = vld [vmem:[#allocation2] sm:$0xff]  ;;  %vm3297_vm8 = vcmask 7168   ;;  %vm2966_vm12 = vcmask 31768  }
 0x264   : > { %v3410_v27 = vadd.f32 1e-09, %v6558_v51  ;;  %v3411_v6 = vadd.f32 1e-09, %v6564_v29  ;;  %v6570_v31 = vld [vmem:[#allocation2 + $0x8] sm:$0xff]  ;;  %v6579_v10 = vld [vmem:[#allocation3 + $0x38] sm:$0xff] }
 0x265   : > { %v2609_v32 = vadd.f32 1e-09, %v6570_v31  ;;  %v2608_v34 = vadd.f32 1e-09, %v6572_v1  ;;  %v3412_v14 = vadd.f32 1e-09, %v6579_v10 }
 0x266   : > { %v6584_v36 = vld [vmem:[#allocation3 + $0x40] sm:$0xff]  ;;  %v6586_v18 = vld [vmem:[#allocation2 + $0x10] sm:$0xff]  ;;  %v6593_v39 = vld [vmem:[#allocation2 + $0x18] sm:$0xff] }
 0x267   : > { %3475 = vrot.lane.b32.xlu1 %v3408_v26, %s5127_s23  ;;  %3471 = vrot.lane.b32.xlu0 %v3406_v22, %s5127_s23  ;;  %v3413_v37 = vadd.f32 1e-09, %v6584_v36  ;;  %v2610_v38 = vadd.f32 1e-09, %v6586_v18  ;;  %v2611_v40 = vadd.f32 1e-09, %v6593_v39 }
 0x268   : > { %v6601_v41 = vld [vmem:[#allocation3 + $0x48] sm:$0xff]  ;;  %v6608_v4 = vld [vmem:[#allocation2 + $0x20] sm:$0xff]  ;;  %v6614_v43 = vld [vmem:[#allocation3 + $0x50] sm:$0xff] }
 0x269   : > { %v3414_v42 = vadd.f32 1e-09, %v6601_v41  ;;  %v2612_v17 = vadd.f32 1e-09, %v6608_v4  ;;  %v3415_v44 = vadd.f32 1e-09, %v6614_v43 }
 0x26a   : > { %v6620_v45 = vld [vmem:[#allocation2 + $0x28] sm:$0xff]  ;;  %v6626_v13 = vld [vmem:[#allocation3 + $0x58] sm:$0xff]  ;;  %v6632_v9 = vld [vmem:[#allocation2 + $0x30] sm:$0xff] }
 0x26b   : > { %3870 = vrot.lane.b32.xlu1 %v6543_v25, %s5128_s24  ;;  %3868 = vrot.lane.b32.xlu0 %v6537_v62, %s5128_s24  ;;  %v2613_v7 = vadd.f32 1e-09, %v6620_v45  ;;  %v3416_v46 = vadd.f32 1e-09, %v6626_v13  ;;  %7570 = vst [vmem:[#allocation4_spill] sm:$0xff] %v6632_v9  ;;  %v6638_v50 = vld [vmem:[#allocation3 + $0x60] sm:$0xff] }
 0x26c   : > { %v2614_v47 = vadd.f32 1e-09, %v6632_v9  ;;  %7571 = vst [vmem:[#allocation5_spill] sm:$0xff] %v6638_v50  ;;  %v3417_v52 = vadd.f32 1e-09, %v6638_v50  ;;  %v6644_v48 = vld [vmem:[#allocation2 + $0x38] sm:$0xff] }
 0x26d   : > { %7572 = vst [vmem:[#allocation6_spill] sm:$0xff] %v6644_v48  ;;  %v2615_v55 = vadd.f32 1e-09, %v6644_v48  ;;  %v6650_v57 = vld [vmem:[#allocation3 + $0x68] sm:$0xff]  ;;  %v6656_v35 = vld [vmem:[#allocation2 + $0x40] sm:$0xff]  ;;  %v6662_v2 = vld [vmem:[#allocation3 + $0x70] sm:$0xff] }
 0x26e   : > { %7573 = vst [vmem:[#allocation7_spill] sm:$0xff] %v6650_v57  ;;  %v3418_v58 = vadd.f32 1e-09, %v6650_v57  ;;  %7574 = vst [vmem:[#allocation8_spill] sm:$0xff] %v6656_v35  ;;  %v2616_v0 = vadd.f32 1e-09, %v6656_v35 }
 0x26f   : > { %3872 = vrot.lane.b32.xlu1 %v6535_v23, %s5128_s24  ;;  %3477 = vrot.lane.b32.xlu0 %v3409_v15, %s5127_s23  ;;  %7575 = vst [vmem:[#allocation9_spill] sm:$0xff] %v6662_v2  ;;  %v3419_v56 = vadd.f32 1e-09, %v6662_v2  ;;  %v6668_v19 = vld [vmem:[#allocation2 + $0x48] sm:$0xff]  ;;  %v3388_v59 = vld [vmem:[#allocation3 + $0x78] sm:$0xff]  ;;  %v2586_v49 = vld [vmem:[#allocation2 + $0x50] sm:$0xff] }
 0x270   : > { %7576 = vst [vmem:[#allocation10_spill] sm:$0xff] %v6668_v19  ;;  %v2617_v8 = vadd.f32 1e-09, %v6668_v19  ;;  %v3420_v12 = vadd.f32 1e-09, %v3388_v59  ;;  %v3389_v60 = vld [vmem:[#allocation3 + $0x80] sm:$0xff] }
 0x271   : > { %v2618_v20 = vadd.f32 1e-09, %v2586_v49  ;;  %v3421_v16 = vadd.f32 1e-09, %v3389_v60  ;;  %v2587_v5 = vld [vmem:[#allocation2 + $0x58] sm:$0xff]  ;;  %v3390_v61 = vld [vmem:[#allocation3 + $0x88] sm:$0xff] }
 0x272   : > { %v2619_v3 = vadd.f32 1e-09, %v2587_v5  ;;  %v3422_v53 = vadd.f32 1e-09, %v3390_v61  ;;  %v2588_v28 = vld [vmem:[#allocation2 + $0x60] sm:$0xff]  ;;  %v3391_v30 = vld [vmem:[#allocation3 + $0x90] sm:$0xff] }
 0x273   : > { %3874 = vrot.lane.b32.xlu1 %v6539_v24, %s5128_s24  ;;  %3479 = vrot.lane.b32.xlu0 %v3410_v27, %s5127_s23  ;;  %v2620_v11 = vadd.f32 1e-09, %v2588_v28  ;;  %v3423_v21 = vadd.f32 1e-09, %v3391_v30  ;;  %v2589_v33 = vld [vmem:[#allocation2 + $0x68] sm:$0xff]  ;;  %v6695_v15 = vld [vmem:[#allocation3 + $0x98] sm:$0xff] }
 0x274   : > { %v2621_v22 = vadd.f32 1e-09, %v2589_v33 }
 0x277   : > { %3876 = vrot.lane.b32.xlu1 %v6551_v63, %s5128_s24  ;;  %3481 = vrot.lane.b32.xlu0 %v3411_v6, %s5127_s23 }
 0x27b   : > { %2674 = vrot.lane.b32.xlu1 %v2609_v32, %s5127_s23  ;;  %2672 = vrot.lane.b32.xlu0 %v2608_v34, %s5127_s23  ;;  %v3424_v32 = vadd.f32 1e-09, %v6695_v15  ;;  %v6700_v34 = vld [vmem:[#allocation2 + $0x70] sm:$0xff] }
 0x27f   : > { %3878 = vrot.lane.b32.xlu1 %v6558_v51, %s5128_s24  ;;  %3483 = vrot.lane.b32.xlu0 %v3412_v14, %s5127_s23 }
 0x283   : > { %3485 = vrot.lane.b32.xlu1 %v3413_v37, %s5127_s23  ;;  %2676 = vrot.lane.b32.xlu0 %v2610_v38, %s5127_s23  ;;  %v2622_v38 = vadd.f32 1e-09, %v6700_v34 }
 0x287   : > { %2678 = vrot.lane.b32.xlu1 %v2611_v40, %s5127_s23  ;;  %3880 = vrot.lane.b32.xlu0 %v6564_v29, %s5128_s24 }
 0x28b   : > { %3075 = vrot.lane.b32.xlu1 %v6570_v31, %s5128_s24  ;;  %3073 = vrot.lane.b32.xlu0 %v6572_v1, %s5128_s24 }
 0x28f   : > { %3882 = vrot.lane.b32.xlu1 %v6579_v10, %s5128_s24  ;;  %3487 = vrot.lane.b32.xlu0 %v3414_v42, %s5127_s23  ;;  %v6707_v42 = vld [vmem:[#allocation3 + $0xa0] sm:$0xff] }
 0x293   : > { %3077 = vrot.lane.b32.xlu1 %v6586_v18, %s5128_s24  ;;  %2680 = vrot.lane.b32.xlu0 %v2612_v17, %s5127_s23 }
 0x297   : > { %3884 = vrot.lane.b32.xlu1 %v6584_v36, %s5128_s24  ;;  %3489 = vrot.lane.b32.xlu0 %v3415_v44, %s5127_s23 }
 0x29b   : > { %3079 = vrot.lane.b32.xlu1 %v6593_v39, %s5128_s24  ;;  %2682 = vrot.lane.b32.xlu0 %v2613_v7, %s5127_s23 }
 0x29f   : > { %3886 = vrot.lane.b32.xlu1 %v6601_v41, %s5128_s24  ;;  %3491 = vrot.lane.b32.xlu0 %v3416_v46, %s5127_s23 }
 0x2a3   : > { %3081 = vrot.lane.b32.xlu1 %v6608_v4, %s5128_s24  ;;  %2684 = vrot.lane.b32.xlu0 %v2614_v47, %s5127_s23 }
 0x2a7   : > { %3888 = vrot.lane.b32.xlu1 %v6614_v43, %s5128_s24  ;;  %3493 = vrot.lane.b32.xlu0 %v3417_v52, %s5127_s23  ;;  %v3425_v52 = vadd.f32 1e-09, %v6707_v42 }
 0x2ab   : > { %3083 = vrot.lane.b32.xlu1 %v6620_v45, %s5128_s24  ;;  %2686 = vrot.lane.b32.xlu0 %v2615_v55, %s5127_s23 }
 0x2af   : > { %3890 = vrot.lane.b32.xlu1 %v6626_v13, %s5128_s24  ;;  %3495 = vrot.lane.b32.xlu0 %v3418_v58, %s5127_s23 }
 0x2b3   : > { %3085 = vrot.lane.b32.xlu1 %v6632_v9, %s5128_s24  ;;  %2688 = vrot.lane.b32.xlu0 %v2616_v0, %s5127_s23  ;;  %v6716_v0 = vld [vmem:[#allocation2 + $0x78] sm:$0xff] }
 0x2b7   : > { %3892 = vrot.lane.b32.xlu1 %v6638_v50, %s5128_s24  ;;  %3497 = vrot.lane.b32.xlu0 %v3419_v56, %s5127_s23 }
 0x2bb   : > { %3087 = vrot.lane.b32.xlu1 %v6644_v48, %s5128_s24  ;;  %2690 = vrot.lane.b32.xlu0 %v2617_v8, %s5127_s23  ;;  %v6838_v48 = vld [vmem:[#allocation2 + $0xb0] sm:$0xff] }
 0x2bc   : > { %7581 = vst [vmem:[#allocation15_spill] sm:$0xff] %v6838_v48 }
 0x2bf   : > { %3894 = vrot.lane.b32.xlu1 %v6650_v57, %s5128_s24  ;;  %3499 = vrot.lane.b32.xlu0 %v3420_v12, %s5127_s23 }
 0x2c3   : > { %3089 = vrot.lane.b32.xlu1 %v6656_v35, %s5128_s24  ;;  %2692 = vrot.lane.b32.xlu0 %v2618_v20, %s5127_s23 }
 0x2c7   : > { %3896 = vrot.lane.b32.xlu1 %v6662_v2, %s5128_s24  ;;  %3501 = vrot.lane.b32.xlu0 %v3421_v16, %s5127_s23 }
 0x2cb   : > { %3091 = vrot.lane.b32.xlu1 %v6668_v19, %s5128_s24  ;;  %2694 = vrot.lane.b32.xlu0 %v2619_v3, %s5127_s23 }
 0x2cf   : > { %3898 = vrot.lane.b32.xlu1 %v3388_v59, %s5128_s24  ;;  %3503 = vrot.lane.b32.xlu0 %v3422_v53, %s5127_s23 }
 0x2d3   : > { %3093 = vrot.lane.b32.xlu1 %v2586_v49, %s5128_s24  ;;  %2696 = vrot.lane.b32.xlu0 %v2620_v11, %s5127_s23 }
 0x2d5   : > { %v3474_v54 = vpop.permute.xlu1 %3473  ;;  %v3470_v26 = vpop.permute.xlu0 %3469 }
 0x2d6   : > { %4908 = vrcp.f32 %v3474_v54 }
 0x2d7   : > { %4910 = vrcp.f32 %v3470_v26  ;;  %3900 = vrot.lane.b32.xlu1 %v3389_v60, %s5128_s24  ;;  %3505 = vrot.lane.b32.xlu0 %v3423_v21, %s5127_s23  ;;  %v2623_v60 = vadd.f32 1e-09, %v6716_v0 }
 0x2d9   : > { %v3476_v27 = vpop.permute.xlu1 %3475  ;;  %v3472_v6 = vpop.permute.xlu0 %3471 }
 0x2da   : > { %4912 = vrcp.f32 %v3476_v27  ;;  %v6744_v27 = vld [vmem:[#allocation2 + $0x80] sm:$0xff] }
 0x2db   : > { %4914 = vrcp.f32 %v3472_v6  ;;  %3095 = vrot.lane.b32.xlu1 %v2587_v5, %s5128_s24  ;;  %2698 = vrot.lane.b32.xlu0 %v2621_v22, %s5127_s23 }
 0x2dd   : > { %v3871_v14 = vpop.permute.xlu1 %3870  ;;  %v6702_v37 = vpop.permute.xlu0 %3868 }
 0x2df   : > { %3902 = vrot.lane.b32.xlu1 %v3390_v61, %s5128_s24  ;;  %3507 = vrot.lane.b32.xlu0 %v3424_v32, %s5127_s23  ;;  %v6727_v61 = vld [vmem:[#allocation3 + $0xa8] sm:$0xff] }
 0x2e0   : > { %v4909_v40 = vpop.eup %4908 }
 0x2e1   : > { %v4911_v17 = vpop.eup %4910  ;;  %v6709_v44 = vpop.permute.xlu1 %3872  ;;  %v3570_v46 = vmul.f32 %v4909_v40, %v6535_v23 }
 0x2e2   : > { %v3478_v7 = vpop.permute.xlu0 %3477  ;;  %v3566_v47 = vmul.f32 %v4911_v17, %v6537_v62 }
 0x2e3   : > { %4916 = vrcp.f32 %v3478_v7  ;;  %3097 = vrot.lane.b32.xlu1 %v2588_v28, %s5128_s24  ;;  %2700 = vrot.lane.b32.xlu0 %v2622_v38, %s5127_s23  ;;  %v3631_v49 = vmul.f32 0.5, %v3570_v46  ;;  %v2624_v46 = vadd.f32 1e-09, %v6744_v27 }
 0x2e4   : > { %v4913_v55 = vpop.eup %4912  ;;  %v3629_v58 = vmul.f32 0.5, %v3566_v47  ;;  %v6753_v47 = vld [vmem:[#allocation3 + $0xb0] sm:$0xff] }
 0x2e5   : > { %v4915_v56 = vpop.eup %4914  ;;  %v3572_v8 = vmul.f32 %v4913_v55, %v6539_v24  ;;  %v6719_v59 = vpop.permute.xlu1 %3874  ;;  %v6731_v11 = vmul.f32 %v3631_v49, %v3631_v49  ;;  %v3965_v55 = vadd.f32 %v3871_v14, %v6543_v25 }
 0x2e6   : > { %v3480_v12 = vpop.permute.xlu0 %3479  ;;  %v3568_v20 = vmul.f32 %v4915_v56, %v6543_v25  ;;  %v6725_v16 = vmul.f32 %v3629_v58, %v3629_v58  ;;  %v6758_v56 = vld [vmem:[#allocation2 + $0x88] sm:$0xff]  ;;  %v3427_v25 = vadd.f32 1e-09, %v6753_v47  ;;  %v3967_v19 = vadd.f32 %v6719_v59, %v6539_v24 }
 0x2e7   : > { %3904 = vrot.lane.b32.xlu1 %v3391_v30, %s5128_s24  ;;  %3509 = vrot.lane.b32.xlu0 %v3425_v52, %s5127_s23  ;;  %v3632_v5 = vmul.f32 0.5, %v3572_v8  ;;  %4918 = vrcp.f32 %v3480_v12  ;;  %v3426_v30 = vadd.f32 1e-09, %v6727_v61  ;;  %v6760_v8 = vld [vmem:[#allocation3 + $0xb8] sm:$0xff]  ;;  %v3964_v12 = vadd.f32 %v6702_v37, %v6537_v62 }
 0x2e8   : > { %v3630_v3 = vmul.f32 0.5, %v3568_v20  ;;  %v3693_v54 = vsel %vm2896_vm11, %v6725_v16, 0.0  ;;  %v2625_v62 = vadd.f32 1e-09, %v6758_v56  ;;  %v6776_v37 = vadd.f32 1e-09, %v6760_v8 }
 0x2e9   : > { %v6729_v53 = vpop.permute.xlu1 %3876  ;;  %v6740_v26 = vmul.f32 %v3632_v5, %v3632_v5  ;;  %vm3997_vm9 = vcmp.gt.f32.partialorder %v3965_v55, 0.0  ;;  %vm3996_vm0 = vcmp.gt.f32.partialorder %v3964_v12, 0.0  ;;  %vm3999_vm13 = vcmp.gt.f32.partialorder %v3967_v19, 0.0 }
 0x2ea   : > { %v3482_v28 = vpop.permute.xlu0 %3481  ;;  %v6733_v21 = vmul.f32 %v3630_v3, %v3630_v3  ;;  %v6778_v3 = vld [vmem:[#allocation3 + $0xc0] sm:$0xff] }
 0x2eb   : > { %4920 = vrcp.f32 %v3482_v28  ;;  %3099 = vrot.lane.b32.xlu1 %v2589_v33, %s5128_s24  ;;  %2702 = vrot.lane.b32.xlu0 %v2623_v60, %s5127_s23  ;;  %v3696_v33 = vsel %vm2896_vm11, %v6731_v11, 0.0  ;;  %v3698_v52 = vsel %vm2896_vm11, %v6740_v26, 0.0  ;;  %v6766_v60 = vld [vmem:[#allocation2 + $0x90] sm:$0xff]  ;;  %v6780_v28 = vld [vmem:[#allocation2 + $0x98] sm:$0xff] }
 0x2ec   : > { %v3694_v22 = vsel %vm2896_vm11, %v6733_v21, 0.0 }
 0x2ed   : > { %v4917_v6 = vpop.eup %4916  ;;  %v3695_v32 = vadd.f32 %v3694_v22, %v3693_v54  ;;  %v2675_v38 = vpop.permute.xlu1 %2674 }
 0x2ee   : > { %v2673_v40 = vpop.permute.xlu0 %2672  ;;  %v3574_v17 = vmul.f32 %v4917_v6, %v6551_v63  ;;  %4922 = vrcp.f32 %v2675_v38  ;;  %v6788_v6 = vld [vmem:[#allocation3 + $0xc8] sm:$0xff]  ;;  %v3966_v38 = vadd.f32 %v6709_v44, %v6535_v23 }
 0x2ef   : > { %v3697_v7 = vadd.f32 %v3696_v33, %v3695_v32  ;;  %4924 = vrcp.f32 %v2673_v40  ;;  %3906 = vrot.lane.b32.xlu1 %v6695_v15, %s5128_s24  ;;  %3511 = vrot.lane.b32.xlu0 %v3426_v30, %s5127_s23  ;;  %v6790_v32 = vld [vmem:[#allocation2 + $0xa0] sm:$0xff]  ;;  %v6807_v23 = vadd.f32 1e-09, %v6788_v6 }
 0x2f0   : > { %v3633_v58 = vmul.f32 0.5, %v3574_v17  ;;  %7577 = vst [vmem:[#allocation11_spill] sm:$0xff] %v6790_v32  ;;  %v6810_v44 = vadd.f32 1e-09, %v6790_v32  ;;  %vm3998_vm15 = vcmp.gt.f32.partialorder %v3966_v38, 0.0  ;;  %v3968_v38 = vadd.f32 %v6729_v53, %v6551_v63 }
 0x2f1   : > { %v3699_v15 = vadd.f32 %v3698_v52, %v3697_v7  ;;  %v6764_v49 = vpop.permute.xlu1 %3878  ;;  %v4919_v14 = vpop.eup %4918 }
 0x2f2   : > { %v3484_v20 = vpop.permute.xlu0 %3483  ;;  %v6768_v5 = vmul.f32 %v3633_v58, %v3633_v58  ;;  %v3576_v22 = vmul.f32 %v4919_v14, %v6558_v51  ;;  %v6798_v58 = vadd.f32 1e-09, %v6778_v3  ;;  %vm4000_vm10 = vcmp.gt.f32.partialorder %v3968_v38, 0.0 }
 0x2f3   : > { %4926 = vrcp.f32 %v3484_v20  ;;  %3101 = vrot.lane.b32.xlu1 %v6700_v34, %s5128_s24  ;;  %2704 = vrot.lane.b32.xlu0 %v2624_v46, %s5127_s23  ;;  %v6786_v34 = vadd.f32 1e-09, %v6766_v60  ;;  %v6795_v46 = vld [vmem:[#allocation3 + $0xd0] sm:$0xff]  ;;  %v6801_v20 = vadd.f32 1e-09, %v6780_v28  ;;  %v3969_v19 = vadd.f32 %v6764_v49, %v6558_v51 }
 0x2f4   : > { %v3700_v54 = vsel %vm2896_vm11, %v6768_v5, 0.0  ;;  %7578 = vst [vmem:[#allocation12_spill] sm:$0xff] %v6795_v46  ;;  %v3634_v52 = vmul.f32 0.5, %v3576_v22  ;;  %v3767_v49 = vsel %vm2966_vm12, %v6740_v26, 0.0 }
 0x2f5   : > { %v4921_v30 = vpop.eup %4920  ;;  %v3701_v40 = vadd.f32 %v3700_v54, %v3699_v15  ;;  %v3486_v17 = vpop.permute.xlu1 %3485  ;;  %v6812_v15 = vld [vmem:[#allocation2 + $0xa8] sm:$0xff]  ;;  %v7538_v54 = vmov 0.0   ;;  %vm4001_vm3 = vcmp.gt.f32.partialorder %v3969_v19, 0.0 }
 0x2f6   : > { %v3578_v33 = vmul.f32 %v4921_v30, %v6564_v29  ;;  %v2677_v7 = vpop.permute.xlu0 %2676  ;;  %4928 = vrcp.f32 %v3486_v17  ;;  %7579 = vst [vmem:[#allocation13_spill] sm:$0xff] %v6812_v15  ;;  %v4810_v22 = vsel %vm3997_vm9, 1.0, %v7538_v54  ;;  %v6818_v17 = vmul.f32 %v3634_v52, %v3634_v52 }
 0x2f7   : > { %4930 = vrcp.f32 %v2677_v7  ;;  %3908 = vrot.lane.b32.xlu1 %v6707_v42, %s5128_s24  ;;  %3513 = vrot.lane.b32.xlu0 %v3427_v25, %s5127_s23  ;;  %v6821_v42 = vadd.f32 1e-09, %v6795_v46  ;;  %v6823_v25 = vld [vmem:[#allocation3 + $0xd8] sm:$0xff]  ;;  %v4093_v24 = vsel %vm3297_vm8, %v4810_v22, 0.0 }
 0x2f8   : > { %v3635_v14 = vmul.f32 0.5, %v3578_v33  ;;  %v4923_v30 = vpop.eup %4922  ;;  %v4809_v33 = vsel %vm3996_vm0, 1.0, %v7538_v54  ;;  %7580 = vst [vmem:[#allocation14_spill] sm:$0xff] %v6823_v25  ;;  %v3702_v12 = vsel %vm2896_vm11, %v6818_v17, 0.0  ;;  %v6836_v54 = vadd.f32 1e-09, %v6812_v15 }
 0x2f9   : > { %v4925_v7 = vpop.eup %4924  ;;  %v2771_v55 = vmul.f32 %v4923_v30, %v6570_v31  ;;  %v2679_v35 = vpop.permute.xlu1 %2678  ;;  %v3703_v59 = vadd.f32 %v3702_v12, %v3701_v40  ;;  %v6847_v30 = vadd.f32 1e-09, %v6823_v25  ;;  %v7582_v15 = vmov 0.0   ;;  %v6852_v40 = vld [vmem:[#allocation3 + $0xe0] sm:$0xff] }
 0x2fa   : > { %v6827_v2 = vmul.f32 %v3635_v14, %v3635_v14  ;;  %v6830_v57 = vpop.permute.xlu0 %3880  ;;  %v2769_v52 = vmul.f32 %v4925_v7, %v6572_v1  ;;  %4932 = vrcp.f32 %v2679_v35  ;;  %v4092_v7 = vsel %vm3297_vm8, %v4809_v33, 0.0  ;;  %7583 = vst [vmem:[#allocation16_spill] sm:$0xff] %v6852_v40 }
 0x2fb   : > { %3103 = vrot.lane.b32.xlu1 %v6716_v0, %s5128_s24  ;;  %2706 = vrot.lane.b32.xlu0 %v2625_v62, %s5127_s23  ;;  %v4811_v46 = vsel %vm3998_vm15, 1.0, %v7582_v15  ;;  %v2833_v50 = vmul.f32 0.5, %v2771_v55  ;;  %v6856_v62 = vadd.f32 1e-09, %v6838_v48  ;;  %v3763_v25 = vsel %vm2966_vm12, %v6733_v21, 0.0  ;;  %v6874_v21 = vld [vmem:[#allocation2 + $0xb8] sm:$0xff] }
 0x2fc   : > { %v3704_v14 = vsel %vm2896_vm11, %v6827_v2, 0.0  ;;  %v2832_v22 = vmul.f32 0.5, %v2769_v52  ;;  %v4094_v52 = vadd.f32 %v4093_v24, %v4092_v7  ;;  %v4812_v53 = vsel %vm3999_vm13, 1.0, %v7582_v15 }
 0x2fd   : > { %v4927_v35 = vpop.eup %4926  ;;  %v3705_v12 = vadd.f32 %v3704_v14, %v3703_v59  ;;  %v3076_v0 = vpop.permute.xlu1 %3075  ;;  %7584 = vst [vmem:[#allocation17_spill] sm:$0xff] %v6856_v62  ;;  %v6862_v33 = vmul.f32 %v2833_v50, %v2833_v50  ;;  %v4095_v59 = vsel %vm3297_vm8, %v4811_v46, 0.0  ;;  %v3762_v50 = vsel %vm2966_vm12, %v6725_v16, 0.0 }
 0x2fe   : > { %v3580_v32 = vmul.f32 %v4927_v35, %v6579_v10  ;;  %v3074_v9 = vpop.permute.xlu0 %3073  ;;  %v6864_v55 = vmul.f32 %v2832_v22, %v2832_v22  ;;  %v6872_v35 = vadd.f32 1e-09, %v6852_v40  ;;  %v3765_v62 = vsel %vm2966_vm12, %v6731_v11, 0.0 }
 0x2ff   : > { %3910 = vrot.lane.b32.xlu1 %v6727_v61, %s5128_s24  ;;  %3515 = vrot.lane.b32.xlu0 %v6776_v37, %s5127_s23  ;;  %v3764_v37 = vadd.f32 %v3763_v25, %v3762_v50  ;;  %v4096_v25 = vadd.f32 %v4095_v59, %v4094_v52  ;;  %v4813_v52 = vsel %vm4000_vm10, 1.0, %v7582_v15  ;;  %v3970_v26 = vadd.f32 %v6830_v57, %v6564_v29 }
 0x300   : > { %v3636_v14 = vmul.f32 0.5, %v3580_v32  ;;  %7585 = vst [vmem:[#allocation18_spill] sm:$0xff] %v6872_v35  ;;  %v4929_v63 = vpop.eup %4928  ;;  %v2898_v32 = vsel %vm2896_vm11, %v6862_v33, 0.0  ;;  %v2897_v61 = vsel %vm2896_vm11, %v6864_v55, 0.0  ;;  %v6891_v35 = vadd.f32 1e-09, %v6874_v21 }
 0x301   : > { %v4931_v46 = vpop.eup %4930  ;;  %v2899_v24 = vadd.f32 %v2898_v32, %v2897_v61  ;;  %v3582_v22 = vmul.f32 %v4929_v63, %v6584_v36  ;;  %v3883_v40 = vpop.permute.xlu1 %3882  ;;  %v4097_v63 = vsel %vm3297_vm8, %v4812_v53, 0.0  ;;  %v3766_v11 = vadd.f32 %v3765_v62, %v3764_v37 }
 0x302   : > { %v6884_v7 = vmul.f32 %v3636_v14, %v3636_v14  ;;  %v3488_v48 = vpop.permute.xlu0 %3487  ;;  %v2773_v16 = vmul.f32 %v4931_v46, %v6586_v18  ;;  %v3170_v38 = vadd.f32 %v3076_v0, %v6570_v31  ;;  %v3169_v53 = vadd.f32 %v3074_v9, %v6572_v1  ;;  %v6933_v0 = vld [vmem:[#allocation3 + $0xe8] sm:$0xff] }
 0x303   : > { %v3637_v50 = vmul.f32 0.5, %v3582_v22  ;;  %3105 = vrot.lane.b32.xlu1 %v6744_v27, %s5128_s24  ;;  %2708 = vrot.lane.b32.xlu0 %v6786_v34, %s5127_s23  ;;  %4934 = vrcp.f32 %v3488_v48  ;;  %v4098_v37 = vadd.f32 %v4097_v63, %v4096_v25  ;;  %v4099_v19 = vsel %vm3297_vm8, %v4813_v52, 0.0 }
 0x304   : > { %v3706_v14 = vsel %vm2896_vm11, %v6884_v7, 0.0  ;;  %v4933_v51 = vpop.eup %4932  ;;  %v2834_v61 = vmul.f32 0.5, %v2773_v16  ;;  %v3769_v48 = vsel %vm2966_vm12, %v6768_v5, 0.0  ;;  %v4814_v31 = vsel %vm4001_vm3, 1.0, %v7582_v15 }
 0x305   : > { %v3707_v32 = vadd.f32 %v3706_v14, %v3705_v12  ;;  %v6906_v59 = vmul.f32 %v3637_v50, %v3637_v50  ;;  %v2775_v46 = vmul.f32 %v4933_v51, %v6593_v39  ;;  %v6909_v27 = vpop.permute.xlu1 %3077  ;;  %v3771_v25 = vsel %vm2966_vm12, %v6818_v17, 0.0  ;;  %v6949_v51 = vld [vmem:[#allocation2 + $0xc0] sm:$0xff] }
 0x306   : > { %v2681_v22 = vpop.permute.xlu0 %2680  ;;  %v6911_v34 = vmul.f32 %v2834_v61, %v2834_v61  ;;  %vm4002_vm1 = vcmp.gt.f32.partialorder %v3970_v26, 0.0  ;;  %vm3202_vm14 = vcmp.gt.f32.partialorder %v3170_v38, 0.0  ;;  %vm3201_vm2 = vcmp.gt.f32.partialorder %v3169_v53, 0.0 }
 0x307   : > { %v3708_v12 = vsel %vm2896_vm11, %v6906_v59, 0.0  ;;  %v2835_v62 = vmul.f32 0.5, %v2775_v46  ;;  %3912 = vrot.lane.b32.xlu1 %v6753_v47, %s5128_s24  ;;  %3517 = vrot.lane.b32.xlu0 %v6798_v58, %s5127_s23  ;;  %v3768_v58 = vadd.f32 %v3767_v49, %v3766_v11  ;;  %4936 = vrcp.f32 %v2681_v22 }
 0x308   : > { %v6924_v16 = vadd.f32 %v3708_v12, %v3707_v32  ;;  %v2900_v29 = vsel %vm2896_vm11, %v6911_v34, 0.0  ;;  %v6947_v17 = vadd.f32 1e-09, %v6933_v0  ;;  %v4100_v49 = vadd.f32 %v4099_v19, %v4098_v37  ;;  %v6972_v12 = vld [vmem:[#allocation2 + $0xc8] sm:$0xff] }
 0x309   : > { %v2901_v1 = vadd.f32 %v2900_v29, %v2899_v24  ;;  %v6931_v9 = vmul.f32 %v2835_v62, %v2835_v62  ;;  %v3885_v57 = vpop.permute.xlu1 %3884  ;;  %v3770_v5 = vadd.f32 %v3769_v48, %v3768_v58  ;;  %v4101_v24 = vsel %vm3297_vm8, %v4814_v31, 0.0 }
 0x30a   : > { %v3490_v47 = vpop.permute.xlu0 %3489  ;;  %v3773_v63 = vsel %vm2966_vm12, %v6827_v2, 0.0  ;;  %v4815_v32 = vsel %vm4002_vm1, 1.0, %v7582_v15  ;;  %v4778_v52 = vsel %vm3202_vm14, 1.0, %v7582_v15  ;;  %v4777_v46 = vsel %vm3201_vm2, 1.0, %v7582_v15 }
 0x30b   : > { %v2902_v14 = vsel %vm2896_vm11, %v6931_v9, 0.0  ;;  %4938 = vrcp.f32 %v3490_v47  ;;  %3107 = vrot.lane.b32.xlu1 %v6758_v56, %s5128_s24  ;;  %2710 = vrot.lane.b32.xlu0 %v6801_v20, %s5127_s23  ;;  %v3971_v56 = vadd.f32 %v3883_v40, %v6579_v10  ;;  %v3772_v11 = vadd.f32 %v3771_v25, %v3770_v5  ;;  %v6970_v40 = vld [vmem:[#allocation3 + $0xf0] sm:$0xff] }
 0x30c   : > { %v6944_v50 = vadd.f32 %v2902_v14, %v2901_v1  ;;  %v2968_v22 = vsel %vm2966_vm12, %v6862_v33, 0.0  ;;  %v2967_v2 = vsel %vm2966_vm12, %v6864_v55, 0.0  ;;  %v4102_v26 = vadd.f32 %v4101_v24, %v4100_v49 }
 0x30d   : > { %v3080_v61 = vpop.permute.xlu1 %3079  ;;  %v6968_v10 = vadd.f32 1e-09, %v6949_v51  ;;  %v4935_v62 = vpop.eup %4934  ;;  %v3774_v38 = vadd.f32 %v3773_v63, %v3772_v11  ;;  %v3775_v33 = vsel %vm2966_vm12, %v6884_v7, 0.0  ;;  %v4103_v55 = vsel %vm3297_vm8, %v4815_v32, 0.0 }
 0x30e   : > { %v2683_v20 = vpop.permute.xlu0 %2682  ;;  %v3972_v53 = vadd.f32 %v3885_v57, %v6584_v36  ;;  %vm4003_vm4 = vcmp.gt.f32.partialorder %v3971_v56, 0.0  ;;  %v3584_v37 = vmul.f32 %v4935_v62, %v6601_v41  ;;  %v6981_v48 = vadd.f32 %v2968_v22, %v2967_v2 }
 0x30f   : > { %4940 = vrcp.f32 %v2683_v20  ;;  %3914 = vrot.lane.b32.xlu1 %v6760_v8, %s5128_s24  ;;  %3519 = vrot.lane.b32.xlu0 %v6807_v23, %s5127_s23  ;;  %v3299_v8 = vsel %vm3297_vm8, %v4778_v52, 0.0  ;;  %v3298_v23 = vsel %vm3297_vm8, %v4777_v46, 0.0  ;;  %v6984_v31 = vadd.f32 1e-09, %v6970_v40 }
 0x310   : > { %v6987_v7 = vadd.f32 1e-09, %v6972_v12  ;;  %v3776_v1 = vadd.f32 %v3775_v33, %v3774_v38  ;;  %v3777_v36 = vsel %vm2966_vm12, %v6906_v59, 0.0  ;;  %v4104_v57 = vadd.f32 %v4103_v55, %v4102_v26 }
 0x311   : > { %v3887_v19 = vpop.permute.xlu1 %3886  ;;  %v3638_v47 = vmul.f32 0.5, %v3584_v37  ;;  %v4937_v58 = vpop.eup %4936  ;;  %v6995_v25 = vadd.f32 %v3299_v8, %v3298_v23  ;;  %v4816_v14 = vsel %vm4003_vm4, 1.0, %v7582_v15  ;;  %v3171_v5 = vadd.f32 %v6909_v27, %v6586_v18 }
 0x312   : > { %v3492_v29 = vpop.permute.xlu0 %3491  ;;  %vm4004_vm5 = vcmp.gt.f32.partialorder %v3972_v53, 0.0  ;;  %v2777_v49 = vmul.f32 %v4937_v58, %v6608_v4  ;;  %v3973_v63 = vadd.f32 %v3887_v19, %v6601_v41  ;;  %v7006_v20 = vadd.f32 %v3777_v36, %v3776_v1 }
 0x313   : > { %4942 = vrcp.f32 %v3492_v29  ;;  %3109 = vrot.lane.b32.xlu1 %v6766_v60, %s5128_s24  ;;  %2712 = vrot.lane.b32.xlu0 %v6810_v44, %s5127_s23  ;;  %v7001_v59 = vmul.f32 %v3638_v47, %v3638_v47  ;;  %v3172_v60 = vadd.f32 %v3080_v61, %v6593_v39  ;;  %v7010_v56 = vsel %vm2966_vm12, %v6911_v34, 0.0 }
 0x314   : > { %v7015_v27 = vsel %vm2966_vm12, %v6931_v9, 0.0  ;;  %v4105_v11 = vsel %vm3297_vm8, %v4816_v14, 0.0  ;;  %v2836_v41 = vmul.f32 0.5, %v2777_v49  ;;  %vm3203_vm6 = vcmp.gt.f32.partialorder %v3171_v5, 0.0 }
 0x315   : > { %v4939_v24 = vpop.eup %4938  ;;  %v3082_v44 = vpop.permute.xlu1 %3081  ;;  %v3710_v39 = vsel %vm2896_vm11, %v7001_v59, 0.0  ;;  %v4817_v9 = vsel %vm4004_vm5, 1.0, %v7582_v15  ;;  %vm3204_vm7 = vcmp.gt.f32.partialorder %v3172_v60, 0.0  ;;  %vm4005_vm9 = vcmp.gt.f32.partialorder %v3973_v63, 0.0 }
 0x316   : > { %v2685_v32 = vpop.permute.xlu0 %2684  ;;  %v3586_v18 = vmul.f32 %v4939_v24, %v6614_v43  ;;  %v3711_v61 = vadd.f32 %v3710_v39, %v6924_v16  ;;  %v7027_v46 = vmul.f32 %v2836_v41, %v2836_v41  ;;  %v4106_v16 = vadd.f32 %v4105_v11, %v4104_v57 }
 0x317   : > { %4944 = vrcp.f32 %v2685_v32  ;;  %3916 = vrot.lane.b32.xlu1 %v6778_v3, %s5128_s24  ;;  %3521 = vrot.lane.b32.xlu0 %v6821_v42, %s5127_s23  ;;  %v3173_v42 = vadd.f32 %v3082_v44, %v6608_v4  ;;  %v4779_v38 = vsel %vm3203_vm6, 1.0, %v7582_v15  ;;  %v4107_v4 = vsel %vm3297_vm8, %v4817_v9, 0.0  ;;  %v7586_v44 = vld [vmem:[#allocation4_spill] sm:$0xff] }
 0x318   : > { %v3639_v52 = vmul.f32 0.5, %v3586_v18  ;;  %v2904_v33 = vsel %vm2896_vm11, %v7027_v46, 0.0  ;;  %v4780_v23 = vsel %vm3204_vm7, 1.0, %v7582_v15  ;;  %v3301_v36 = vsel %vm3297_vm8, %v4779_v38, 0.0 }
 0x319   : > { %v4941_v34 = vpop.eup %4940  ;;  %v3889_v2 = vpop.permute.xlu1 %3888  ;;  %v2905_v8 = vadd.f32 %v2904_v33, %v6944_v50  ;;  %vm3205_vm0 = vcmp.gt.f32.partialorder %v3173_v42, 0.0  ;;  %v4108_v5 = vadd.f32 %v4107_v4, %v4106_v16  ;;  %v3303_v49 = vsel %vm3297_vm8, %v4780_v23, 0.0  ;;  %v7589_v16 = vld [vmem:[#allocation5_spill] sm:$0xff] }
 0x31a   : > { %v2779_v22 = vmul.f32 %v4941_v34, %v6620_v45  ;;  %v3494_v26 = vpop.permute.xlu0 %3493  ;;  %v7030_v3 = vmul.f32 %v3639_v52, %v3639_v52  ;;  %v3974_v62 = vadd.f32 %v3889_v2, %v6614_v43  ;;  %v4781_v63 = vsel %vm3205_vm0, 1.0, %v7582_v15  ;;  %v7587_v52 = vld [vmem:[#allocation11_spill] sm:$0xff] }
 0x31b   : > { %4946 = vrcp.f32 %v3494_v26  ;;  %3111 = vrot.lane.b32.xlu1 %v6780_v28, %s5128_s24  ;;  %2714 = vrot.lane.b32.xlu0 %v6836_v54, %s5127_s23  ;;  %v4818_v28 = vsel %vm4005_vm9, 1.0, %v7582_v15  ;;  %v3302_v11 = vadd.f32 %v3301_v36, %v6995_v25  ;;  %v3305_v42 = vsel %vm3297_vm8, %v4781_v63, 0.0 }
 0x31c   : > { %v2837_v55 = vmul.f32 0.5, %v2779_v22  ;;  %v3712_v43 = vsel %vm2896_vm11, %v7030_v3, 0.0  ;;  %vm4006_vm15 = vcmp.gt.f32.partialorder %v3974_v62, 0.0  ;;  %v7588_v22 = vld [vmem:[#allocation17_spill] sm:$0xff]  ;;  %v2971_v36 = vadd.f32 %v7010_v56, %v6981_v48 }
 0x31d   : > { %v4943_v53 = vpop.eup %4942  ;;  %v3713_v37 = vadd.f32 %v3712_v43, %v3711_v61  ;;  %v3084_v54 = vpop.permute.xlu1 %3083  ;;  %v4819_v58 = vsel %vm4006_vm15, 1.0, %v7582_v15  ;;  %v3304_v25 = vadd.f32 %v3303_v49, %v3302_v11  ;;  %v2974_v48 = vsel %vm2966_vm12, %v7027_v46, 0.0  ;;  %v7593_v11 = vld [vmem:[#allocation13_spill] sm:$0xff] }
 0x31e   : > { %v7047_v19 = vmul.f32 %v2837_v55, %v2837_v55  ;;  %v3588_v29 = vmul.f32 %v4943_v53, %v6626_v13  ;;  %v2687_v1 = vpop.permute.xlu0 %2686  ;;  %v3174_v50 = vadd.f32 %v3084_v54, %v6620_v45  ;;  %v4109_v45 = vsel %vm3297_vm8, %v4818_v28, 0.0  ;;  %v7590_v54 = vld [vmem:[#allocation12_spill] sm:$0xff] }
 0x31f   : > { %4948 = vrcp.f32 %v2687_v1  ;;  %3918 = vrot.lane.b32.xlu1 %v6788_v6, %s5128_s24  ;;  %3523 = vrot.lane.b32.xlu0 %v6847_v30, %s5127_s23  ;;  %v4111_v30 = vsel %vm3297_vm8, %v4819_v58, 0.0  ;;  %v4110_v41 = vadd.f32 %v4109_v45, %v4108_v5  ;;  %v3306_v23 = vadd.f32 %v3305_v42, %v3304_v25  ;;  %v7591_v1 = vld [vmem:[#allocation18_spill] sm:$0xff] }
 0x320   : > { %v2906_v57 = vsel %vm2896_vm11, %v7047_v19, 0.0  ;;  %v3640_v47 = vmul.f32 0.5, %v3588_v29  ;;  %vm3206_vm13 = vcmp.gt.f32.partialorder %v3174_v50, 0.0  ;;  %v7592_v5 = vld [vmem:[#allocation6_spill] sm:$0xff]  ;;  %v2976_v46 = vsel %vm2966_vm12, %v7047_v19, 0.0 }
 0x321   : > { %v4945_v14 = vpop.eup %4944  ;;  %v2907_v24 = vadd.f32 %v2906_v57, %v2905_v8  ;;  %v3891_v18 = vpop.permute.xlu1 %3890  ;;  %v4782_v9 = vsel %vm3206_vm13, 1.0, %v7582_v15  ;;  %v4112_v62 = vadd.f32 %v4111_v30, %v4110_v41  ;;  %v3779_v57 = vsel %vm2966_vm12, %v7001_v59, 0.0  ;;  %v7595_v19 = vld [vmem:[#allocation14_spill] sm:$0xff] }
 0x322   : > { %v7063_v60 = vmul.f32 %v3640_v47, %v3640_v47  ;;  %v2781_v32 = vmul.f32 %v4945_v14, %v7586_v44  ;;  %v3496_v6 = vpop.permute.xlu0 %3495  ;;  %v3975_v39 = vadd.f32 %v3891_v18, %v6626_v13  ;;  %v3307_v8 = vsel %vm3297_vm8, %v4782_v9, 0.0 }
 0x323   : > { %4950 = vrcp.f32 %v3496_v6  ;;  %3113 = vrot.lane.b32.xlu1 %v7587_v52, %s5128_s24  ;;  %2716 = vrot.lane.b32.xlu0 %v7588_v22, %s5127_s23  ;;  %v3308_v14 = vadd.f32 %v3307_v8, %v3306_v23 }
 0x324   : > { %v3714_v34 = vsel %vm2896_vm11, %v7063_v60, 0.0  ;;  %v2838_v61 = vmul.f32 0.5, %v2781_v32  ;;  %vm4007_vm10 = vcmp.gt.f32.partialorder %v3975_v39, 0.0  ;;  %v2973_v32 = vadd.f32 %v7015_v27, %v2971_v36 }
 0x325   : > { %v4947_v2 = vpop.eup %4946  ;;  %v3715_v26 = vadd.f32 %v3714_v34, %v3713_v37  ;;  %v4820_v33 = vsel %vm4007_vm10, 1.0, %v7582_v15  ;;  %v3086_v55 = vpop.permute.xlu1 %3085  ;;  %v3780_v27 = vadd.f32 %v3779_v57, %v7006_v20  ;;  %v3781_v39 = vsel %vm2966_vm12, %v7030_v3, 0.0 }
 0x326   : > { %v2870_v13 = vmul.f32 %v2838_v61, %v2838_v61  ;;  %v3590_v38 = vmul.f32 %v4947_v2, %v7589_v16  ;;  %v2689_v53 = vpop.permute.xlu0 %2688  ;;  %v4113_v4 = vsel %vm3297_vm8, %v4820_v33, 0.0  ;;  %v3175_v43 = vadd.f32 %v3086_v55, %v7586_v44  ;;  %v7594_v61 = vld [vmem:[#allocation7_spill] sm:$0xff] }
 0x327   : > { %4952 = vrcp.f32 %v2689_v53  ;;  %v4114_v29 = vadd.f32 %v4113_v4, %v4112_v62  ;;  %3920 = vrot.lane.b32.xlu1 %v7590_v54, %s5128_s24  ;;  %3525 = vrot.lane.b32.xlu0 %v7591_v1, %s5127_s23  ;;  %v2975_v25 = vadd.f32 %v2974_v48, %v2973_v32  ;;  %v3782_v42 = vadd.f32 %v3781_v39, %v3780_v27  ;;  %v7596_v4 = vld [vmem:[#allocation8_spill] sm:$0xff] }
 0x328   : > { %v2908_v37 = vsel %vm2896_vm11, %v2870_v13, 0.0  ;;  %v3641_v28 = vmul.f32 0.5, %v3590_v38  ;;  %vm3207_vm3 = vcmp.gt.f32.partialorder %v3175_v43, 0.0  ;;  %v2978_v33 = vsel %vm2966_vm12, %v2870_v13, 0.0  ;;  %v7599_v27 = vld [vmem:[#allocation16_spill] sm:$0xff] }
 0x329   : > { %v4949_v50 = vpop.eup %4948  ;;  %v2909_v47 = vadd.f32 %v2908_v37, %v2907_v24  ;;  %v4783_v49 = vsel %vm3207_vm3, 1.0, %v7582_v15  ;;  %v3893_v63 = vpop.permute.xlu1 %3892  ;;  %v2977_v38 = vadd.f32 %v2976_v46, %v2975_v25  ;;  %v3783_v53 = vsel %vm2966_vm12, %v7063_v60, 0.0  ;;  %v7597_v60 = vld [vmem:[#allocation15_spill] sm:$0xff] }
 0x32a   : > { %v3673_v58 = vmul.f32 %v3641_v28, %v3641_v28  ;;  %v2783_v45 = vmul.f32 %v4949_v50, %v7592_v5  ;;  %v3498_v44 = vpop.permute.xlu0 %3497  ;;  %v3309_v18 = vsel %vm3297_vm8, %v4783_v49, 0.0  ;;  %v3976_v6 = vadd.f32 %v3893_v63, %v7589_v16  ;;  %v7598_v63 = vld [vmem:[#allocation9_spill] sm:$0xff] }
 0x32b   : > { %4954 = vrcp.f32 %v3498_v44  ;;  %v3310_v24 = vadd.f32 %v3309_v18, %v3308_v14  ;;  %3115 = vrot.lane.b32.xlu1 %v7593_v11, %s5128_s24  ;;  %2718 = vrot.lane.b32.xlu0 %v6891_v35, %s5127_s23  ;;  %v2979_v13 = vadd.f32 %v2978_v33, %v2977_v38  ;;  %v7156_v38 = vld [vmem:[#allocation2 + $0xd0] sm:$0xff] }
 0x32c   : > { %v3716_v59 = vsel %vm2896_vm11, %v3673_v58, 0.0  ;;  %v2839_v56 = vmul.f32 0.5, %v2783_v45  ;;  %vm4008_vm1 = vcmp.gt.f32.partialorder %v3976_v6, 0.0  ;;  %v3785_v14 = vsel %vm2966_vm12, %v3673_v58, 0.0 }
 0x32d   : > { %v4951_v30 = vpop.eup %4950  ;;  %v3717_v41 = vadd.f32 %v3716_v59, %v3715_v26  ;;  %v4821_v52 = vsel %vm4008_vm1, 1.0, %v7582_v15  ;;  %v3088_v22 = vpop.permute.xlu1 %3087 }
 0x32e   : > { %v2871_v34 = vmul.f32 %v2839_v56, %v2839_v56  ;;  %v3592_v9 = vmul.f32 %v4951_v30, %v7594_v61  ;;  %v2691_v2 = vpop.permute.xlu0 %2690  ;;  %v4115_v35 = vsel %vm3297_vm8, %v4821_v52, 0.0  ;;  %v3176_v20 = vadd.f32 %v3088_v22, %v7592_v5  ;;  %v7138_v56 = vld [vmem:[#allocation3 + $0xf8] sm:$0xff] }
 0x32f   : > { %4956 = vrcp.f32 %v2691_v2  ;;  %v4116_v62 = vadd.f32 %v4115_v35, %v4114_v29  ;;  %3922 = vrot.lane.b32.xlu1 %v7595_v19, %s5128_s24  ;;  %3527 = vrot.lane.b32.xlu0 %v6947_v17, %s5127_s23  ;;  %v3436_v35 = vadd.f32 1e-09, %v7138_v56 }
 0x330   : > { %v2910_v3 = vsel %vm2896_vm11, %v2871_v34, 0.0  ;;  %v3642_v26 = vmul.f32 0.5, %v3592_v9  ;;  %vm3208_vm14 = vcmp.gt.f32.partialorder %v3176_v20, 0.0  ;;  %v2980_v29 = vsel %vm2966_vm12, %v2871_v34, 0.0  ;;  %v7600_v9 = vld [vmem:[#allocation10_spill] sm:$0xff] }
 0x331   : > { %v4953_v16 = vpop.eup %4952  ;;  %v2911_v55 = vadd.f32 %v2910_v3, %v2909_v47  ;;  %v4784_v23 = vsel %vm3208_vm14, 1.0, %v7582_v15  ;;  %v3895_v37 = vpop.permute.xlu1 %3894  ;;  %v3784_v47 = vadd.f32 %v3783_v53, %v3782_v42  ;;  %v2981_v45 = vadd.f32 %v2980_v29, %v2979_v13  ;;  %v5042_v3 = vld [vmem:[#allocation3 + $0x70] sm:$0xff] }
 0x332   : > { %v3674_v8 = vmul.f32 %v3642_v26, %v3642_v26  ;;  %v2785_v43 = vmul.f32 %v4953_v16, %v7596_v4  ;;  %v3500_v28 = vpop.permute.xlu0 %3499  ;;  %v3311_v17 = vsel %vm3297_vm8, %v4784_v23, 0.0  ;;  %v3977_v54 = vadd.f32 %v3895_v37, %v7594_v61 }
 0x333   : > { %4958 = vrcp.f32 %v3500_v28  ;;  %v3312_v36 = vadd.f32 %v3311_v17, %v3310_v24  ;;  %3117 = vrot.lane.b32.xlu1 %v7597_v60, %s5128_s24  ;;  %2720 = vrot.lane.b32.xlu0 %v6968_v10, %s5127_s23  ;;  %v5044_v17 = vld [vmem:[#allocation2 + $0x48] sm:$0xff] }
 0x334   : > { %v3718_v1 = vsel %vm2896_vm11, %v3674_v8, 0.0  ;;  %v2840_v50 = vmul.f32 0.5, %v2785_v43  ;;  %vm4009_vm2 = vcmp.gt.f32.partialorder %v3977_v54, 0.0  ;;  %v3787_v48 = vsel %vm2966_vm12, %v3674_v8, 0.0 }
 0x335   : > { %v4955_v57 = vpop.eup %4954  ;;  %v3719_v5 = vadd.f32 %v3718_v1, %v3717_v41  ;;  %v4822_v32 = vsel %vm4009_vm2, 1.0, %v7582_v15  ;;  %v3090_v18 = vpop.permute.xlu1 %3089  ;;  %v3786_v41 = vadd.f32 %v3785_v14, %v3784_v47 }
 0x336   : > { %v2872_v49 = vmul.f32 %v2840_v50, %v2840_v50  ;;  %v3594_v44 = vmul.f32 %v4955_v57, %v7598_v63  ;;  %v2693_v6 = vpop.permute.xlu0 %2692  ;;  %v4117_v59 = vsel %vm3297_vm8, %v4822_v32, 0.0  ;;  %v3177_v10 = vadd.f32 %v3090_v18, %v7596_v4  ;;  %v5043_v4 = vld [vmem:[#allocation3 + $0x78] sm:$0xff] }
 0x337   : > { %4960 = vrcp.f32 %v2693_v6  ;;  %v4118_v30 = vadd.f32 %v4117_v59, %v4116_v62  ;;  %3924 = vrot.lane.b32.xlu1 %v7599_v27, %s5128_s24  ;;  %3529 = vrot.lane.b32.xlu0 %v6984_v31, %s5127_s23  ;;  %v3788_v20 = vadd.f32 %v3787_v48, %v3786_v41  ;;  %v5046_v27 = vld [vmem:[#allocation3 + $0x80] sm:$0xff] }
 0x338   : > { %v2912_v58 = vsel %vm2896_vm11, %v2872_v49, 0.0  ;;  %v2982_v24 = vsel %vm2966_vm12, %v2872_v49, 0.0  ;;  %v3643_v11 = vmul.f32 0.5, %v3594_v44  ;;  %vm3209_vm4 = vcmp.gt.f32.partialorder %v3177_v10, 0.0 }
 0x339   : > { %v4957_v39 = vpop.eup %4956  ;;  %v2913_v46 = vadd.f32 %v2912_v58, %v2911_v55  ;;  %v2983_v34 = vadd.f32 %v2982_v24, %v2981_v45  ;;  %v4785_v22 = vsel %vm3209_vm4, 1.0, %v7582_v15  ;;  %v3897_v2 = vpop.permute.xlu1 %3896 }
 0x33a   : > { %v3675_v61 = vmul.f32 %v3643_v11, %v3643_v11  ;;  %v2787_v52 = vmul.f32 %v4957_v39, %v7600_v9  ;;  %v3502_v25 = vpop.permute.xlu0 %3501  ;;  %v3313_v42 = vsel %vm3297_vm8, %v4785_v22, 0.0  ;;  %v3978_v26 = vadd.f32 %v5042_v3, %v3897_v2 }
 0x33b   : > { %4962 = vrcp.f32 %v3502_v25  ;;  %v3314_v16 = vadd.f32 %v3313_v42, %v3312_v36  ;;  %3119 = vrot.lane.b32.xlu1 %v6874_v21, %s5128_s24  ;;  %2722 = vrot.lane.b32.xlu0 %v6987_v7, %s5127_s23  ;;  %v2634_v7 = vadd.f32 1e-09, %v7156_v38  ;;  %v7166_v36 = vld [vmem:[#allocation2 + $0xd8] sm:$0xff]  ;;  %v7183_v25 = vld [vmem:[#allocation2 + $0xe0] sm:$0xff] }
 0x33c   : > { %v3720_v31 = vsel %vm2896_vm11, %v3675_v61, 0.0  ;;  %v3789_v62 = vsel %vm2966_vm12, %v3675_v61, 0.0  ;;  %v2841_v19 = vmul.f32 0.5, %v2787_v52  ;;  %vm4010_vm5 = vcmp.gt.f32.partialorder %v3978_v26, 0.0  ;;  %v5047_v26 = vld [vmem:[#allocation2 + $0x58] sm:$0xff] }
 0x33d   : > { %v4959_v33 = vpop.eup %4958  ;;  %v3721_v55 = vadd.f32 %v3720_v31, %v3719_v5  ;;  %v3790_v53 = vadd.f32 %v3789_v62, %v3788_v20  ;;  %v4823_v23 = vsel %vm4010_vm5, 1.0, %v7582_v15  ;;  %v3092_v37 = vpop.permute.xlu1 %3091  ;;  %v5045_v5 = vld [vmem:[#allocation2 + $0x50] sm:$0xff] }
 0x33e   : > { %v2873_v8 = vmul.f32 %v2841_v19, %v2841_v19  ;;  %v3596_v43 = vmul.f32 %v5043_v4, %v4959_v33  ;;  %v2695_v28 = vpop.permute.xlu0 %2694  ;;  %v4119_v29 = vsel %vm3297_vm8, %v4823_v23, 0.0  ;;  %v3178_v21 = vadd.f32 %v5044_v17, %v3092_v37  ;;  %v7194_v23 = vld [vmem:[#allocation2 + $0xe8] sm:$0xff] }
 0x33f   : > { %4964 = vrcp.f32 %v2695_v28  ;;  %v4120_v50 = vadd.f32 %v4119_v29, %v4118_v30  ;;  %3926 = vrot.lane.b32.xlu1 %v6933_v0, %s5128_s24  ;;  %3531 = vrot.lane.b32.xlu0 %v3436_v35, %s5127_s23  ;;  %v2635_v0 = vadd.f32 1e-09, %v7166_v36 }
 0x340   : > { %v2914_v54 = vsel %vm2896_vm11, %v2873_v8, 0.0  ;;  %v2984_v13 = vsel %vm2966_vm12, %v2873_v8, 0.0  ;;  %v3644_v1 = vmul.f32 0.5, %v3596_v43  ;;  %vm3210_vm6 = vcmp.gt.f32.partialorder %v3178_v21, 0.0  ;;  %v5048_v21 = vld [vmem:[#allocation3 + $0x88] sm:$0xff] }
 0x341   : > { %v4961_v60 = vpop.eup %4960  ;;  %v2915_v57 = vadd.f32 %v2914_v54, %v2913_v46  ;;  %v2985_v47 = vadd.f32 %v2984_v13, %v2983_v34  ;;  %v4786_v49 = vsel %vm3210_vm6, 1.0, %v7582_v15  ;;  %v3899_v63 = vpop.permute.xlu1 %3898 }
 0x342   : > { %v3676_v14 = vmul.f32 %v3644_v1, %v3644_v1  ;;  %v2789_v45 = vmul.f32 %v5045_v5, %v4961_v60  ;;  %v3504_v44 = vpop.permute.xlu0 %3503  ;;  %v3315_v32 = vsel %vm3297_vm8, %v4786_v49, 0.0  ;;  %v3979_v18 = vadd.f32 %v5043_v4, %v3899_v63 }
 0x343   : > { %4966 = vrcp.f32 %v3504_v44  ;;  %v3316_v10 = vadd.f32 %v3315_v32, %v3314_v16  ;;  %3121 = vrot.lane.b32.xlu1 %v6949_v51, %s5128_s24  ;;  %2724 = vrot.lane.b32.xlu0 %v2634_v7, %s5127_s23  ;;  %v5049_v32 = vld [vmem:[#allocation2 + $0x60] sm:$0xff] }
 0x344   : > { %v3722_v6 = vsel %vm2896_vm11, %v3676_v14, 0.0  ;;  %v3791_v48 = vsel %vm2966_vm12, %v3676_v14, 0.0  ;;  %v2842_v59 = vmul.f32 0.5, %v2789_v45  ;;  %vm4011_vm7 = vcmp.gt.f32.partialorder %v3979_v18, 0.0 }
 0x345   : > { %v4963_v58 = vpop.eup %4962  ;;  %v3723_v24 = vadd.f32 %v3722_v6, %v3721_v55  ;;  %v3792_v11 = vadd.f32 %v3791_v48, %v3790_v53  ;;  %v4824_v41 = vsel %vm4011_vm7, 1.0, %v7582_v15  ;;  %v3094_v46 = vpop.permute.xlu1 %3093  ;;  %v2636_v53 = vadd.f32 1e-09, %v7183_v25 }
 0x346   : > { %v2874_v30 = vmul.f32 %v2842_v59, %v2842_v59  ;;  %v3598_v39 = vmul.f32 %v5046_v27, %v4963_v58  ;;  %v2697_v34 = vpop.permute.xlu0 %2696  ;;  %v4121_v61 = vsel %vm3297_vm8, %v4824_v41, 0.0  ;;  %v3179_v9 = vadd.f32 %v5045_v5, %v3094_v46  ;;  %v7204_v5 = vld [vmem:[#allocation2 + $0xf0] sm:$0xff] }
 0x347   : > { %4968 = vrcp.f32 %v2697_v34  ;;  %v4122_v2 = vadd.f32 %v4121_v61, %v4120_v50  ;;  %2726 = vrot.lane.b32.xlu1 %v2635_v0, %s5127_s23  ;;  %3928 = vrot.lane.b32.xlu0 %v6970_v40, %s5128_s24  ;;  %v5050_v61 = vld [vmem:[#allocation3 + $0x90] sm:$0xff] }
 0x348   : > { %v2916_v52 = vsel %vm2896_vm11, %v2874_v30, 0.0  ;;  %v2986_v51 = vsel %vm2966_vm12, %v2874_v30, 0.0  ;;  %v3645_v22 = vmul.f32 0.5, %v3598_v39  ;;  %vm3211_vm9 = vcmp.gt.f32.partialorder %v3179_v9, 0.0 }
 0x349   : > { %v4965_v35 = vpop.eup %4964  ;;  %v2917_v20 = vadd.f32 %v2916_v52, %v2915_v57  ;;  %v2987_v42 = vadd.f32 %v2986_v51, %v2985_v47  ;;  %v4787_v62 = vsel %vm3211_vm9, 1.0, %v7582_v15  ;;  %v3901_v19 = vpop.permute.xlu1 %3900 }
 0x34a   : > { %v3677_v3 = vmul.f32 %v3645_v22, %v3645_v22  ;;  %v2791_v31 = vmul.f32 %v5047_v26, %v4965_v35  ;;  %v3506_v16 = vpop.permute.xlu0 %3505  ;;  %v3317_v33 = vsel %vm3297_vm8, %v4787_v62, 0.0  ;;  %v3980_v55 = vadd.f32 %v5046_v27, %v3901_v19  ;;  %v2607_v27 = vld [vmem:[#allocation2 + $0xf8] sm:$0xff] }
 0x34b   : > { %4970 = vrcp.f32 %v3506_v16  ;;  %v3318_v43 = vadd.f32 %v3317_v33, %v3316_v10  ;;  %3930 = vrot.lane.b32.xlu1 %v7138_v56, %s5128_s24  ;;  %3123 = vrot.lane.b32.xlu0 %v6972_v12, %s5128_s24  ;;  %v2637_v56 = vadd.f32 1e-09, %v7194_v23  ;;  %v5051_v33 = vld [vmem:[#allocation2 + $0x68] sm:$0xff] }
 0x34c   : > { %v3724_v40 = vsel %vm2896_vm11, %v3677_v3, 0.0  ;;  %v3793_v8 = vsel %vm2966_vm12, %v3677_v3, 0.0  ;;  %v2843_v4 = vmul.f32 0.5, %v2791_v31  ;;  %vm4012_vm0 = vcmp.gt.f32.partialorder %v3980_v55, 0.0 }
 0x34d   : > { %v4967_v37 = vpop.eup %4966  ;;  %v3725_v28 = vadd.f32 %v3724_v40, %v3723_v24  ;;  %v3794_v29 = vadd.f32 %v3793_v8, %v3792_v11  ;;  %v4825_v54 = vsel %vm4012_vm0, 1.0, %v7582_v15  ;;  %v3096_v13 = vpop.permute.xlu1 %3095 }
 0x34e   : > { %v2875_v17 = vmul.f32 %v2843_v4, %v2843_v4  ;;  %v3600_v7 = vmul.f32 %v5048_v21, %v4967_v37  ;;  %v2699_v1 = vpop.permute.xlu0 %2698  ;;  %v4123_v50 = vsel %vm3297_vm8, %v4825_v54, 0.0  ;;  %v3180_v60 = vadd.f32 %v5047_v26, %v3096_v13  ;;  %v5052_v13 = vld [vmem:[#allocation3 + $0x98] sm:$0xff] }
 0x34f   : > { %4972 = vrcp.f32 %v2699_v1  ;;  %v4124_v14 = vadd.f32 %v4123_v50, %v4122_v2  ;;  %3125 = vrot.lane.b32.xlu1 %v7156_v38, %s5128_s24  ;;  %2728 = vrot.lane.b32.xlu0 %v2636_v53, %s5127_s23  ;;  %v2638_v38 = vadd.f32 1e-09, %v7204_v5 }
 0x350   : > { %v2918_v12 = vsel %vm2896_vm11, %v2875_v17, 0.0  ;;  %v2988_v57 = vsel %vm2966_vm12, %v2875_v17, 0.0  ;;  %v3646_v47 = vmul.f32 0.5, %v3600_v7  ;;  %vm3212_vm15 = vcmp.gt.f32.partialorder %v3180_v60, 0.0 }
 0x351   : > { %v4969_v45 = vpop.eup %4968  ;;  %v2919_v49 = vadd.f32 %v2918_v12, %v2917_v20  ;;  %v2989_v63 = vadd.f32 %v2988_v57, %v2987_v42  ;;  %v4788_v0 = vsel %vm3212_vm15, 1.0, %v7582_v15  ;;  %v3903_v6 = vpop.permute.xlu1 %3902  ;;  %v2639_v20 = vadd.f32 1e-09, %v2607_v27 }
 0x352   : > { %v3678_v44 = vmul.f32 %v3646_v47, %v3646_v47  ;;  %v2793_v18 = vmul.f32 %v5049_v32, %v4969_v45  ;;  %v3508_v48 = vpop.permute.xlu0 %3507  ;;  %v3319_v59 = vsel %vm3297_vm8, %v4788_v0, 0.0  ;;  %v3981_v10 = vadd.f32 %v5048_v21, %v3903_v6 }
 0x353   : > { %4974 = vrcp.f32 %v3508_v48  ;;  %v3320_v30 = vadd.f32 %v3319_v59, %v3318_v43  ;;  %3127 = vrot.lane.b32.xlu1 %v7166_v36, %s5128_s24  ;;  %2730 = vrot.lane.b32.xlu0 %v2637_v56, %s5127_s23 }
 0x354   : > { %v3726_v58 = vsel %vm2896_vm11, %v3678_v44, 0.0  ;;  %v3795_v24 = vsel %vm2966_vm12, %v3678_v44, 0.0  ;;  %v2844_v11 = vmul.f32 0.5, %v2793_v18  ;;  %vm4013_vm13 = vcmp.gt.f32.partialorder %v3981_v10, 0.0  ;;  %v5053_v18 = vld [vmem:[#allocation2 + $0x70] sm:$0xff] }
 0x355   : > { %v4971_v39 = vpop.eup %4970  ;;  %v3727_v41 = vadd.f32 %v3726_v58, %v3725_v28  ;;  %v3796_v46 = vadd.f32 %v3795_v24, %v3794_v29  ;;  %v4826_v52 = vsel %vm4013_vm13, 1.0, %v7582_v15  ;;  %v3098_v51 = vpop.permute.xlu1 %3097 }
 0x356   : > { %v2876_v34 = vmul.f32 %v2844_v11, %v2844_v11  ;;  %v3602_v9 = vmul.f32 %v5050_v61, %v4971_v39  ;;  %v2701_v22 = vpop.permute.xlu0 %2700  ;;  %v4125_v2 = vsel %vm3297_vm8, %v4826_v52, 0.0  ;;  %v3181_v35 = vadd.f32 %v5049_v32, %v3098_v51 }
 0x357   : > { %4976 = vrcp.f32 %v2701_v22  ;;  %v4126_v26 = vadd.f32 %v4125_v2, %v4124_v14  ;;  %3129 = vrot.lane.b32.xlu1 %v7183_v25, %s5128_s24  ;;  %2732 = vrot.lane.b32.xlu0 %v2638_v38, %s5127_s23 }
 0x358   : > { %v2920_v36 = vsel %vm2896_vm11, %v2876_v34, 0.0  ;;  %v2990_v42 = vsel %vm2966_vm12, %v2876_v34, 0.0  ;;  %v3647_v3 = vmul.f32 0.5, %v3602_v9  ;;  %vm3213_vm10 = vcmp.gt.f32.partialorder %v3181_v35, 0.0 }
 0x359   : > { %v4973_v31 = vpop.eup %4972  ;;  %v2921_v62 = vadd.f32 %v2920_v36, %v2919_v49  ;;  %v2991_v19 = vadd.f32 %v2990_v42, %v2989_v63  ;;  %v4789_v53 = vsel %vm3213_vm10, 1.0, %v7582_v15  ;;  %v3905_v40 = vpop.permute.xlu1 %3904 }
 0x35a   : > { %v3679_v16 = vmul.f32 %v3647_v3, %v3647_v3  ;;  %v2795_v55 = vmul.f32 %v5051_v33, %v4973_v31  ;;  %v3510_v8 = vpop.permute.xlu0 %3509  ;;  %v3321_v4 = vsel %vm3297_vm8, %v4789_v53, 0.0  ;;  %v3982_v43 = vadd.f32 %v5050_v61, %v3905_v40 }
 0x35b   : > { %4978 = vrcp.f32 %v3510_v8  ;;  %v3322_v29 = vadd.f32 %v3321_v4, %v3320_v30  ;;  %3131 = vrot.lane.b32.xlu1 %v7194_v23, %s5128_s24  ;;  %2734 = vrot.lane.b32.xlu0 %v2639_v20, %s5127_s23 }
 0x35c   : > { %v3728_v37 = vsel %vm2896_vm11, %v3679_v16, 0.0  ;;  %v3797_v25 = vsel %vm2966_vm12, %v3679_v16, 0.0  ;;  %v2845_v28 = vmul.f32 0.5, %v2795_v55  ;;  %vm4014_vm3 = vcmp.gt.f32.partialorder %v3982_v43, 0.0 }
 0x35d   : > { %v4975_v17 = vpop.eup %4974  ;;  %v3729_v21 = vadd.f32 %v3728_v37, %v3727_v41  ;;  %v3798_v7 = vadd.f32 %v3797_v25, %v3796_v46  ;;  %v4827_v50 = vsel %vm4014_vm3, 1.0, %v7582_v15  ;;  %v3100_v60 = vpop.permute.xlu1 %3099  ;;  %v7239_v46 = vld [vmem:[#allocation3 + $0xa0] sm:$0xff] }
 0x35e   : > { %v2877_v54 = vmul.f32 %v2845_v28, %v2845_v28  ;;  %v3604_v1 = vmul.f32 %v5052_v13, %v4975_v17  ;;  %v2703_v56 = vpop.permute.xlu0 %2702  ;;  %v4127_v12 = vsel %vm3297_vm8, %v4827_v50, 0.0  ;;  %v3182_v57 = vadd.f32 %v5051_v33, %v3100_v60  ;;  %v7256_v17 = vld [vmem:[#allocation3 + $0xa8] sm:$0xff] }
 0x35f   : > { %4980 = vrcp.f32 %v2703_v56  ;;  %v4128_v45 = vadd.f32 %v4127_v12, %v4126_v26  ;;  %3133 = vrot.lane.b32.xlu0 %v7204_v5, %s5128_s24  ;;  %3135 = vrot.lane.b32.xlu1 %v2607_v27, %s5128_s24 }
 0x360   : > { %v2922_v47 = vsel %vm2896_vm11, %v2877_v54, 0.0  ;;  %v2992_v23 = vsel %vm2966_vm12, %v2877_v54, 0.0  ;;  %v3648_v14 = vmul.f32 0.5, %v3604_v1  ;;  %vm3214_vm1 = vcmp.gt.f32.partialorder %v3182_v57, 0.0 }
 0x361   : > { %v4977_v49 = vpop.eup %4976  ;;  %v2923_v63 = vadd.f32 %v2922_v47, %v2921_v62  ;;  %v2993_v44 = vadd.f32 %v2992_v23, %v2991_v19  ;;  %v4790_v6 = vsel %vm3214_vm1, 1.0, %v7582_v15  ;;  %v3907_v48 = vpop.permute.xlu1 %3906  ;;  %v5055_v62 = vld [vmem:[#allocation2 + $0x78] sm:$0xff]  ;;  %v5057_v23 = vld [vmem:[#allocation2 + $0x80] sm:$0xff] }
 0x362   : > { %v3680_v32 = vmul.f32 %v3648_v14, %v3648_v14  ;;  %v2797_v0 = vmul.f32 %v5053_v18, %v4977_v49  ;;  %v3512_v59 = vpop.permute.xlu0 %3511  ;;  %v3323_v10 = vsel %vm3297_vm8, %v4790_v6, 0.0  ;;  %v3983_v38 = vadd.f32 %v5052_v13, %v3907_v48 }
 0x363   : > { %4982 = vrcp.f32 %v3512_v59  ;;  %v3324_v11 = vadd.f32 %v3323_v10, %v3322_v29  ;;  %v7269_v10 = vld [vmem:[#allocation3 + $0xb0] sm:$0xff] }
 0x364   : > { %v3730_v58 = vsel %vm2896_vm11, %v3680_v32, 0.0  ;;  %v3799_v5 = vsel %vm2966_vm12, %v3680_v32, 0.0  ;;  %v2846_v24 = vmul.f32 0.5, %v2797_v0  ;;  %vm4015_vm14 = vcmp.gt.f32.partialorder %v3983_v38, 0.0 }
 0x365   : > { %v4979_v30 = vpop.eup %4978  ;;  %v3731_v27 = vadd.f32 %v3730_v58, %v3729_v21  ;;  %v3800_v39 = vadd.f32 %v3799_v5, %v3798_v7  ;;  %v4828_v61 = vsel %vm4015_vm14, 1.0, %v7582_v15  ;;  %v3102_v9 = vpop.permute.xlu1 %3101 }
 0x366   : > { %v2878_v41 = vmul.f32 %v2846_v24, %v2846_v24  ;;  %v3606_v34 = vmul.f32 %v7239_v46, %v4979_v30  ;;  %v2705_v52 = vpop.permute.xlu0 %2704  ;;  %v4129_v51 = vsel %vm3297_vm8, %v4828_v61, 0.0  ;;  %v3183_v22 = vadd.f32 %v5053_v18, %v3102_v9  ;;  %v7276_v9 = vld [vmem:[#allocation2 + $0x88] sm:$0xff] }
 0x367   : > { %4984 = vrcp.f32 %v2705_v52  ;;  %v7246_v36 = vadd.f32 %v4129_v51, %v4128_v45 }
 0x368   : > { %v2924_v2 = vsel %vm2896_vm11, %v2878_v41, 0.0  ;;  %v2994_v35 = vsel %vm2966_vm12, %v2878_v41, 0.0  ;;  %v3649_v20 = vmul.f32 0.5, %v3606_v34  ;;  %vm3215_vm2 = vcmp.gt.f32.partialorder %v3183_v22, 0.0 }
 0x369   : > { %v4981_v42 = vpop.eup %4980  ;;  %v2925_v3 = vadd.f32 %v2924_v2, %v2923_v63  ;;  %v2995_v26 = vadd.f32 %v2994_v35, %v2993_v44  ;;  %v4791_v16 = vsel %vm3215_vm2, 1.0, %v7582_v15  ;;  %v7249_v33 = vpop.permute.xlu1 %3908 }
 0x36a   : > { %v3681_v31 = vmul.f32 %v3649_v20, %v3649_v20  ;;  %v2799_v19 = vmul.f32 %v5055_v62, %v4981_v42  ;;  %v3514_v55 = vpop.permute.xlu0 %3513  ;;  %v3325_v53 = vsel %vm3297_vm8, %v4791_v16, 0.0 }
 0x36b   : > { %4986 = vrcp.f32 %v3514_v55  ;;  %v3326_v43 = vadd.f32 %v3325_v53, %v3324_v11 }
 0x36c   : > { %v3732_v40 = vsel %vm2896_vm11, %v3681_v31, 0.0  ;;  %v3801_v8 = vsel %vm2966_vm12, %v3681_v31, 0.0  ;;  %v2847_v4 = vmul.f32 0.5, %v2799_v19  ;;  %v5060_v19 = vld [vmem:[#allocation3 + $0xb8] sm:$0xff] }
 0x36d   : > { %v4983_v37 = vpop.eup %4982  ;;  %v3733_v25 = vadd.f32 %v3732_v40, %v3731_v27  ;;  %v7254_v28 = vadd.f32 %v3801_v8, %v3800_v39  ;;  %v3104_v7 = vpop.permute.xlu1 %3103 }
 0x36e   : > { %v2879_v29 = vmul.f32 %v2847_v4, %v2847_v4  ;;  %v3608_v21 = vmul.f32 %v7256_v17, %v4983_v37  ;;  %v2707_v54 = vpop.permute.xlu0 %2706  ;;  %v3184_v13 = vadd.f32 %v5055_v62, %v3104_v7 }
 0x36f   : > { %4988 = vrcp.f32 %v2707_v54 }
 0x370   : > { %v2926_v1 = vsel %vm2896_vm11, %v2879_v29, 0.0  ;;  %v2996_v50 = vsel %vm2966_vm12, %v2879_v29, 0.0  ;;  %v3650_v60 = vmul.f32 0.5, %v3608_v21  ;;  %vm3216_vm4 = vcmp.gt.f32.partialorder %v3184_v13, 0.0  ;;  %v7291_v21 = vld [vmem:[#allocation2 + $0x90] sm:$0xff] }
 0x371   : > { %v4985_v56 = vpop.eup %4984  ;;  %v2927_v12 = vadd.f32 %v2926_v1, %v2925_v3  ;;  %v2997_v57 = vadd.f32 %v2996_v50, %v2995_v26  ;;  %v4792_v45 = vsel %vm3216_vm4, 1.0, %v7582_v15  ;;  %v7264_v49 = vpop.permute.xlu1 %3910 }
 0x372   : > { %v7261_v47 = vmul.f32 %v3650_v60, %v3650_v60  ;;  %v2801_v14 = vmul.f32 %v5057_v23, %v4985_v56  ;;  %v3516_v63 = vpop.permute.xlu0 %3515  ;;  %v3327_v44 = vsel %vm3297_vm8, %v4792_v45, 0.0 }
 0x373   : > { %4990 = vrcp.f32 %v3516_v63  ;;  %v3328_v0 = vadd.f32 %v3327_v44, %v3326_v43 }
 0x374   : > { %v3734_v32 = vsel %vm2896_vm11, %v7261_v47, 0.0  ;;  %v2848_v18 = vmul.f32 0.5, %v2801_v14 }
 0x375   : > { %v4987_v6 = vpop.eup %4986  ;;  %v3735_v48 = vadd.f32 %v3734_v32, %v3733_v25  ;;  %v3106_v58 = vpop.permute.xlu1 %3105 }
 0x376   : > { %v2880_v59 = vmul.f32 %v2848_v18, %v2848_v18  ;;  %v3610_v38 = vmul.f32 %v7269_v10, %v4987_v6  ;;  %v2709_v5 = vpop.permute.xlu0 %2708  ;;  %v3185_v24 = vadd.f32 %v5057_v23, %v3106_v58  ;;  %v7300_v23 = vld [vmem:[#allocation3 + $0xc0] sm:$0xff]  ;;  %v3985_v6 = vadd.f32 %v7256_v17, %v7264_v49 }
 0x377   : > { %4992 = vrcp.f32 %v2709_v5 }
 0x378   : > { %v2928_v11 = vsel %vm2896_vm11, %v2880_v59, 0.0  ;;  %v2998_v30 = vsel %vm2966_vm12, %v2880_v59, 0.0  ;;  %v3651_v27 = vmul.f32 0.5, %v3610_v38  ;;  %vm3217_vm5 = vcmp.gt.f32.partialorder %v3185_v24, 0.0 }
 0x379   : > { %v4989_v39 = vpop.eup %4988  ;;  %v2929_v41 = vadd.f32 %v2928_v11, %v2927_v12  ;;  %v2999_v34 = vadd.f32 %v2998_v30, %v2997_v57  ;;  %v4793_v51 = vsel %vm3217_vm5, 1.0, %v7582_v15  ;;  %v3913_v22 = vpop.permute.xlu1 %3912  ;;  %v3984_v12 = vadd.f32 %v7239_v46, %v7249_v33  ;;  %v7309_v33 = vld [vmem:[#allocation2 + $0x98] sm:$0xff] }
 0x37a   : > { %v7274_v61 = vmul.f32 %v3651_v27, %v3651_v27  ;;  %v2803_v52 = vmul.f32 %v7276_v9, %v4989_v39  ;;  %v3518_v2 = vpop.permute.xlu0 %3517  ;;  %v3329_v35 = vsel %vm3297_vm8, %v4793_v51, 0.0  ;;  %vm4017_vm7 = vcmp.gt.f32.partialorder %v3985_v6, 0.0  ;;  %v7318_v27 = vld [vmem:[#allocation3 + $0xc8] sm:$0xff] }
 0x37b   : > { %4994 = vrcp.f32 %v3518_v2  ;;  %v7283_v3 = vadd.f32 %v3329_v35, %v3328_v0  ;;  %vm4016_vm6 = vcmp.gt.f32.partialorder %v3984_v12, 0.0  ;;  %v3986_v17 = vadd.f32 %v7269_v10, %v3913_v22 }
 0x37c   : > { %v3736_v20 = vsel %vm2896_vm11, %v7274_v61, 0.0  ;;  %v2849_v42 = vmul.f32 0.5, %v2803_v52  ;;  %v4829_v11 = vsel %vm4016_vm6, 1.0, %v7582_v15 }
 0x37d   : > { %v4991_v26 = vpop.eup %4990  ;;  %v3737_v31 = vadd.f32 %v3736_v20, %v3735_v48  ;;  %v3108_v55 = vpop.permute.xlu1 %3107  ;;  %v4131_v35 = vsel %vm3297_vm8, %v4829_v11, 0.0  ;;  %v4830_v20 = vsel %vm4017_vm7, 1.0, %v7582_v15  ;;  %vm4018_vm9 = vcmp.gt.f32.partialorder %v3986_v17, 0.0 }
 0x37e   : > { %v2881_v62 = vmul.f32 %v2849_v42, %v2849_v42  ;;  %v3612_v16 = vmul.f32 %v5060_v19, %v4991_v26  ;;  %v2711_v53 = vpop.permute.xlu0 %2710  ;;  %v3186_v10 = vadd.f32 %v7276_v9, %v3108_v55 }
 0x37f   : > { %4996 = vrcp.f32 %v2711_v53 }
 0x380   : > { %v2930_v40 = vsel %vm2896_vm11, %v2881_v62, 0.0  ;;  %v3000_v8 = vsel %vm2966_vm12, %v2881_v62, 0.0  ;;  %v3652_v4 = vmul.f32 0.5, %v3612_v16  ;;  %vm3218_vm0 = vcmp.gt.f32.partialorder %v3186_v10, 0.0 }
 0x381   : > { %v4993_v43 = vpop.eup %4992  ;;  %v2931_v37 = vadd.f32 %v2930_v40, %v2929_v41  ;;  %v7287_v25 = vadd.f32 %v3000_v8, %v2999_v34  ;;  %v3915_v54 = vpop.permute.xlu1 %3914  ;;  %v3803_v40 = vsel %vm2966_vm12, %v7261_v47, 0.0  ;;  %v4133_v8 = vsel %vm3297_vm8, %v4830_v20, 0.0 }
 0x382   : > { %v7289_v29 = vmul.f32 %v3652_v4, %v3652_v4  ;;  %v2805_v7 = vmul.f32 %v7291_v21, %v4993_v43  ;;  %v3520_v13 = vpop.permute.xlu0 %3519  ;;  %v3987_v42 = vadd.f32 %v5060_v19, %v3915_v54  ;;  %v4132_v19 = vadd.f32 %v4131_v35, %v7246_v36 }
 0x383   : > { %4998 = vrcp.f32 %v3520_v13  ;;  %v4831_v43 = vsel %vm4018_vm9, 1.0, %v7582_v15  ;;  %v5066_v13 = vld [vmem:[#allocation3 + $0xd0] sm:$0xff]  ;;  %v3805_v36 = vsel %vm2966_vm12, %v7274_v61, 0.0 }
 0x384   : > { %v3738_v1 = vsel %vm2896_vm11, %v7289_v29, 0.0  ;;  %v2850_v50 = vmul.f32 0.5, %v2805_v7  ;;  %vm4019_vm15 = vcmp.gt.f32.partialorder %v3987_v42, 0.0  ;;  %v4135_v12 = vsel %vm3297_vm8, %v4831_v43, 0.0 }
 0x385   : > { %v4995_v60 = vpop.eup %4994  ;;  %v3739_v56 = vadd.f32 %v3738_v1, %v3737_v31  ;;  %v3110_v45 = vpop.permute.xlu1 %3109  ;;  %v7328_v31 = vld [vmem:[#allocation2 + $0xa0] sm:$0xff] }
 0x386   : > { %v7298_v57 = vmul.f32 %v2850_v50, %v2850_v50  ;;  %v3614_v14 = vmul.f32 %v7300_v23, %v4995_v60  ;;  %v2713_v63 = vpop.permute.xlu0 %2712  ;;  %v3187_v7 = vadd.f32 %v7291_v21, %v3110_v45  ;;  %v3804_v60 = vadd.f32 %v3803_v40, %v7254_v28 }
 0x387   : > { %5000 = vrcp.f32 %v2713_v63  ;;  %v4794_v45 = vsel %vm3218_vm0, 1.0, %v7582_v15 }
 0x388   : > { %v2932_v44 = vsel %vm2896_vm11, %v7298_v57, 0.0  ;;  %v3653_v32 = vmul.f32 0.5, %v3614_v14  ;;  %vm3219_vm13 = vcmp.gt.f32.partialorder %v3187_v7, 0.0  ;;  %v3331_v11 = vsel %vm3297_vm8, %v4794_v45, 0.0 }
 0x389   : > { %v4997_v18 = vpop.eup %4996  ;;  %v2933_v0 = vadd.f32 %v2932_v44, %v2931_v37  ;;  %v3917_v59 = vpop.permute.xlu1 %3916  ;;  %v4832_v44 = vsel %vm4019_vm15, 1.0, %v7582_v15  ;;  %v3002_v20 = vsel %vm2966_vm12, %v7298_v57, 0.0  ;;  %v3332_v10 = vadd.f32 %v3331_v11, %v7283_v3 }
 0x38a   : > { %v7307_v46 = vmul.f32 %v3653_v32, %v3653_v32  ;;  %v2807_v48 = vmul.f32 %v7309_v33, %v4997_v18  ;;  %v3522_v38 = vpop.permute.xlu0 %3521  ;;  %v3988_v28 = vadd.f32 %v7300_v23, %v3917_v59  ;;  %v4137_v17 = vsel %vm3297_vm8, %v4832_v44, 0.0 }
 0x38b   : > { %5002 = vrcp.f32 %v3522_v38 }
 0x38c   : > { %v3740_v58 = vsel %vm2896_vm11, %v7307_v46, 0.0  ;;  %v2851_v5 = vmul.f32 0.5, %v2807_v48  ;;  %vm4020_vm10 = vcmp.gt.f32.partialorder %v3988_v28, 0.0  ;;  %v3809_v7 = vsel %vm2966_vm12, %v7307_v46, 0.0 }
 0x38d   : > { %v4999_v24 = vpop.eup %4998  ;;  %v3741_v30 = vadd.f32 %v3740_v58, %v3739_v56  ;;  %v3112_v41 = vpop.permute.xlu1 %3111  ;;  %v4134_v56 = vadd.f32 %v4133_v8, %v4132_v19  ;;  %v3806_v58 = vadd.f32 %v3805_v36, %v3804_v60 }
 0x38e   : > { %v7316_v49 = vmul.f32 %v2851_v5, %v2851_v5  ;;  %v3616_v39 = vmul.f32 %v7318_v27, %v4999_v24  ;;  %v2715_v34 = vpop.permute.xlu0 %2714  ;;  %v3188_v61 = vadd.f32 %v7309_v33, %v3112_v41  ;;  %v3807_v24 = vsel %vm2966_vm12, %v7289_v29, 0.0  ;;  %v5068_v29 = vld [vmem:[#allocation3 + $0xd8] sm:$0xff] }
 0x38f   : > { %5004 = vrcp.f32 %v2715_v34  ;;  %v4136_v5 = vadd.f32 %v4135_v12, %v4134_v56  ;;  %v4795_v33 = vsel %vm3219_vm13, 1.0, %v7582_v15  ;;  %v3808_v35 = vadd.f32 %v3807_v24, %v3806_v58  ;;  %v5070_v12 = vld [vmem:[#allocation3 + $0xe0] sm:$0xff] }
 0x390   : > { %v2934_v52 = vsel %vm2896_vm11, %v7316_v49, 0.0  ;;  %v3654_v51 = vmul.f32 0.5, %v3616_v39  ;;  %vm3220_vm3 = vcmp.gt.f32.partialorder %v3188_v61, 0.0  ;;  %v3333_v42 = vsel %vm3297_vm8, %v4795_v33, 0.0 }
 0x391   : > { %v5001_v2 = vpop.eup %5000  ;;  %v2935_v22 = vadd.f32 %v2934_v52, %v2933_v0  ;;  %v3919_v16 = vpop.permute.xlu1 %3918  ;;  %v5067_v0 = vld [vmem:[#allocation2 + $0xa8] sm:$0xff]  ;;  %v3810_v45 = vadd.f32 %v3809_v7, %v3808_v35 }
 0x392   : > { %v7326_v26 = vmul.f32 %v3654_v51, %v3654_v51  ;;  %v2809_v62 = vmul.f32 %v7328_v31, %v5001_v2  ;;  %v3524_v53 = vpop.permute.xlu0 %3523  ;;  %v3989_v34 = vadd.f32 %v7318_v27, %v3919_v16  ;;  %v4833_v27 = vsel %vm4020_vm10, 1.0, %v7582_v15 }
 0x393   : > { %5006 = vrcp.f32 %v3524_v53  ;;  %v4796_v16 = vsel %vm3220_vm3, 1.0, %v7582_v15 }
 0x394   : > { %v3742_v9 = vsel %vm2896_vm11, %v7326_v26, 0.0  ;;  %v2852_v55 = vmul.f32 0.5, %v2809_v62  ;;  %vm4021_vm1 = vcmp.gt.f32.partialorder %v3989_v34, 0.0  ;;  %v3811_v28 = vsel %vm2966_vm12, %v7326_v26, 0.0 }
 0x395   : > { %v5003_v4 = vpop.eup %5002  ;;  %v3743_v37 = vadd.f32 %v3742_v9, %v3741_v30  ;;  %v3114_v1 = vpop.permute.xlu1 %3113  ;;  %v5069_v9 = vld [vmem:[#allocation2 + $0xb0] sm:$0xff]  ;;  %v3812_v33 = vadd.f32 %v3811_v28, %v3810_v45 }
 0x396   : > { %v7339_v54 = vmul.f32 %v2852_v55, %v2852_v55  ;;  %v3618_v47 = vmul.f32 %v5066_v13, %v5003_v4  ;;  %v2717_v50 = vpop.permute.xlu0 %2716  ;;  %v3189_v57 = vadd.f32 %v7328_v31, %v3114_v1  ;;  %v4139_v31 = vsel %vm3297_vm8, %v4833_v27, 0.0 }
 0x397   : > { %5008 = vrcp.f32 %v2717_v50  ;;  %v3004_v50 = vsel %vm2966_vm12, %v7316_v49, 0.0 }
 0x398   : > { %v2936_v14 = vsel %vm2896_vm11, %v7339_v54, 0.0  ;;  %v3655_v63 = vmul.f32 0.5, %v3618_v47  ;;  %v3334_v47 = vadd.f32 %v3333_v42, %v3332_v10  ;;  %vm3221_vm14 = vcmp.gt.f32.partialorder %v3189_v57, 0.0 }
 0x399   : > { %v5005_v21 = vpop.eup %5004  ;;  %v2937_v32 = vadd.f32 %v2936_v14, %v2935_v22  ;;  %v3921_v48 = vpop.permute.xlu1 %3920  ;;  %v4138_v22 = vadd.f32 %v4137_v17, %v4136_v5 }
 0x39a   : > { %v7352_v18 = vmul.f32 %v3655_v63, %v3655_v63  ;;  %v2811_v6 = vmul.f32 %v5067_v0, %v5005_v21  ;;  %v3526_v38 = vpop.permute.xlu0 %3525  ;;  %v3990_v4 = vadd.f32 %v5066_v13, %v3921_v48  ;;  %v3335_v13 = vsel %vm3297_vm8, %v4796_v16, 0.0 }
 0x39b   : > { %5010 = vrcp.f32 %v3526_v38  ;;  %v3336_v58 = vadd.f32 %v3335_v13, %v3334_v47 }
 0x39c   : > { %v3744_v23 = vsel %vm2896_vm11, %v7352_v18, 0.0  ;;  %v2853_v59 = vmul.f32 0.5, %v2811_v6  ;;  %vm4022_vm2 = vcmp.gt.f32.partialorder %v3990_v4, 0.0  ;;  %v3813_v10 = vsel %vm2966_vm12, %v7352_v18, 0.0 }
 0x39d   : > { %v5007_v30 = vpop.eup %5006  ;;  %v3745_v39 = vadd.f32 %v3744_v23, %v3743_v37  ;;  %v3116_v51 = vpop.permute.xlu1 %3115  ;;  %v3003_v37 = vadd.f32 %v3002_v20, %v7287_v25  ;;  %v4834_v25 = vsel %vm4021_vm1, 1.0, %v7582_v15  ;;  %v4835_v24 = vsel %vm4022_vm2, 1.0, %v7582_v15  ;;  %v5071_v23 = vld [vmem:[#allocation2 + $0xb8] sm:$0xff] }
 0x39e   : > { %v7363_v41 = vmul.f32 %v2853_v59, %v2853_v59  ;;  %v3620_v52 = vmul.f32 %v5068_v29, %v5007_v30  ;;  %v2719_v2 = vpop.permute.xlu0 %2718  ;;  %v3190_v49 = vadd.f32 %v5067_v0, %v3116_v51  ;;  %v4141_v61 = vsel %vm3297_vm8, %v4834_v25, 0.0 }
 0x39f   : > { %5012 = vrcp.f32 %v2719_v2  ;;  %v3005_v44 = vadd.f32 %v3004_v50, %v3003_v37  ;;  %v4797_v0 = vsel %vm3221_vm14, 1.0, %v7582_v15  ;;  %v3814_v18 = vadd.f32 %v3813_v10, %v3812_v33 }
 0x3a0   : > { %v2938_v62 = vsel %vm2896_vm11, %v7363_v41, 0.0  ;;  %v3656_v53 = vmul.f32 0.5, %v3620_v52  ;;  %vm3222_vm4 = vcmp.gt.f32.partialorder %v3190_v49, 0.0  ;;  %v3337_v52 = vsel %vm3297_vm8, %v4797_v0, 0.0 }
 0x3a1   : > { %v5009_v40 = vpop.eup %5008  ;;  %v2939_v8 = vadd.f32 %v2938_v62, %v2937_v32  ;;  %v3923_v19 = vpop.permute.xlu1 %3922  ;;  %v4140_v32 = vadd.f32 %v4139_v31, %v4138_v22  ;;  %v4798_v22 = vsel %vm3222_vm4, 1.0, %v7582_v15  ;;  %v5072_v62 = vld [vmem:[#allocation3 + $0xe8] sm:$0xff]  ;;  %v3008_v57 = vsel %vm2966_vm12, %v7363_v41, 0.0 }
 0x3a2   : > { %v7377_v3 = vmul.f32 %v3656_v53, %v3656_v53  ;;  %v2813_v55 = vmul.f32 %v5069_v9, %v5009_v40  ;;  %v3528_v43 = vpop.permute.xlu0 %3527  ;;  %v3991_v59 = vadd.f32 %v5068_v29, %v3923_v19  ;;  %v4143_v29 = vsel %vm3297_vm8, %v4835_v24, 0.0 }
 0x3a3   : > { %5014 = vrcp.f32 %v3528_v43  ;;  %v4142_v34 = vadd.f32 %v4141_v61, %v4140_v32  ;;  %v3339_v37 = vsel %vm3297_vm8, %v4798_v22, 0.0 }
 0x3a4   : > { %v3746_v1 = vsel %vm2896_vm11, %v7377_v3, 0.0  ;;  %v2854_v60 = vmul.f32 0.5, %v2813_v55  ;;  %vm4023_vm5 = vcmp.gt.f32.partialorder %v3991_v59, 0.0  ;;  %v3815_v13 = vsel %vm2966_vm12, %v7377_v3, 0.0 }
 0x3a5   : > { %v5011_v56 = vpop.eup %5010  ;;  %v3747_v36 = vadd.f32 %v3746_v1, %v3745_v39  ;;  %v3118_v63 = vpop.permute.xlu1 %3117  ;;  %v3006_v39 = vsel %vm2966_vm12, %v7339_v54, 0.0  ;;  %v4144_v43 = vadd.f32 %v4143_v29, %v4142_v34  ;;  %v4836_v47 = vsel %vm4023_vm5, 1.0, %v7582_v15  ;;  %v5073_v1 = vld [vmem:[#allocation2 + $0xc0] sm:$0xff] }
 0x3a6   : > { %v7390_v46 = vmul.f32 %v2854_v60, %v2854_v60  ;;  %v3622_v14 = vmul.f32 %v5070_v12, %v5011_v56  ;;  %v2721_v21 = vpop.permute.xlu0 %2720  ;;  %v3191_v35 = vadd.f32 %v5069_v9, %v3118_v63  ;;  %v3338_v9 = vadd.f32 %v3337_v52, %v3336_v58 }
 0x3a7   : > { %5016 = vrcp.f32 %v2721_v21  ;;  %v3816_v61 = vadd.f32 %v3815_v13, %v3814_v18 }
 0x3a8   : > { %v2940_v6 = vsel %vm2896_vm11, %v7390_v46, 0.0  ;;  %v3657_v48 = vmul.f32 0.5, %v3622_v14  ;;  %vm3223_vm6 = vcmp.gt.f32.partialorder %v3191_v35, 0.0  ;;  %v4145_v14 = vsel %vm3297_vm8, %v4836_v47, 0.0 }
 0x3a9   : > { %v5013_v38 = vpop.eup %5012  ;;  %v2941_v5 = vadd.f32 %v2940_v6, %v2939_v8  ;;  %v3925_v30 = vpop.permute.xlu1 %3924  ;;  %v3007_v8 = vadd.f32 %v3006_v39, %v3005_v44  ;;  %v4799_v25 = vsel %vm3223_vm6, 1.0, %v7582_v15  ;;  %v3010_v45 = vsel %vm2966_vm12, %v7390_v46, 0.0 }
 0x3aa   : > { %v7401_v11 = vmul.f32 %v3657_v48, %v3657_v48  ;;  %v2815_v26 = vmul.f32 %v5071_v23, %v5013_v38  ;;  %v3530_v17 = vpop.permute.xlu0 %3529  ;;  %v3992_v40 = vadd.f32 %v5070_v12, %v3925_v30  ;;  %v3340_v12 = vadd.f32 %v3339_v37, %v3338_v9  ;;  %v5074_v48 = vld [vmem:[#allocation3 + $0xf0] sm:$0xff]  ;;  %v5076_v9 = vld [vmem:[#allocation3 + $0xf8] sm:$0xff] }
 0x3ab   : > { %5018 = vrcp.f32 %v3530_v17  ;;  %v3009_v50 = vadd.f32 %v3008_v57, %v3007_v8  ;;  %v3341_v3 = vsel %vm3297_vm8, %v4799_v25, 0.0  ;;  %v4146_v24 = vadd.f32 %v4145_v14, %v4144_v43 }
 0x3ac   : > { %v3748_v51 = vsel %vm2896_vm11, %v7401_v11, 0.0  ;;  %v2855_v2 = vmul.f32 0.5, %v2815_v26  ;;  %vm4024_vm7 = vcmp.gt.f32.partialorder %v3992_v40, 0.0  ;;  %v3342_v17 = vadd.f32 %v3341_v3, %v3340_v12  ;;  %v5077_v12 = vld [vmem:[#allocation2 + $0xd0] sm:$0xff] }
 0x3ad   : > { %v5015_v20 = vpop.eup %5014  ;;  %v3749_v42 = vadd.f32 %v3748_v51, %v3747_v36  ;;  %v3120_v27 = vpop.permute.xlu1 %3119  ;;  %v4837_v44 = vsel %vm4024_vm7, 1.0, %v7582_v15  ;;  %v3011_v46 = vadd.f32 %v3010_v45, %v3009_v50  ;;  %v5075_v51 = vld [vmem:[#allocation2 + $0xc8] sm:$0xff] }
 0x3ae   : > { %v7413_v54 = vmul.f32 %v2855_v2, %v2855_v2  ;;  %v3624_v53 = vmul.f32 %v5072_v62, %v5015_v20  ;;  %v2723_v16 = vpop.permute.xlu0 %2722  ;;  %v3192_v32 = vadd.f32 %v5071_v23, %v3120_v27  ;;  %v4147_v26 = vsel %vm3297_vm8, %v4837_v44, 0.0 }
 0x3af   : > { %5020 = vrcp.f32 %v2723_v16  ;;  %v4148_v29 = vadd.f32 %v4147_v26, %v4146_v24 }
 0x3b0   : > { %v2942_v55 = vsel %vm2896_vm11, %v7413_v54, 0.0  ;;  %v3658_v4 = vmul.f32 0.5, %v3624_v53  ;;  %vm3224_vm0 = vcmp.gt.f32.partialorder %v3192_v32, 0.0  ;;  %v3012_v10 = vsel %vm2966_vm12, %v7413_v54, 0.0 }
 0x3b1   : > { %v5017_v19 = vpop.eup %5016  ;;  %v2943_v7 = vadd.f32 %v2942_v55, %v2941_v5  ;;  %v3927_v60 = vpop.permute.xlu1 %3926  ;;  %v3817_v5 = vsel %vm2966_vm12, %v7401_v11, 0.0 }
 0x3b2   : > { %v3690_v31 = vmul.f32 %v3658_v4, %v3658_v4  ;;  %v2817_v41 = vmul.f32 %v5073_v1, %v5017_v19  ;;  %v3532_v56 = vpop.permute.xlu0 %3531  ;;  %v3993_v36 = vadd.f32 %v5072_v62, %v3927_v60  ;;  %v3818_v34 = vadd.f32 %v3817_v5, %v3816_v61 }
 0x3b3   : > { %5022 = vrcp.f32 %v3532_v56  ;;  %v4800_v62 = vsel %vm3224_vm0, 1.0, %v7582_v15 }
 0x3b4   : > { %v2856_v49 = vmul.f32 0.5, %v2817_v41  ;;  %v3750_v63 = vsel %vm2896_vm11, %v3690_v31, 0.0  ;;  %vm4025_vm9 = vcmp.gt.f32.partialorder %v3993_v36, 0.0  ;;  %v3343_v50 = vsel %vm3297_vm8, %v4800_v62, 0.0 }
 0x3b5   : > { %v5019_v21 = vpop.eup %5018  ;;  %v3751_v28 = vadd.f32 %v3750_v63, %v3749_v42  ;;  %v3122_v58 = vpop.permute.xlu1 %3121  ;;  %v4838_v11 = vsel %vm4025_vm9, 1.0, %v7582_v15  ;;  %v3819_v42 = vsel %vm2966_vm12, %v3690_v31, 0.0 }
 0x3b6   : > { %v7431_v6 = vmul.f32 %v2856_v49, %v2856_v49  ;;  %v3626_v38 = vmul.f32 %v5074_v48, %v5019_v21  ;;  %v2725_v0 = vpop.permute.xlu0 %2724  ;;  %v3193_v39 = vadd.f32 %v5073_v1, %v3122_v58  ;;  %v4149_v16 = vsel %vm3297_vm8, %v4838_v11, 0.0 }
 0x3b7   : > { %5024 = vrcp.f32 %v2725_v0  ;;  %v3820_v43 = vadd.f32 %v3819_v42, %v3818_v34  ;;  %v4150_v1 = vadd.f32 %v4149_v16, %v4148_v29  ;;  %v3344_v58 = vadd.f32 %v3343_v50, %v3342_v17  ;;  %v5079_v16 = vld [vmem:[#allocation2 + $0xe0] sm:$0xff] }
 0x3b8   : > { %v2944_v23 = vsel %vm2896_vm11, %v7431_v6, 0.0  ;;  %v3659_v59 = vmul.f32 0.5, %v3626_v38  ;;  %vm3225_vm15 = vcmp.gt.f32.partialorder %v3193_v39, 0.0 }
 0x3b9   : > { %v5021_v30 = vpop.eup %5020  ;;  %v2945_v33 = vadd.f32 %v2944_v23, %v2943_v7  ;;  %v2727_v35 = vpop.permute.xlu1 %2726  ;;  %v4801_v13 = vsel %vm3225_vm15, 1.0, %v7582_v15  ;;  %v5078_v23 = vld [vmem:[#allocation2 + $0xd8] sm:$0xff] }
 0x3ba   : > { %v3691_v52 = vmul.f32 %v3659_v59, %v3659_v59  ;;  %v2819_v2 = vmul.f32 %v5075_v51, %v5021_v30  ;;  %v3929_v20 = vpop.permute.xlu0 %3928  ;;  %5026 = vrcp.f32 %v2727_v35  ;;  %v3345_v0 = vsel %vm3297_vm8, %v4801_v13, 0.0 }
 0x3bb   : > { %v3994_v22 = vadd.f32 %v5074_v48, %v3929_v20  ;;  %v3346_v35 = vadd.f32 %v3345_v0, %v3344_v58  ;;  %v5081_v0 = vld [vmem:[#allocation2 + $0xf0] sm:$0xff] }
 0x3bc   : > { %v2857_v53 = vmul.f32 0.5, %v2819_v2  ;;  %v3752_v40 = vsel %vm2896_vm11, %v3691_v52, 0.0  ;;  %v3821_v57 = vsel %vm2966_vm12, %v3691_v52, 0.0 }
 0x3bd   : > { %v5023_v27 = vpop.eup %5022  ;;  %vm4026_vm13 = vcmp.gt.f32.partialorder %v3994_v22, 0.0  ;;  %v7445_v8 = vadd.f32 %v3752_v40, %v3751_v28  ;;  %v3931_v4 = vpop.permute.xlu1 %3930  ;;  %v3822_v25 = vadd.f32 %v3821_v57, %v3820_v43  ;;  %v7459_v28 = vadd.f32 %v3012_v10, %v3011_v46 }
 0x3be   : > { %v7448_v54 = vmul.f32 %v2857_v53, %v2857_v53  ;;  %v3628_v18 = vmul.f32 %v5076_v9, %v5023_v27  ;;  %v4839_v55 = vsel %vm4026_vm13, 1.0, %v7582_v15  ;;  %v3124_v19 = vpop.permute.xlu0 %3123  ;;  %v3995_v7 = vadd.f32 %v5076_v9, %v3931_v4 }
 0x3bf   : > { %v4151_v37 = vsel %vm3297_vm8, %v4839_v55, 0.0  ;;  %v3194_v47 = vadd.f32 %v5075_v51, %v3124_v19 }
 0x3c0   : > { %v2946_v31 = vsel %vm2896_vm11, %v7448_v54, 0.0  ;;  %v3660_v41 = vmul.f32 0.5, %v3628_v18  ;;  %vm4027_vm10 = vcmp.gt.f32.partialorder %v3995_v7, 0.0  ;;  %v4152_v49 = vadd.f32 %v4151_v37, %v4150_v1 }
 0x3c1   : > { %v5025_v60 = vpop.eup %5024  ;;  %v2947_v56 = vadd.f32 %v2946_v31, %v2945_v33  ;;  %v4840_v63 = vsel %vm4027_vm10, 1.0, %v7582_v15  ;;  %v3126_v21 = vpop.permute.xlu1 %3125  ;;  %vm3226_vm3 = vcmp.gt.f32.partialorder %v3194_v47, 0.0  ;;  %v3014_v18 = vsel %vm2966_vm12, %v7431_v6, 0.0  ;;  %v5080_v6 = vld [vmem:[#allocation2 + $0xe8] sm:$0xff] }
 0x3c2   : > { %v3692_v36 = vmul.f32 %v3660_v41, %v3660_v41  ;;  %v2821_v14 = vmul.f32 %v5077_v12, %v5025_v60  ;;  %v2729_v45 = vpop.permute.xlu0 %2728  ;;  %v4153_v44 = vsel %vm3297_vm8, %v4840_v63, 0.0  ;;  %v3195_v32 = vadd.f32 %v5077_v12, %v3126_v21 }
 0x3c3   : > { %5028 = vrcp.f32 %v2729_v45  ;;  %v4154_v3 = vadd.f32 %v4153_v44, %v4152_v49  ;;  %v4802_v30 = vsel %vm3226_vm3, 1.0, %v7582_v15  ;;  %v3015_v63 = vadd.f32 %v3014_v18, %v7459_v28  ;;  %v5082_v28 = vld [vmem:[#allocation2 + $0xf8] sm:$0xff] }
 0x3c4   : > { %v2858_v61 = vmul.f32 0.5, %v2821_v14  ;;  %v3823_v48 = vsel %vm2966_vm12, %v3692_v36, 0.0  ;;  %v5027_v38 = vpop.eup %5026  ;;  %vm3227_vm1 = vcmp.gt.f32.partialorder %v3195_v32, 0.0  ;;  %v3754_v52 = vsel %vm2896_vm11, %v3692_v36, 0.0 }
 0x3c5   : > { %v3824_v5 = vadd.f32 %v3823_v48, %v3822_v25  ;;  %v2823_v26 = vmul.f32 %v5078_v23, %v5027_v38  ;;  %v4155_v59 = vrot.slane %v4154_v3, 4  ;;  %v3128_v46 = vpop.permute.xlu1 %3127  ;;  %v4803_v11 = vsel %vm3227_vm1, 1.0, %v7582_v15 }
 0x3c6   : > { %v7463_v24 = vmul.f32 %v2858_v61, %v2858_v61  ;;  %v2731_v33 = vpop.permute.xlu0 %2730  ;;  %v3196_v39 = vadd.f32 %v5078_v23, %v3128_v46  ;;  %v3347_v10 = vsel %vm3297_vm8, %v4802_v30, 0.0  ;;  %v3349_v27 = vsel %vm3297_vm8, %v4803_v11, 0.0 }
 0x3c7   : > { %5030 = vrcp.f32 %v2731_v33  ;;  %v3825_v34 = vrot.slane %v3824_v5, 4  ;;  %v2859_v51 = vmul.f32 0.5, %v2823_v26  ;;  %v4156_v2 = vadd.f32 %v4155_v59, %v4154_v3 }
 0x3c8   : > { %v2948_v17 = vsel %vm2896_vm11, %v7463_v24, 0.0  ;;  %vm3228_vm14 = vcmp.gt.f32.partialorder %v3196_v39, 0.0  ;;  %v7476_v9 = vadd.f32 %v3754_v52, %v7445_v8  ;;  %v3348_v19 = vadd.f32 %v3347_v10, %v3346_v35 }
 0x3c9   : > { %v2949_v20 = vadd.f32 %v2948_v17, %v2947_v56  ;;  %v2891_v29 = vmul.f32 %v2859_v51, %v2859_v51  ;;  %v4157_v22 = vrot.slane %v4156_v2, 2  ;;  %v4804_v42 = vsel %vm3228_vm14, 1.0, %v7582_v15  ;;  %v3130_v62 = vpop.permute.xlu1 %3129 }
 0x3ca   : > { %v2733_v53 = vpop.permute.xlu0 %2732  ;;  %v3826_v40 = vadd.f32 %v3825_v34, %v3824_v5  ;;  %v3197_v57 = vadd.f32 %v5079_v16, %v3130_v62  ;;  %v3351_v7 = vsel %vm3297_vm8, %v4804_v42, 0.0  ;;  %v3350_v50 = vadd.f32 %v3349_v27, %v3348_v19 }
 0x3cb   : > { %5032 = vrcp.f32 %v2733_v53  ;;  %v2950_v55 = vsel %vm2896_vm11, %v2891_v29, 0.0  ;;  %v4158_v4 = vadd.f32 %v4157_v22, %v4156_v2  ;;  %v3016_v21 = vsel %vm2966_vm12, %v7448_v54, 0.0 }
 0x3cc   : > { %v2951_v37 = vadd.f32 %v2950_v55, %v2949_v20  ;;  %vm3229_vm2 = vcmp.gt.f32.partialorder %v3197_v57, 0.0  ;;  %v3827_v47 = vrot.slane %v3826_v40, 2  ;;  %v3352_v12 = vadd.f32 %v3351_v7, %v3350_v50 }
 0x3cd   : > { %v5029_v43 = vpop.eup %5028  ;;  %v4805_v1 = vsel %vm3229_vm2, 1.0, %v7582_v15  ;;  %v3132_v41 = vpop.permute.xlu1 %3131  ;;  %v4159_v60 = vrot.slane %v4158_v4, 1  ;;  %v3017_v59 = vadd.f32 %v3016_v21, %v3015_v63  ;;  %v3018_v54 = vsel %vm2966_vm12, %v7463_v24, 0.0 }
 0x3ce   : > { %v2825_v31 = vmul.f32 %v5079_v16, %v5029_v43  ;;  %v2735_v8 = vpop.permute.xlu0 %2734  ;;  %v3353_v56 = vsel %vm3297_vm8, %v4805_v1, 0.0  ;;  %v3198_v13 = vadd.f32 %v5080_v6, %v3132_v41  ;;  %v3828_v25 = vadd.f32 %v3827_v47, %v3826_v40 }
 0x3cf   : > { %5034 = vrcp.f32 %v2735_v8  ;;  %v4160_v14 = vadd.f32 %v4159_v60, %v4158_v4  ;;  %v3354_v61 = vadd.f32 %v3353_v56, %v3352_v12  ;;  %v3020_v39 = vsel %vm2966_vm12, %v2891_v29, 0.0 }
 0x3d0   : > { %v2860_v36 = vmul.f32 0.5, %v2825_v31  ;;  %vm3230_vm4 = vcmp.gt.f32.partialorder %v3198_v13, 0.0  ;;  %v3829_v45 = vrot.slane %v3828_v25, 1  ;;  %v3019_v11 = vadd.f32 %v3018_v54, %v3017_v59 }
 0x3d1   : > { %v5031_v49 = vpop.eup %5030  ;;  %v4806_v3 = vsel %vm3230_vm4, 1.0, %v7582_v15  ;;  %4162 = vrot.lane.b32.xlu0 %v4160_v14, %s5127_s23  ;;  %v3136_v38 = vpop.permute.xlu1 %3135  ;;  %v5130_v63 = vmov 2  }
 0x3d2   : > { %v2892_v44 = vmul.f32 %v2860_v36, %v2860_v36  ;;  %v2827_v32 = vmul.f32 %v5080_v6, %v5031_v49  ;;  %v3134_v48 = vpop.permute.xlu0 %3133  ;;  %v3355_v58 = vsel %vm3297_vm8, %v4806_v3, 0.0  ;;  %v3830_v23 = vadd.f32 %v3829_v45, %v3828_v25  ;;  %4907 = vset.pattern.permute.xlu0 %v5130_v63 }
 0x3d3   : > { %v3199_v5 = vadd.f32 %v5081_v0, %v3134_v48  ;;  %v3200_v26 = vadd.f32 %v5082_v28, %v3136_v38  ;;  %v3356_v34 = vadd.f32 %v3355_v58, %v3354_v61  ;;  %v3021_v53 = vadd.f32 %v3020_v39, %v3019_v11 }
 0x3d4   : > { %v2952_v30 = vsel %vm2896_vm11, %v2892_v44, 0.0  ;;  %v2861_v46 = vmul.f32 0.5, %v2827_v32  ;;  %3832 = vrot.lane.b32.xlu1 %v3830_v23, %s5128_s24  ;;  %v3022_v10 = vsel %vm2966_vm12, %v2892_v44, 0.0  ;;  %v3756_v44 = vrot.slane %v7476_v9, 4 }
 0x3d5   : > { %v5033_v33 = vpop.eup %5032  ;;  %vm3231_vm5 = vcmp.gt.f32.partialorder %v3199_v5, 0.0  ;;  %vm3232_vm6 = vcmp.gt.f32.partialorder %v3200_v26, 0.0  ;;  %v2953_v20 = vadd.f32 %v2952_v30, %v2951_v37  ;;  %v3023_v18 = vadd.f32 %v3022_v10, %v3021_v53 }
 0x3d6   : > { %v2893_v52 = vmul.f32 %v2861_v46, %v2861_v46  ;;  %v2829_v17 = vmul.f32 %v5081_v0, %v5033_v33  ;;  %v4807_v51 = vsel %vm3231_vm5, 1.0, %v7582_v15  ;;  %v4808_v2 = vsel %vm3232_vm6, 1.0, %v7582_v15 }
 0x3d7   : > { %v3357_v24 = vsel %vm3297_vm8, %v4807_v51, 0.0  ;;  %v3359_v35 = vsel %vm3297_vm8, %v4808_v2, 0.0  ;;  %v3757_v32 = vadd.f32 %v3756_v44, %v7476_v9 }
 0x3d8   : > { %v2862_v29 = vmul.f32 0.5, %v2829_v17  ;;  %v3358_v22 = vadd.f32 %v3357_v24, %v3356_v34  ;;  %v2954_v42 = vsel %vm2896_vm11, %v2893_v52, 0.0  ;;  %v3024_v27 = vsel %vm2966_vm12, %v2893_v52, 0.0 }
 0x3d9   : > { %v5035_v62 = vpop.eup %5034  ;;  %v2955_v40 = vadd.f32 %v2954_v42, %v2953_v20  ;;  %v3025_v37 = vadd.f32 %v3024_v27, %v3023_v18  ;;  %v3758_v3 = vrot.slane %v3757_v32, 2 }
 0x3da   : > { %v2894_v16 = vmul.f32 %v2862_v29, %v2862_v29  ;;  %v2831_v57 = vmul.f32 %v5082_v28, %v5035_v62  ;;  %v3360_v15 = vadd.f32 %v3359_v35, %v3358_v22 }
 0x3db   : > { %v3759_v48 = vadd.f32 %v3758_v3, %v3757_v32 }
 0x3dc   : > { %v3026_v55 = vsel %vm2966_vm12, %v2894_v16, 0.0  ;;  %v2863_v4 = vmul.f32 0.5, %v2831_v57  ;;  %v3361_v19 = vrot.slane %v3360_v15, 4  ;;  %v2956_v43 = vsel %vm2896_vm11, %v2894_v16, 0.0 }
 0x3dd   : > { %v2957_v7 = vadd.f32 %v2956_v43, %v2955_v40  ;;  %v3027_v31 = vadd.f32 %v3026_v55, %v3025_v37  ;;  %v3760_v58 = vrot.slane %v3759_v48, 1 }
 0x3de   : > { %v2895_v47 = vmul.f32 %v2863_v4, %v2863_v4  ;;  %v3362_v50 = vadd.f32 %v3361_v19, %v3360_v15 }
 0x3df   : > { %v3761_v23 = vadd.f32 %v3760_v58, %v3759_v48 }
 0x3e0   : > { %v3363_v1 = vrot.slane %v3362_v50, 2  ;;  %v3028_v41 = vsel %vm2966_vm12, %v2895_v47, 0.0  ;;  %v2958_v8 = vsel %vm2896_vm11, %v2895_v47, 0.0 }
 0x3e1   : > { %v3029_v60 = vadd.f32 %v3028_v41, %v3027_v31  ;;  %v2959_v56 = vadd.f32 %v2958_v8, %v2957_v7 }
 0x3e2   : > { %v3364_v6 = vadd.f32 %v3363_v1, %v3362_v50 }
 0x3e3   : > { %v3030_v13 = vrot.slane %v3029_v60, 4  ;;  %v2960_v38 = vrot.slane %v2959_v56, 4 }
 0x3e4   : > { %v3365_v25 = vrot.slane %v3364_v6, 1 }
 0x3e5   : > { %v3031_v36 = vadd.f32 %v3030_v13, %v3029_v60  ;;  %v2961_v0 = vadd.f32 %v2960_v38, %v2959_v56 }
 0x3e6   : > { %v3366_v12 = vadd.f32 %v3365_v25, %v3364_v6 }
 0x3e7   : > { %v3032_v14 = vrot.slane %v3031_v36, 2  ;;  %v2962_v26 = vrot.slane %v2961_v0, 2 }
 0x3e8   : > { %3368 = vrot.lane.b32.xlu0 %v3366_v12, %s5127_s23 }
 0x3e9   : > { %v3033_v49 = vadd.f32 %v3032_v14, %v3031_v36  ;;  %v2963_v46 = vadd.f32 %v2962_v26, %v2961_v0 }
 0x3eb   : > { %v3034_v21 = vrot.slane %v3033_v49, 1  ;;  %v2964_v33 = vrot.slane %v2963_v46, 1 }
 0x3ed   : > { %v3035_v45 = vadd.f32 %v3034_v21, %v3033_v49  ;;  %v2965_v39 = vadd.f32 %v2964_v33, %v2963_v46 }
 0x3ef   : > { %3037 = vrot.lane.b32.xlu1 %v3035_v45, %s5128_s24 }
 0x443   : > { %v4163_v61 = vpop.permute.xlu0 %4162 }
 0x444   : > { %5036 = vrcp.f32 %v4163_v61 }
 0x446   : > { %v3833_v5 = vpop.permute.xlu1 %3832 }
 0x447   : > { %v3835_v59 = vadd.f32 %v3833_v5, %v3761_v23 }
 0x44e   : > { %v5037_v28 = vpop.eup %5036 }
 0x44f   : > { %v4166_v54 = vmul.f32 %v5037_v28, %v3835_v59 }
 0x45a   : > { %v3369_v30 = vpop.permute.xlu0 %3368 }
 0x45b   : > { %5038 = vrcp.f32 %v3369_v30 }
 0x45c   : > { %5040 = vrcp.f32 %v4166_v54 }
 0x461   : > { %v3038_v9 = vpop.permute.xlu1 %3037 }
 0x462   : > { %v3040_v34 = vadd.f32 %v3038_v9, %v2965_v39 }
 0x465   : > { %v5039_v52 = vpop.eup %5038 }
 0x466   : > { %v3372_v17 = vmul.f32 %v5039_v52, %v3040_v34  ;;  %v5041_v51 = vpop.eup %5040 }
 0x468   : > { %v4168_v2 = vmul.f32 %v5041_v51, %v3372_v17 }
 0x46a   : > { %4171 = vperm.xlu0 %4907, %v4168_v2  }
 0x4e9   : > { %v4172_v11 = vpop.permute.xlu0 %4171 }
 0x4ea   : > { %4174 = vst [vmem:[%s140_s17] sm:$0x1] %v4172_v11 }
 0x4eb PF: > { %s11_s10 = sadd.s32 1, %s5121_s10   ;;  %s7601_s6 = smov %s5113_s8 }
 0x4ec   : > { %p8_p9 = scmp.ge.s32.totalorder %s11_s10, 6   ;;  %s7602_s7 = smov %s5117_s9 }
 0x4ed   : > { %s7603_s8 = smov %s7606_s11  ;;  %s7604_s9 = smov %s7610_s12 }
 0x4ee   :  { %10 = sbr.rel (!%p8_p9) target bundleno = 3 (0x3), region = 62 }

</bundles_post_ra>
